<compile_context>
chip_gen: v7x
topology: tpu7x:2x2x1
jax: 0.10.0
libtpu: 0.0.40
codegen_flags: <defaults>
</compile_context>

<pallas_src>
import functools

import jax
import jax.numpy as jnp
from jax import lax
from jax.experimental import pallas as pl
from jax.experimental.pallas import tpu as pltpu


_LANE = 128


# ----------------------------- helpers ------------------------------


def _round_up(x, m):
    return (x + m - 1) // m * m


def _vmem_limit():
    """Chip-aware scoped-VMEM limit: spend most of physical VMEM, keep headroom."""
    try:
        phys = pltpu.get_tpu_info().vmem_capacity_bytes
        return int(min(phys * 3 // 4, 96 * 1024 * 1024))
    except Exception:  # pragma: no cover - fallback when the query is unavailable
        return 64 * 1024 * 1024


def _pick_tb(nb, hw):
    """Largest divisor of the batch such that the per-block GEMM M stays moderate."""
    best = 1
    for t in range(1, nb + 1):
        if nb % t == 0 and t * hw <= 512:
            best = t
    return best


def _pick_tn(npad, cap=512):
    """Output-column tile (npad is always a multiple of 128)."""
    if npad <= cap:
        return npad
    for t in (512, 256, 128):
        if npad % t == 0:
            return t
    return npad


# ----------------------------- Pallas kernel ------------------------------


def _conv_tap_gemm_kernel(x_ref, b_ref, o_ref, *stat_refs, taps, relu_out, compute_stats):
    """Tap-gather conv GEMM.

      x_ref : (tb, Hin, Win, C)        f32 spatial window (already padded as needed)
      b_ref : (ntaps, C, tn)           bf16 per-tap weight slices
      o_ref : (tb, out_h, out_w, tn)   conv output block
      stats : optional (1, 1, tn) column sum / sum-of-squares (BatchNorm batch stats)

    For each tap (dy, dx) the kernel slices the window at (dy:dy+out_h, dx:dx+out_w),
    flattens to (M, C), casts to bf16 and accumulates a single MXU dot in f32.
    """
    tb, out_h, out_w, tn = o_ref.shape
    c = b_ref.shape[1]
    m = tb * out_h * out_w

    acc = None
    for t, (dy, dx) in enumerate(taps):
        lhs = x_ref[:, dy:dy + out_h, dx:dx + out_w, :]          # (tb, out_h, out_w, C)
        lhs = lhs.reshape(m, c).astype(jnp.bfloat16)             # layout-friendly: C % 128 == 0
        part = jnp.dot(lhs, b_ref[t], preferred_element_type=jnp.float32)
        acc = part if acc is None else acc + part

    if relu_out:
        acc = jnp.maximum(acc, 0.0)

    o_ref[...] = acc.reshape(tb, out_h, out_w, tn).astype(o_ref.dtype)

    if compute_stats:
        sum_ref, ssq_ref = stat_refs
        sum_ref[...] = jnp.sum(acc, axis=0, keepdims=True)[None]
        ssq_ref[...] = jnp.sum(acc * acc, axis=0, keepdims=True)[None]


# ----------------------------- Pallas wrapper ------------------------------


def conv_tap_gemm(x_win, b_taps, *, out_h, out_w, taps, out_dtype,
                  relu_out=False, compute_stats=False):
    """Run the tap-gather conv GEMM over a (batch_blocks, n_blocks) grid.

    x_win  : (nb, Hin, Win, C) f32    spatial window (C a multiple of 128)
    b_taps : (ntaps, C, Npad)  bf16   per-tap weights (Npad a multiple of 128)
    """
    nb, hin, win, c = x_win.shape
    ntaps, cb, npad = b_taps.shape
    assert cb == c and ntaps == len(taps)
    assert c % _LANE == 0 and npad % _LANE == 0

    tb = _pick_tb(nb, out_h * out_w)
    tn = _pick_tn(npad)
    nbb, nn = nb // tb, npad // tn
    grid = (nbb, nn)

    kern = functools.partial(_conv_tap_gemm_kernel, taps=taps,
                             relu_out=relu_out, compute_stats=compute_stats)
    in_specs = [
        pl.BlockSpec((tb, hin, win, c), lambda bi, nj: (bi, 0, 0, 0)),
        pl.BlockSpec((ntaps, c, tn), lambda bi, nj: (0, 0, nj)),
    ]
    out_spec_y = pl.BlockSpec((tb, out_h, out_w, tn), lambda bi, nj: (bi, 0, 0, nj))
    cparams = pltpu.CompilerParams(
        dimension_semantics=("parallel", "parallel"),   # batch x N: feeds both v7x TCs
        vmem_limit_bytes=_vmem_limit(),
    )

    if not compute_stats:
        return pl.pallas_call(
            kern,
            out_shape=jax.ShapeDtypeStruct((nb, out_h, out_w, npad), out_dtype),
            grid=grid,
            in_specs=in_specs,
            out_specs=out_spec_y,
            compiler_params=cparams,
        )(x_win, b_taps)

    return pl.pallas_call(
        kern,
        out_shape=(
            jax.ShapeDtypeStruct((nb, out_h, out_w, npad), out_dtype),
            jax.ShapeDtypeStruct((nbb, 1, npad), jnp.float32),
            jax.ShapeDtypeStruct((nbb, 1, npad), jnp.float32),
        ),
        grid=grid,
        in_specs=in_specs,
        out_specs=(
            out_spec_y,
            pl.BlockSpec((1, 1, tn), lambda bi, nj: (bi, 0, nj)),
            pl.BlockSpec((1, 1, tn), lambda bi, nj: (bi, 0, nj)),
        ),
        compiler_params=cparams,
    )(x_win, b_taps)


# ----------------------------- weight packing (XLA, tiny) -------------------


def build_down_weights(w_down, c0pad, c1pad):
    """Conv2d(k=4, s=2, p=1) as a 2x2-tap conv over the space-to-depth'd input.

    Returns (4, c0pad, c1pad):  B[di*2+dj, (pr*2+pc)*cin + c, o] = w[o, c, 2di+pr, 2dj+pc].
    Padded rows/cols are zero."""
    inner_nc, cin = w_down.shape[0], w_down.shape[1]
    wt = jnp.transpose(w_down, (2, 3, 1, 0))              # (kh, kw, c, o)
    wt = wt.reshape(2, 2, 2, 2, cin, inner_nc)            # (di, pr, dj, pc, c, o)
    wt = jnp.transpose(wt, (0, 2, 1, 3, 4, 5))            # (di, dj, pr, pc, c, o)
    wt = wt.reshape(4, 4 * cin, inner_nc)
    b = jnp.zeros((4, c0pad, c1pad), jnp.float32)
    return b.at[:, :4 * cin, :inner_nc].set(wt)


def build_up_weights(w_up, c1pad, cpad):
    """Sub-pixel weights for ConvTranspose2d(k=4, s=2, p=1).

    Output phase (dr, dc) at (2i+dr, 2j+dc) uses a 2x2 window inside the 3x3
    neighbourhood of zero-padded y1.  Returns (9, c1pad, 4*cpad): tap ordered (a, b),
    K = padded inner channels, N = phase-major with each phase padded to cpad."""
    inner_nc, outer_nc = w_up.shape[0], w_up.shape[1]
    tap = {0: {0: 3, 1: 1}, 1: {1: 2, 2: 0}}               # window offset -> kernel index
    b = jnp.zeros((3, 3, c1pad, 2, 2, cpad), jnp.float32)
    for dr in (0, 1):
        for a, kh in tap[dr].items():
            for dc in (0, 1):
                for bc, kw in tap[dc].items():
                    b = b.at[a, bc, :inner_nc, dr, dc, :outer_nc].set(w_up[:, :, kh, kw])
    return b.reshape(9, c1pad, 4 * cpad)


# ----------------------------- forward pass ---------------------------------


def unet_skip_innermost(x_nchw, w_down, w_up, gamma, beta, eps=1e-5):
    """Forward pass of the innermost UnetSkipConnectionBlock (BatchNorm2d, train stats)."""
    n, cin, h, w = x_nchw.shape
    inner_nc = w_down.shape[0]
    outer_nc = w_up.shape[1]
    ho, wo = h // 2, w // 2
    c0pad = _round_up(4 * cin, _LANE)
    c1pad = _round_up(inner_nc, _LANE)
    cpad = _round_up(outer_nc, _LANE)

    # ---- LeakyReLU(0.2) on the un-replicated input, then pad(1) + space-to-depth so the
    #      4x4/s2 conv becomes a 2x2-tap stride-1 conv (all patch gathering happens
    #      in-kernel; this is ~1 cheap pass over the small x tensor).
    x_nhwc = jnp.transpose(x_nchw, (0, 2, 3, 1))
    xa = jnp.where(x_nhwc > 0, x_nhwc, 0.2 * x_nhwc)
    xp = jnp.pad(xa, ((0, 0), (1, 1), (1, 1), (0, 0)))
    h2, w2 = ho + 1, wo + 1
    xs = xp.reshape(n, h2, 2, w2, 2, cin).transpose(0, 1, 3, 2, 4, 5)
    xs = xs.reshape(n, h2, w2, 4 * cin)
    xs = jnp.pad(xs, ((0, 0), (0, 0), (0, 0), (0, c0pad - 4 * cin)))
    # TODO(synk): window inputs stay f32 (cast to bf16 in-kernel before the MXU) because
    # per-tap slicing at odd sublane offsets of packed bf16 data is a lowering risk.

    # ---- down: Conv2d(k=4, s=2, p=1, bias=False); the up path's ReLU is fused into the
    #      epilogue so y1 is activated exactly once.  y1 keeps its 128-padded channels.
    b_down = build_down_weights(w_down, c0pad, c1pad).astype(jnp.bfloat16)
    taps_down = tuple((di, dj) for di in range(2) for dj in range(2))
    y1 = conv_tap_gemm(xs, b_down, out_h=ho, out_w=wo, taps=taps_down,
                       out_dtype=jnp.float32, relu_out=True)

    # ---- up: ConvTranspose2d(k=4, s=2, p=1, bias=False) via sub-pixel decomposition.
    #      One small XLA pad of y1 (the 9x im2col slab is gone); 9 taps sliced in-kernel;
    #      BN batch statistics fused into the epilogue; y2 emitted as bf16.
    y1p = jnp.pad(y1, ((0, 0), (1, 1), (1, 1), (0, 0)))
    b_up = build_up_weights(w_up, c1pad, cpad).astype(jnp.bfloat16)
    taps_up = tuple((a, b) for a in range(3) for b in range(3))
    y2_raw, psum, pssq = conv_tap_gemm(
        y1p, b_up, out_h=ho, out_w=wo, taps=taps_up,
        out_dtype=jnp.bfloat16, relu_out=False, compute_stats=True)

    # ---- BatchNorm2d (training-mode batch stats, biased variance).  Each output channel
    #      occupies 4 phase column groups (each padded to cpad) -> reduce across phases.
    count = jnp.float32(4 * n * ho * wo)
    csum = psum.reshape(-1, 4 * cpad).sum(axis=0).reshape(4, cpad)[:, :outer_nc].sum(axis=0)
    cssq = pssq.reshape(-1, 4 * cpad).sum(axis=0).reshape(4, cpad)[:, :outer_nc].sum(axis=0)
    mean = csum / count
    var = cssq / count - mean * mean
    scale_c = gamma * lax.rsqrt(var + eps)
    shift_c = beta - mean * scale_c

    # ---- BN apply + sub-pixel re-interleave + NCHW + skip concat.  The per-channel
    #      affine is folded into this XLA tail so it fuses with the transposes/concat
    #      (one fewer full pass over y2 than a standalone affine kernel).
    # TODO(synk): a single Pallas epilogue writing the NCHW concat buffer directly would
    # save one more pass but needs an in-kernel lane->sublane transpose that is not
    # robust at small channel counts.
    y2 = y2_raw.reshape(n, ho, wo, 4, cpad)[..., :outer_nc].astype(jnp.float32)
    y2 = y2 * scale_c + shift_c
    y2 = y2.reshape(n, ho, wo, 2, 2, outer_nc).transpose(0, 1, 3, 2, 4, 5)
    y2 = y2.reshape(n, 2 * ho, 2 * wo, outer_nc)
    y2_nchw = jnp.transpose(y2, (0, 3, 1, 2))
    return jnp.concatenate([x_nchw, y2_nchw], axis=1)


# ----------------------------- reference (pure JAX/XLA) ---------------------


def reference_forward(x, w_down, w_up, gamma, beta, eps=1e-5):
    xa = jnp.where(x > 0, x, 0.2 * x)
    y1 = lax.conv_general_dilated(
        xa, w_down, window_strides=(2, 2), padding=[(1, 1), (1, 1)],
        dimension_numbers=("NCHW", "OIHW", "NCHW"))
    y1 = jnp.maximum(y1, 0.0)
    w_up_conv = jnp.flip(jnp.transpose(w_up, (1, 0, 2, 3)), axis=(2, 3))
    y2 = lax.conv_general_dilated(
        y1, w_up_conv, window_strides=(1, 1), padding=[(2, 2), (2, 2)],
        lhs_dilation=(2, 2), dimension_numbers=("NCHW", "OIHW", "NCHW"))
    mean = y2.mean(axis=(0, 2, 3), keepdims=True)
    var = jnp.mean(jnp.square(y2 - mean), axis=(0, 2, 3), keepdims=True)
    y2 = (y2 - mean) / jnp.sqrt(var + eps) * gamma.reshape(1, -1, 1, 1) + beta.reshape(1, -1, 1, 1)
    return jnp.concatenate([x, y2], axis=1)


# ----------------------------- main ------------------------------------------


if __name__ == "__main__":
    key = jax.random.PRNGKey(0)
    k_x, k_wd, k_wu, k_g, k_b = jax.random.split(key, 5)

    # innermost block at small shapes: batch=2, input_nc=outer_nc=4, inner_nc=8, spatial=16
    n, outer_nc, inner_nc, h, w = 2, 4, 8, 16, 16
    input_nc = outer_nc  # input_nc defaults to outer_nc in the module

    x = jax.random.normal(k_x, (n, input_nc, h, w), dtype=jnp.float32)
    # Conv2d weight: (inner_nc, input_nc, 4, 4); ConvTranspose2d weight: (inner_nc, outer_nc, 4, 4)
    w_down = 0.1 * jax.random.normal(k_wd, (inner_nc, input_nc, 4, 4), dtype=jnp.float32)
    w_up = 0.1 * jax.random.normal(k_wu, (inner_nc, outer_nc, 4, 4), dtype=jnp.float32)
    gamma = 1.0 + 0.1 * jax.random.normal(k_g, (outer_nc,), dtype=jnp.float32)
    beta = 0.1 * jax.random.normal(k_b, (outer_nc,), dtype=jnp.float32)
    # TODO(synk): only the innermost variant is implemented; outermost/middle variants
    # compose recursively with a submodule and are out of scope for a single kernel.

    out = jax.jit(unet_skip_innermost)(x, w_down, w_up, gamma, beta)
    out = jax.block_until_ready(out)

    ref = reference_forward(x, w_down, w_up, gamma, beta)
    assert out.shape == (n, input_nc + outer_nc, h, w), out.shape
    max_err = float(jnp.max(jnp.abs(out - ref)))
    # bf16 MXU inputs + bf16 y2 storage -> dtype-appropriate tolerance (BN rescales to ~unit).
    assert jnp.allclose(out, ref, atol=1e-1, rtol=1e-1), max_err

    print("KERNEL_OK")
</pallas_src>

<mosaic_0001>
module attributes {stable_mosaic.version = 11 : i64} {
  func.func @_conv_tap_gemm_kernel(%arg0: i32, %arg1: i32, %arg2: memref<2x9x9x128xf32, #tpu.memory_space<vmem>>, %arg3: memref<4x128x128xbf16, #tpu.memory_space<vmem>>, %arg4: memref<2x8x8x128xf32, #tpu.memory_space<vmem>>) attributes {dimension_semantics = [#tpu.dimension_semantics<parallel>, #tpu.dimension_semantics<parallel>], iteration_bounds = array<i64: 1, 1>, scalar_prefetch = 0 : i64, scratch_operands = 0 : i64, tpu.core_type = #tpu.core_type<tc>, window_params = [{transform_indices = @transform_0, window_bounds = array<i64: 2, 9, 9, 128>}, {transform_indices = @transform_1, window_bounds = array<i64: 4, 128, 128>}, {transform_indices = @transform_2, window_bounds = array<i64: 2, 8, 8, 128>}]} {
    %c0 = arith.constant 0 : index
    %c0_0 = arith.constant 0 : index
    %c0_1 = arith.constant 0 : index
    %c0_2 = arith.constant 0 : index
    %0 = vector.load %arg2[%c0, %c0_0, %c0_1, %c0_2] : memref<2x9x9x128xf32, #tpu.memory_space<vmem>>, vector<2x8x8x128xf32>
    %1 = vector.shape_cast %0 : vector<2x8x8x128xf32> to vector<128x128xf32>
    %2 = arith.truncf %1 : vector<128x128xf32> to vector<128x128xbf16>
    %c0_3 = arith.constant 0 : index
    %c0_4 = arith.constant 0 : index
    %c0_5 = arith.constant 0 : index
    %3 = vector.load %arg3[%c0_3, %c0_4, %c0_5] : memref<4x128x128xbf16, #tpu.memory_space<vmem>>, vector<1x128x128xbf16>
    %4 = vector.shape_cast %3 : vector<1x128x128xbf16> to vector<128x128xbf16>
    %cst = arith.constant dense<0.000000e+00> : vector<128x128xf32>
    %5 = tpu.matmul %2, %4, %cst {dimension_numbers = #tpu.dot_dimension_numbers<[1], [0], [0], [1], [0, 0, 1, 1], [], []>} : vector<128x128xbf16>, vector<128x128xbf16>, vector<128x128xf32> -> vector<128x128xf32>
    %c0_6 = arith.constant 0 : index
    %c0_7 = arith.constant 0 : index
    %c1 = arith.constant 1 : index
    %c0_8 = arith.constant 0 : index
    %6 = vector.load %arg2[%c0_6, %c0_7, %c1, %c0_8] : memref<2x9x9x128xf32, #tpu.memory_space<vmem>>, vector<2x8x8x128xf32>
    %7 = vector.shape_cast %6 : vector<2x8x8x128xf32> to vector<128x128xf32>
    %8 = arith.truncf %7 : vector<128x128xf32> to vector<128x128xbf16>
    %c1_9 = arith.constant 1 : index
    %c0_10 = arith.constant 0 : index
    %c0_11 = arith.constant 0 : index
    %9 = vector.load %arg3[%c1_9, %c0_10, %c0_11] : memref<4x128x128xbf16, #tpu.memory_space<vmem>>, vector<1x128x128xbf16>
    %10 = vector.shape_cast %9 : vector<1x128x128xbf16> to vector<128x128xbf16>
    %cst_12 = arith.constant dense<0.000000e+00> : vector<128x128xf32>
    %11 = tpu.matmul %8, %10, %cst_12 {dimension_numbers = #tpu.dot_dimension_numbers<[1], [0], [0], [1], [0, 0, 1, 1], [], []>} : vector<128x128xbf16>, vector<128x128xbf16>, vector<128x128xf32> -> vector<128x128xf32>
    %12 = arith.addf %5, %11 : vector<128x128xf32>
    %c0_13 = arith.constant 0 : index
    %c1_14 = arith.constant 1 : index
    %c0_15 = arith.constant 0 : index
    %c0_16 = arith.constant 0 : index
    %13 = vector.load %arg2[%c0_13, %c1_14, %c0_15, %c0_16] : memref<2x9x9x128xf32, #tpu.memory_space<vmem>>, vector<2x8x8x128xf32>
    %14 = vector.shape_cast %13 : vector<2x8x8x128xf32> to vector<128x128xf32>
    %15 = arith.truncf %14 : vector<128x128xf32> to vector<128x128xbf16>
    %c2 = arith.constant 2 : index
    %c0_17 = arith.constant 0 : index
    %c0_18 = arith.constant 0 : index
    %16 = vector.load %arg3[%c2, %c0_17, %c0_18] : memref<4x128x128xbf16, #tpu.memory_space<vmem>>, vector<1x128x128xbf16>
    %17 = vector.shape_cast %16 : vector<1x128x128xbf16> to vector<128x128xbf16>
    %cst_19 = arith.constant dense<0.000000e+00> : vector<128x128xf32>
    %18 = tpu.matmul %15, %17, %cst_19 {dimension_numbers = #tpu.dot_dimension_numbers<[1], [0], [0], [1], [0, 0, 1, 1], [], []>} : vector<128x128xbf16>, vector<128x128xbf16>, vector<128x128xf32> -> vector<128x128xf32>
    %19 = arith.addf %12, %18 : vector<128x128xf32>
    %c0_20 = arith.constant 0 : index
    %c1_21 = arith.constant 1 : index
    %c1_22 = arith.constant 1 : index
    %c0_23 = arith.constant 0 : index
    %20 = vector.load %arg2[%c0_20, %c1_21, %c1_22, %c0_23] : memref<2x9x9x128xf32, #tpu.memory_space<vmem>>, vector<2x8x8x128xf32>
    %21 = vector.shape_cast %20 : vector<2x8x8x128xf32> to vector<128x128xf32>
    %22 = arith.truncf %21 : vector<128x128xf32> to vector<128x128xbf16>
    %c3 = arith.constant 3 : index
    %c0_24 = arith.constant 0 : index
    %c0_25 = arith.constant 0 : index
    %23 = vector.load %arg3[%c3, %c0_24, %c0_25] : memref<4x128x128xbf16, #tpu.memory_space<vmem>>, vector<1x128x128xbf16>
    %24 = vector.shape_cast %23 : vector<1x128x128xbf16> to vector<128x128xbf16>
    %cst_26 = arith.constant dense<0.000000e+00> : vector<128x128xf32>
    %25 = tpu.matmul %22, %24, %cst_26 {dimension_numbers = #tpu.dot_dimension_numbers<[1], [0], [0], [1], [0, 0, 1, 1], [], []>} : vector<128x128xbf16>, vector<128x128xbf16>, vector<128x128xf32> -> vector<128x128xf32>
    %26 = arith.addf %19, %25 : vector<128x128xf32>
    %cst_27 = arith.constant 0.000000e+00 : f32
    %27 = vector.broadcast %cst_27 : f32 to vector<128x128xf32>
    %28 = arith.maximumf %26, %27 : vector<128x128xf32>
    %29 = vector.shape_cast %28 : vector<128x128xf32> to vector<2x8x8x128xf32>
    %c0_28 = arith.constant 0 : index
    %c0_29 = arith.constant 0 : index
    %c0_30 = arith.constant 0 : index
    %c0_31 = arith.constant 0 : index
    %30 = vector.load %arg4[%c0_28, %c0_29, %c0_30, %c0_31] : memref<2x8x8x128xf32, #tpu.memory_space<vmem>>, vector<2x8x8x128xf32>
    tpu.vector_store %arg4[%c0_28, %c0_29, %c0_30, %c0_31], %29 {strides = array<i32>} : memref<2x8x8x128xf32, #tpu.memory_space<vmem>>, vector<2x8x8x128xf32>,
    return
  }
  func.func @transform_0(%arg0: i32, %arg1: i32) -> (i32, i32, i32, i32) {
    %c0_i32 = arith.constant 0 : i32
    %c0_i32_0 = arith.constant 0 : i32
    %c0_i32_1 = arith.constant 0 : i32
    %c0_i32_2 = arith.constant 0 : i32
    return %arg0, %c0_i32, %c0_i32_0, %c0_i32_1 : i32, i32, i32, i32
  }
  func.func @transform_1(%arg0: i32, %arg1: i32) -> (i32, i32, i32) {
    %c0_i32 = arith.constant 0 : i32
    %c0_i32_0 = arith.constant 0 : i32
    %c0_i32_1 = arith.constant 0 : i32
    return %c0_i32, %c0_i32_0, %arg1 : i32, i32, i32
  }
  func.func @transform_2(%arg0: i32, %arg1: i32) -> (i32, i32, i32, i32) {
    %c0_i32 = arith.constant 0 : i32
    %c0_i32_0 = arith.constant 0 : i32
    %c0_i32_1 = arith.constant 0 : i32
    return %arg0, %c0_i32, %c0_i32_0, %arg1 : i32, i32, i32, i32
  }
}

module attributes {stable_mosaic.version = 11 : i64} {
  func.func @_conv_tap_gemm_kernel(%arg0: i32, %arg1: i32, %arg2: memref<2x10x10x128xf32, #tpu.memory_space<vmem>>, %arg3: memref<9x128x512xbf16, #tpu.memory_space<vmem>>, %arg4: memref<2x8x8x512xbf16, #tpu.memory_space<vmem>>, %arg5: memref<1x1x512xf32, #tpu.memory_space<vmem>>, %arg6: memref<1x1x512xf32, #tpu.memory_space<vmem>>) attributes {dimension_semantics = [#tpu.dimension_semantics<parallel>, #tpu.dimension_semantics<parallel>], iteration_bounds = array<i64: 1, 1>, scalar_prefetch = 0 : i64, scratch_operands = 0 : i64, tpu.core_type = #tpu.core_type<tc>, window_params = [{transform_indices = @transform_0, window_bounds = array<i64: 2, 10, 10, 128>}, {transform_indices = @transform_1, window_bounds = array<i64: 9, 128, 512>}, {transform_indices = @transform_2, window_bounds = array<i64: 2, 8, 8, 512>}, {transform_indices = @transform_3, window_bounds = array<i64: 1, 1, 512>}, {transform_indices = @transform_4, window_bounds = array<i64: 1, 1, 512>}]} {
    %c0 = arith.constant 0 : index
    %c0_0 = arith.constant 0 : index
    %c0_1 = arith.constant 0 : index
    %c0_2 = arith.constant 0 : index
    %0 = vector.load %arg2[%c0, %c0_0, %c0_1, %c0_2] : memref<2x10x10x128xf32, #tpu.memory_space<vmem>>, vector<2x8x8x128xf32>
    %1 = vector.shape_cast %0 : vector<2x8x8x128xf32> to vector<128x128xf32>
    %2 = arith.truncf %1 : vector<128x128xf32> to vector<128x128xbf16>
    %c0_3 = arith.constant 0 : index
    %c0_4 = arith.constant 0 : index
    %c0_5 = arith.constant 0 : index
    %3 = vector.load %arg3[%c0_3, %c0_4, %c0_5] : memref<9x128x512xbf16, #tpu.memory_space<vmem>>, vector<1x128x512xbf16>
    %4 = vector.shape_cast %3 : vector<1x128x512xbf16> to vector<128x512xbf16>
    %cst = arith.constant dense<0.000000e+00> : vector<128x512xf32>
    %5 = tpu.matmul %2, %4, %cst {dimension_numbers = #tpu.dot_dimension_numbers<[1], [0], [0], [1], [0, 0, 1, 1], [], []>} : vector<128x128xbf16>, vector<128x512xbf16>, vector<128x512xf32> -> vector<128x512xf32>
    %c0_6 = arith.constant 0 : index
    %c0_7 = arith.constant 0 : index
    %c1 = arith.constant 1 : index
    %c0_8 = arith.constant 0 : index
    %6 = vector.load %arg2[%c0_6, %c0_7, %c1, %c0_8] : memref<2x10x10x128xf32, #tpu.memory_space<vmem>>, vector<2x8x8x128xf32>
    %7 = vector.shape_cast %6 : vector<2x8x8x128xf32> to vector<128x128xf32>
    %8 = arith.truncf %7 : vector<128x128xf32> to vector<128x128xbf16>
    %c1_9 = arith.constant 1 : index
    %c0_10 = arith.constant 0 : index
    %c0_11 = arith.constant 0 : index
    %9 = vector.load %arg3[%c1_9, %c0_10, %c0_11] : memref<9x128x512xbf16, #tpu.memory_space<vmem>>, vector<1x128x512xbf16>
    %10 = vector.shape_cast %9 : vector<1x128x512xbf16> to vector<128x512xbf16>
    %cst_12 = arith.constant dense<0.000000e+00> : vector<128x512xf32>
    %11 = tpu.matmul %8, %10, %cst_12 {dimension_numbers = #tpu.dot_dimension_numbers<[1], [0], [0], [1], [0, 0, 1, 1], [], []>} : vector<128x128xbf16>, vector<128x512xbf16>, vector<128x512xf32> -> vector<128x512xf32>
    %12 = arith.addf %5, %11 : vector<128x512xf32>
    %c0_13 = arith.constant 0 : index
    %c0_14 = arith.constant 0 : index
    %c2 = arith.constant 2 : index
    %c0_15 = arith.constant 0 : index
    %13 = vector.load %arg2[%c0_13, %c0_14, %c2, %c0_15] : memref<2x10x10x128xf32, #tpu.memory_space<vmem>>, vector<2x8x8x128xf32>
    %14 = vector.shape_cast %13 : vector<2x8x8x128xf32> to vector<128x128xf32>
    %15 = arith.truncf %14 : vector<128x128xf32> to vector<128x128xbf16>
    %c2_16 = arith.constant 2 : index
    %c0_17 = arith.constant 0 : index
    %c0_18 = arith.constant 0 : index
    %16 = vector.load %arg3[%c2_16, %c0_17, %c0_18] : memref<9x128x512xbf16, #tpu.memory_space<vmem>>, vector<1x128x512xbf16>
    %17 = vector.shape_cast %16 : vector<1x128x512xbf16> to vector<128x512xbf16>
    %cst_19 = arith.constant dense<0.000000e+00> : vector<128x512xf32>
    %18 = tpu.matmul %15, %17, %cst_19 {dimension_numbers = #tpu.dot_dimension_numbers<[1], [0], [0], [1], [0, 0, 1, 1], [], []>} : vector<128x128xbf16>, vector<128x512xbf16>, vector<128x512xf32> -> vector<128x512xf32>
    %19 = arith.addf %12, %18 : vector<128x512xf32>
    %c0_20 = arith.constant 0 : index
    %c1_21 = arith.constant 1 : index
    %c0_22 = arith.constant 0 : index
    %c0_23 = arith.constant 0 : index
    %20 = vector.load %arg2[%c0_20, %c1_21, %c0_22, %c0_23] : memref<2x10x10x128xf32, #tpu.memory_space<vmem>>, vector<2x8x8x128xf32>
    %21 = vector.shape_cast %20 : vector<2x8x8x128xf32> to vector<128x128xf32>
    %22 = arith.truncf %21 : vector<128x128xf32> to vector<128x128xbf16>
    %c3 = arith.constant 3 : index
    %c0_24 = arith.constant 0 : index
    %c0_25 = arith.constant 0 : index
    %23 = vector.load %arg3[%c3, %c0_24, %c0_25] : memref<9x128x512xbf16, #tpu.memory_space<vmem>>, vector<1x128x512xbf16>
    %24 = vector.shape_cast %23 : vector<1x128x512xbf16> to vector<128x512xbf16>
    %cst_26 = arith.constant dense<0.000000e+00> : vector<128x512xf32>
    %25 = tpu.matmul %22, %24, %cst_26 {dimension_numbers = #tpu.dot_dimension_numbers<[1], [0], [0], [1], [0, 0, 1, 1], [], []>} : vector<128x128xbf16>, vector<128x512xbf16>, vector<128x512xf32> -> vector<128x512xf32>
    %26 = arith.addf %19, %25 : vector<128x512xf32>
    %c0_27 = arith.constant 0 : index
    %c1_28 = arith.constant 1 : index
    %c1_29 = arith.constant 1 : index
    %c0_30 = arith.constant 0 : index
    %27 = vector.load %arg2[%c0_27, %c1_28, %c1_29, %c0_30] : memref<2x10x10x128xf32, #tpu.memory_space<vmem>>, vector<2x8x8x128xf32>
    %28 = vector.shape_cast %27 : vector<2x8x8x128xf32> to vector<128x128xf32>
    %29 = arith.truncf %28 : vector<128x128xf32> to vector<128x128xbf16>
    %c4 = arith.constant 4 : index
    %c0_31 = arith.constant 0 : index
    %c0_32 = arith.constant 0 : index
    %30 = vector.load %arg3[%c4, %c0_31, %c0_32] : memref<9x128x512xbf16, #tpu.memory_space<vmem>>, vector<1x128x512xbf16>
    %31 = vector.shape_cast %30 : vector<1x128x512xbf16> to vector<128x512xbf16>
    %cst_33 = arith.constant dense<0.000000e+00> : vector<128x512xf32>
    %32 = tpu.matmul %29, %31, %cst_33 {dimension_numbers = #tpu.dot_dimension_numbers<[1], [0], [0], [1], [0, 0, 1, 1], [], []>} : vector<128x128xbf16>, vector<128x512xbf16>, vector<128x512xf32> -> vector<128x512xf32>
    %33 = arith.addf %26, %32 : vector<128x512xf32>
    %c0_34 = arith.constant 0 : index
    %c1_35 = arith.constant 1 : index
    %c2_36 = arith.constant 2 : index
    %c0_37 = arith.constant 0 : index
    %34 = vector.load %arg2[%c0_34, %c1_35, %c2_36, %c0_37] : memref<2x10x10x128xf32, #tpu.memory_space<vmem>>, vector<2x8x8x128xf32>
    %35 = vector.shape_cast %34 : vector<2x8x8x128xf32> to vector<128x128xf32>
    %36 = arith.truncf %35 : vector<128x128xf32> to vector<128x128xbf16>
    %c5 = arith.constant 5 : index
    %c0_38 = arith.constant 0 : index
    %c0_39 = arith.constant 0 : index
    %37 = vector.load %arg3[%c5, %c0_38, %c0_39] : memref<9x128x512xbf16, #tpu.memory_space<vmem>>, vector<1x128x512xbf16>
    %38 = vector.shape_cast %37 : vector<1x128x512xbf16> to vector<128x512xbf16>
    %cst_40 = arith.constant dense<0.000000e+00> : vector<128x512xf32>
    %39 = tpu.matmul %36, %38, %cst_40 {dimension_numbers = #tpu.dot_dimension_numbers<[1], [0], [0], [1], [0, 0, 1, 1], [], []>} : vector<128x128xbf16>, vector<128x512xbf16>, vector<128x512xf32> -> vector<128x512xf32>
    %40 = arith.addf %33, %39 : vector<128x512xf32>
    %c0_41 = arith.constant 0 : index
    %c2_42 = arith.constant 2 : index
    %c0_43 = arith.constant 0 : index
    %c0_44 = arith.constant 0 : index
    %41 = vector.load %arg2[%c0_41, %c2_42, %c0_43, %c0_44] : memref<2x10x10x128xf32, #tpu.memory_space<vmem>>, vector<2x8x8x128xf32>
    %42 = vector.shape_cast %41 : vector<2x8x8x128xf32> to vector<128x128xf32>
    %43 = arith.truncf %42 : vector<128x128xf32> to vector<128x128xbf16>
    %c6 = arith.constant 6 : index
    %c0_45 = arith.constant 0 : index
    %c0_46 = arith.constant 0 : index
    %44 = vector.load %arg3[%c6, %c0_45, %c0_46] : memref<9x128x512xbf16, #tpu.memory_space<vmem>>, vector<1x128x512xbf16>
    %45 = vector.shape_cast %44 : vector<1x128x512xbf16> to vector<128x512xbf16>
    %cst_47 = arith.constant dense<0.000000e+00> : vector<128x512xf32>
    %46 = tpu.matmul %43, %45, %cst_47 {dimension_numbers = #tpu.dot_dimension_numbers<[1], [0], [0], [1], [0, 0, 1, 1], [], []>} : vector<128x128xbf16>, vector<128x512xbf16>, vector<128x512xf32> -> vector<128x512xf32>
    %47 = arith.addf %40, %46 : vector<128x512xf32>
    %c0_48 = arith.constant 0 : index
    %c2_49 = arith.constant 2 : index
    %c1_50 = arith.constant 1 : index
    %c0_51 = arith.constant 0 : index
    %48 = vector.load %arg2[%c0_48, %c2_49, %c1_50, %c0_51] : memref<2x10x10x128xf32, #tpu.memory_space<vmem>>, vector<2x8x8x128xf32>
    %49 = vector.shape_cast %48 : vector<2x8x8x128xf32> to vector<128x128xf32>
    %50 = arith.truncf %49 : vector<128x128xf32> to vector<128x128xbf16>
    %c7 = arith.constant 7 : index
    %c0_52 = arith.constant 0 : index
    %c0_53 = arith.constant 0 : index
    %51 = vector.load %arg3[%c7, %c0_52, %c0_53] : memref<9x128x512xbf16, #tpu.memory_space<vmem>>, vector<1x128x512xbf16>
    %52 = vector.shape_cast %51 : vector<1x128x512xbf16> to vector<128x512xbf16>
    %cst_54 = arith.constant dense<0.000000e+00> : vector<128x512xf32>
    %53 = tpu.matmul %50, %52, %cst_54 {dimension_numbers = #tpu.dot_dimension_numbers<[1], [0], [0], [1], [0, 0, 1, 1], [], []>} : vector<128x128xbf16>, vector<128x512xbf16>, vector<128x512xf32> -> vector<128x512xf32>
    %54 = arith.addf %47, %53 : vector<128x512xf32>
    %c0_55 = arith.constant 0 : index
    %c2_56 = arith.constant 2 : index
    %c2_57 = arith.constant 2 : index
    %c0_58 = arith.constant 0 : index
    %55 = vector.load %arg2[%c0_55, %c2_56, %c2_57, %c0_58] : memref<2x10x10x128xf32, #tpu.memory_space<vmem>>, vector<2x8x8x128xf32>
    %56 = vector.shape_cast %55 : vector<2x8x8x128xf32> to vector<128x128xf32>
    %57 = arith.truncf %56 : vector<128x128xf32> to vector<128x128xbf16>
    %c8 = arith.constant 8 : index
    %c0_59 = arith.constant 0 : index
    %c0_60 = arith.constant 0 : index
    %58 = vector.load %arg3[%c8, %c0_59, %c0_60] : memref<9x128x512xbf16, #tpu.memory_space<vmem>>, vector<1x128x512xbf16>
    %59 = vector.shape_cast %58 : vector<1x128x512xbf16> to vector<128x512xbf16>
    %cst_61 = arith.constant dense<0.000000e+00> : vector<128x512xf32>
    %60 = tpu.matmul %57, %59, %cst_61 {dimension_numbers = #tpu.dot_dimension_numbers<[1], [0], [0], [1], [0, 0, 1, 1], [], []>} : vector<128x128xbf16>, vector<128x512xbf16>, vector<128x512xf32> -> vector<128x512xf32>
    %61 = arith.addf %54, %60 : vector<128x512xf32>
    %62 = vector.shape_cast %61 : vector<128x512xf32> to vector<2x8x8x512xf32>
    %63 = arith.truncf %62 : vector<2x8x8x512xf32> to vector<2x8x8x512xbf16>
    %c0_62 = arith.constant 0 : index
    %c0_63 = arith.constant 0 : index
    %c0_64 = arith.constant 0 : index
    %c0_65 = arith.constant 0 : index
    %64 = vector.load %arg4[%c0_62, %c0_63, %c0_64, %c0_65] : memref<2x8x8x512xbf16, #tpu.memory_space<vmem>>, vector<2x8x8x512xbf16>
    tpu.vector_store %arg4[%c0_62, %c0_63, %c0_64, %c0_65], %63 {strides = array<i32>} : memref<2x8x8x512xbf16, #tpu.memory_space<vmem>>, vector<2x8x8x512xbf16>,
    %cst_66 = arith.constant dense<0.000000e+00> : vector<512xf32>
    %65 = vector.multi_reduction <add>, %61, %cst_66 [0] : vector<128x512xf32> to vector<512xf32>
    %66 = vector.shape_cast %65 : vector<512xf32> to vector<1x512xf32>
    %67 = vector.shape_cast %66 : vector<1x512xf32> to vector<1x1x512xf32>
    %c0_67 = arith.constant 0 : index
    %c0_68 = arith.constant 0 : index
    %c0_69 = arith.constant 0 : index
    %68 = vector.load %arg5[%c0_67, %c0_68, %c0_69] : memref<1x1x512xf32, #tpu.memory_space<vmem>>, vector<1x1x512xf32>
    tpu.vector_store %arg5[%c0_67, %c0_68, %c0_69], %67 {strides = array<i32>} : memref<1x1x512xf32, #tpu.memory_space<vmem>>, vector<1x1x512xf32>,
    %69 = arith.mulf %61, %61 : vector<128x512xf32>
    %cst_70 = arith.constant dense<0.000000e+00> : vector<512xf32>
    %70 = vector.multi_reduction <add>, %69, %cst_70 [0] : vector<128x512xf32> to vector<512xf32>
    %71 = vector.shape_cast %70 : vector<512xf32> to vector<1x512xf32>
    %72 = vector.shape_cast %71 : vector<1x512xf32> to vector<1x1x512xf32>
    %c0_71 = arith.constant 0 : index
    %c0_72 = arith.constant 0 : index
    %c0_73 = arith.constant 0 : index
    %73 = vector.load %arg6[%c0_71, %c0_72, %c0_73] : memref<1x1x512xf32, #tpu.memory_space<vmem>>, vector<1x1x512xf32>
    tpu.vector_store %arg6[%c0_71, %c0_72, %c0_73], %72 {strides = array<i32>} : memref<1x1x512xf32, #tpu.memory_space<vmem>>, vector<1x1x512xf32>,
    return
  }
  func.func @transform_0(%arg0: i32, %arg1: i32) -> (i32, i32, i32, i32) {
    %c0_i32 = arith.constant 0 : i32
    %c0_i32_0 = arith.constant 0 : i32
    %c0_i32_1 = arith.constant 0 : i32
    %c0_i32_2 = arith.constant 0 : i32
    return %arg0, %c0_i32, %c0_i32_0, %c0_i32_1 : i32, i32, i32, i32
  }
  func.func @transform_1(%arg0: i32, %arg1: i32) -> (i32, i32, i32) {
    %c0_i32 = arith.constant 0 : i32
    %c0_i32_0 = arith.constant 0 : i32
    %c0_i32_1 = arith.constant 0 : i32
    return %c0_i32, %c0_i32_0, %arg1 : i32, i32, i32
  }
  func.func @transform_2(%arg0: i32, %arg1: i32) -> (i32, i32, i32, i32) {
    %c0_i32 = arith.constant 0 : i32
    %c0_i32_0 = arith.constant 0 : i32
    %c0_i32_1 = arith.constant 0 : i32
    return %arg0, %c0_i32, %c0_i32_0, %arg1 : i32, i32, i32, i32
  }
  func.func @transform_3(%arg0: i32, %arg1: i32) -> (i32, i32, i32) {
    %c0_i32 = arith.constant 0 : i32
    %c0_i32_0 = arith.constant 0 : i32
    return %arg0, %c0_i32, %arg1 : i32, i32, i32
  }
  func.func @transform_4(%arg0: i32, %arg1: i32) -> (i32, i32, i32) {
    %c0_i32 = arith.constant 0 : i32
    %c0_i32_0 = arith.constant 0 : i32
    return %arg0, %c0_i32, %arg1 : i32, i32, i32
  }
}

</mosaic_0001>

<bundles_post_ra>
// kernel: unet_skip_innermost.2
= control target key start
LH: loop header
LB: loop body
LE: loop exit
PB: predicated region body
PF: predicated region fallthrough
CT: control target
= control target key end

     0   :  { %7 = vsyncpa [#allocation3], 0  ;;  %s1414_s0 = inlined_call_operand.hbm [shape: f32[2,9,9,128], index: 0, kind: input, shape index: {}]   ;;  %s1415_s1 = inlined_call_operand.hbm [shape: bf16[4,128,128], index: 1, kind: input, shape index: {}]   ;;  %s1416_s2 = inlined_call_operand.hbm [shape: f32[2,8,8,128], index: 2, kind: output, shape index: {}]  }
   0x1   :  { %8 = vsyncpa [#allocation6], 0 }
   0x2   :  { %9 = vsyncpa [#allocation4], 0  ;;  %s1250_s9 = smov [#allocation2]   ;;  %s1178_s13 = scalar_lea.hbm %s1414_s0, 4608 }
   0x3   :  { %s15_s10 = sshll.u32 %s1250_s9, 4  ;;  %p1179_p0 = scmp.ne.s32.totalorder %s1414_s0, %s1178_s13  ;;  %s16_s10 = int_to_ptr.vmem [resolvable:$true] %s15_s10 }
   0x4   :  { %p1182_p1 = scmp.lt.u32.totalorder %s1178_s13, %s1414_s0 }
   0x6   :  { %p1184_p2 = pnand %p1182_p1, %p1179_p0 }
   0x8   :  { %1187 = shalt.err (!%p1184_p2)
}
   0x9   :  { %s1188_s18 = scalar_lea.vmem %s16_s10, 4608  ;;  %p1193_p4 = scmp.lt.s32.totalorder %s16_s10, %s16_s10 }
   0xa   :  { %p1189_p3 = scmp.ne.s32.totalorder %s16_s10, %s1188_s18  ;;  %p1194_p5 = scmp.lt.s32.totalorder %s1188_s18, %s1188_s18 }
   0xc   :  { %p1195_p6 = por %p1194_p5, %p1193_p4 }
   0xe   :  { %p1196_p7 = pnand %p1195_p6, %p1189_p3 }
  0x10   :  { %1199 = shalt.err (!%p1196_p7)
}
  0x11   :  { %s1251_s19 = smov 128   ;;  %s1252_s20 = smov 8  }
  0x12   :  { %21 = dma.hbm_to_vmem [thread:$0]  %s1414_s0, 4608, %s16_s10, [#allocation3], %s1251_s19, %s1251_s19, %s1252_s20  }
  0x13   :  { %s1253_s23 = smov [#allocation5]   ;;  %s1200_s27 = scalar_lea.hbm %s1415_s1, 4096 }
  0x14   :  { %s27_s24 = sshll.u32 %s1253_s23, 4  ;;  %p1201_p8 = scmp.ne.s32.totalorder %s1415_s1, %s1200_s27  ;;  %s28_s24 = int_to_ptr.vmem [resolvable:$true] %s27_s24 }
  0x15   :  { %p1204_p9 = scmp.lt.u32.totalorder %s1200_s27, %s1415_s1 }
  0x17   :  { %p1206_p10 = pnand %p1204_p9, %p1201_p8 }
  0x19   :  { %1209 = shalt.err (!%p1206_p10)
}
  0x1a   :  { %s1210_s4 = scalar_lea.vmem %s28_s24, 4096  ;;  %p1215_p12 = scmp.lt.s32.totalorder %s28_s24, %s28_s24 }
  0x1b   :  { %p1211_p11 = scmp.ne.s32.totalorder %s28_s24, %s1210_s4  ;;  %p1216_p13 = scmp.lt.s32.totalorder %s1210_s4, %s1210_s4 }
  0x1d   :  { %p1217_p0 = por %p1216_p13, %p1215_p12 }
  0x1f   :  { %p1218_p1 = pnand %p1217_p0, %p1211_p11 }
  0x21   :  { %1221 = shalt.err (!%p1218_p1)
}
  0x22   :  { %s1254_s0 = smov 64   ;;  %s1255_s5 = smov 4  }
  0x23   :  { %33 = dma.hbm_to_vmem [thread:$0]  %s1415_s1, 4096, %s28_s24, [#allocation6], %s1254_s0, %s1254_s0, %s1255_s5  }
  0x24   :  { %1244 = dma.done.wait [#allocation3], 4608  }
  0x25   :  { %1245 = vsyncadd [#allocation3], 4294962688 }
  0x26   :  { %1246 = dma.done.wait [#allocation6], 4096  }
  0x27   :  { %1247 = vsyncadd [#allocation6], 4294963200  ;;  %v1146_v0 = vld [vmem:[#allocation5 + $0x40] sm:$0xff]   ;;  %v1148_v2 = vld [vmem:[#allocation5 + $0x48] sm:$0xff]   ;;  %s1256_s1 = smov [#allocation7]  }
  0x28   :  { %v1147_v1 = vld [vmem:[#allocation5 + $0x80] sm:$0xff]   ;;  %963 = vmatprep.subr.bf16.mxu1 %v1146_v0  ;;  %v1149_v3 = vld [vmem:[#allocation5 + $0x88] sm:$0xff]   ;;  %v1150_v4 = vld [vmem:[#allocation5 + $0x50] sm:$0xff]   ;;  %s854_s8 = sshll.u32 %s1256_s1, 4  ;;  %s855_s8 = int_to_ptr.vmem [resolvable:$true] %s854_s8 }
  0x29   :  { %1027 = vmatprep.subr.bf16.mxu0 %v1147_v1  ;;  %964 = vmatpush3.bf16.msra.mxu1 %v1146_v0  ;;  %v1151_v5 = vld [vmem:[#allocation5 + $0x90] sm:$0xff]   ;;  %v1152_v6 = vld [vmem:[#allocation5 + $0x58] sm:$0xff]   ;;  %v1154_v8 = vld [vmem:[#allocation5 + $0x60] sm:$0xff]   ;;  %s1222_s9 = scalar_lea.vmem %s855_s8, 2048  ;;  %p1227_p3 = scmp.lt.s32.totalorder %s855_s8, %s855_s8 }
  0x2a   :  { %1028 = vmatpush3.bf16.msra.mxu0 %v1147_v1  ;;  %965 = vmatprep.subr.bf16.mxu1 %v1148_v2  ;;  %v1153_v7 = vld [vmem:[#allocation5 + $0x98] sm:$0xff]   ;;  %v1155_v9 = vld [vmem:[#allocation5 + $0xa0] sm:$0xff]   ;;  %v1156_v10 = vld [vmem:[#allocation5 + $0x68] sm:$0xff]   ;;  %p1223_p2 = scmp.ne.s32.totalorder %s855_s8, %s1222_s9  ;;  %p1228_p4 = scmp.lt.s32.totalorder %s1222_s9, %s1222_s9 }
  0x2b   :  { %1029 = vmatprep.subr.bf16.mxu0 %v1149_v3  ;;  %v81_v11 = vld [vmem:[#allocation2 + $0x1] sm:$0xff]  ;;  %v1299_v12 = vld [vmem:[#allocation2 + $0x11] sm:$0xff] }
  0x2c   :  { %v1301_v13 = vld [vmem:[#allocation2 + $0x10] sm:$0xff]  ;;  %v1157_v14 = vld [vmem:[#allocation5 + $0xa8] sm:$0xff]   ;;  %v97_v15 = vpack.c.bf16 %v1299_v12, %v81_v11  ;;  %v1304_v16 = vld [vmem:[#allocation2 + $0x20] sm:$0xff]  ;;  %p1229_p5 = por %p1228_p4, %p1227_p3 }
  0x2d   :  { %966 = vmatpush3.bf16.msra.mxu1 %v1148_v2  ;;  %v429_v17 = vpack.c.bf16 %v1304_v16, %v1301_v13  ;;  %v1158_v18 = vld [vmem:[#allocation5 + $0x70] sm:$0xff]   ;;  %v1160_v20 = vld [vmem:[#allocation5 + $0x78] sm:$0xff]   ;;  %v1308_v22 = vld [vmem:[#allocation2 + $0x21] sm:$0xff] }
  0x2e   :  { %1030 = vmatpush3.bf16.msra.mxu0 %v1149_v3  ;;  %967 = vmatprep.subr.bf16.mxu1 %v1150_v4  ;;  %v1159_v19 = vld [vmem:[#allocation5 + $0xb0] sm:$0xff]   ;;  %v1161_v21 = vld [vmem:[#allocation5 + $0xb8] sm:$0xff]   ;;  %v1162_v24 = vld [vmem:[#allocation5] sm:$0xff]   ;;  %p1230_p6 = pnand %p1229_p5, %p1223_p2 }
  0x2f   :  { %1031 = vmatprep.subr.bf16.mxu0 %v1151_v5  ;;  %979 = vmatprep.mubr.bf16.mxu1 %v97_v15  ;;  %v1310_v23 = vld [vmem:[#allocation2 + $0x31] sm:$0xff]  ;;  %v1314_v26 = vld [vmem:[#allocation2 + $0x40] sm:$0xff]  ;;  %v1164_v34 = vld [vmem:[#allocation5 + $0x8] sm:$0xff]  }
  0x30   :  { %1043 = vmatprep.mubr.bf16.mxu0 %v429_v17  ;;  %v1312_v25 = vld [vmem:[#allocation2 + $0x30] sm:$0xff]  ;;  %v1163_v27 = vld [vmem:[#allocation5 + $0xc0] sm:$0xff]   ;;  %v98_v28 = vpack.c.bf16 %v1310_v23, %v1308_v22  ;;  %v1165_v35 = vld [vmem:[#allocation5 + $0xc8] sm:$0xff]  }
  0x31   :  { %968 = vmatpush3.bf16.msra.mxu1 %v1150_v4  ;;  %v1318_v29 = vld [vmem:[#allocation2 + $0x41] sm:$0xff]  ;;  %v1320_v30 = vld [vmem:[#allocation2 + $0x51] sm:$0xff]  ;;  %v430_v32 = vpack.c.bf16 %v1314_v26, %v1312_v25 }
  0x32   :  { %1032 = vmatpush3.bf16.msra.mxu0 %v1151_v5  ;;  %969 = vmatprep.subr.bf16.mxu1 %v1152_v6  ;;  %v1322_v31 = vld [vmem:[#allocation2 + $0x50] sm:$0xff]  ;;  %v1326_v33 = vld [vmem:[#allocation2 + $0x60] sm:$0xff]  ;;  %v99_v36 = vpack.c.bf16 %v1320_v30, %v1318_v29  ;;  %v1168_v50 = vld [vmem:[#allocation5 + $0x18] sm:$0xff]  }
  0x33   :  { %1033 = vmatprep.subr.bf16.mxu0 %v1153_v7  ;;  %v431_v37 = vpack.c.bf16 %v1326_v33, %v1322_v31  ;;  %v1332_v38 = vld [vmem:[#allocation2 + $0x61] sm:$0xff]  ;;  %v1334_v39 = vld [vmem:[#allocation2 + $0x71] sm:$0xff] }
  0x34   :  { %v1166_v40 = vld [vmem:[#allocation5 + $0x10] sm:$0xff]   ;;  %v420_v42 = vld [vmem:[#allocation2 + $0x80] sm:$0xff]  ;;  %v100_v45 = vpack.c.bf16 %v1334_v39, %v1332_v38  ;;  %v1169_v51 = vld [vmem:[#allocation5 + $0xd8] sm:$0xff]  }
  0x35   :  { %970 = vmatpush3.bf16.msra.mxu1 %v1152_v6  ;;  %v1336_v41 = vld [vmem:[#allocation2 + $0x70] sm:$0xff]  ;;  %v1340_v46 = vld [vmem:[#allocation2 + $0xa1] sm:$0xff] }
  0x36   :  { %1034 = vmatpush3.bf16.msra.mxu0 %v1153_v7  ;;  %971 = vmatprep.subr.bf16.mxu1 %v1154_v8  ;;  %v1167_v43 = vld [vmem:[#allocation5 + $0xd0] sm:$0xff]   ;;  %v432_v47 = vpack.c.bf16 %v420_v42, %v1336_v41  ;;  %v1343_v48 = vld [vmem:[#allocation2 + $0xa0] sm:$0xff]  ;;  %v1172_v2 = vld [vmem:[#allocation5 + $0x28] sm:$0xff]  }
  0x37   :  { %1035 = vmatprep.subr.bf16.mxu0 %v1155_v9  ;;  %v89_v44 = vld [vmem:[#allocation2 + $0x91] sm:$0xff]  ;;  %v1352_v55 = vld [vmem:[#allocation2 + $0xc1] sm:$0xff] }
  0x38   :  { %v1345_v49 = vld [vmem:[#allocation2 + $0xb0] sm:$0xff]  ;;  %v101_v52 = vpack.c.bf16 %v1340_v46, %v89_v44  ;;  %v1170_v56 = vld [vmem:[#allocation5 + $0x20] sm:$0xff]   ;;  %v1173_v3 = vld [vmem:[#allocation5 + $0xe8] sm:$0xff]  }
  0x39   :  { %972 = vmatpush3.bf16.msra.mxu1 %v1154_v8  ;;  %v433_v53 = vpack.c.bf16 %v1345_v49, %v1343_v48  ;;  %v1350_v54 = vld [vmem:[#allocation2 + $0xb1] sm:$0xff]  ;;  %v1354_v57 = vld [vmem:[#allocation2 + $0xc0] sm:$0xff] }
  0x3a   :  { %1036 = vmatpush3.bf16.msra.mxu0 %v1155_v9  ;;  %973 = vmatprep.subr.bf16.mxu1 %v1156_v10  ;;  %v1356_v58 = vld [vmem:[#allocation2 + $0xd0] sm:$0xff]  ;;  %v1171_v59 = vld [vmem:[#allocation5 + $0xe0] sm:$0xff]   ;;  %v102_v60 = vpack.c.bf16 %v1352_v55, %v1350_v54 }
  0x3b   :  { %1037 = vmatprep.subr.bf16.mxu0 %v1157_v14  ;;  %v1360_v61 = vld [vmem:[#allocation2 + $0xd1] sm:$0xff]  ;;  %v1362_v62 = vld [vmem:[#allocation2 + $0xe1] sm:$0xff]  ;;  %v434_v63 = vpack.c.bf16 %v1356_v58, %v1354_v57 }
  0x3c   :  { %v1366_v0 = vld [vmem:[#allocation2 + $0xe0] sm:$0xff]  ;;  %v1368_v1 = vld [vmem:[#allocation2 + $0xf0] sm:$0xff]  ;;  %v103_v4 = vpack.c.bf16 %v1362_v62, %v1360_v61 }
  0x3d   :  { %974 = vmatpush3.bf16.msra.mxu1 %v1156_v10  ;;  %v435_v5 = vpack.c.bf16 %v1368_v1, %v1366_v0  ;;  %v95_v6 = vld [vmem:[#allocation2 + $0xf1] sm:$0xff]  ;;  %v96_v7 = vld [vmem:[#allocation2 + $0x101] sm:$0xff] }
  0x3e   :  { %1038 = vmatpush3.bf16.msra.mxu0 %v1157_v14  ;;  %975 = vmatprep.subr.bf16.mxu1 %v1158_v18  ;;  %v1174_v8 = vld [vmem:[#allocation5 + $0x30] sm:$0xff]   ;;  %v427_v9 = vld [vmem:[#allocation2 + $0x100] sm:$0xff]  ;;  %v104_v14 = vpack.c.bf16 %v96_v7, %v95_v6 }
  0x3f   :  { %1039 = vmatprep.subr.bf16.mxu0 %v1159_v19  ;;  %v428_v10 = vld [vmem:[#allocation2 + $0x110] sm:$0xff]  ;;  %v41_v15 = vld [vmem:[#allocation2] sm:$0xff] }
  0x40   :  { %v1175_v11 = vld [vmem:[#allocation5 + $0xf0] sm:$0xff]   ;;  %v436_v17 = vpack.c.bf16 %v428_v10, %v427_v9 }
  0x41   :  { %976 = vmatpush3.bf16.msra.mxu1 %v1158_v18  ;;  %v1176_v18 = vld [vmem:[#allocation5 + $0x38] sm:$0xff]  }
  0x42   :  { %1040 = vmatpush3.bf16.msra.mxu0 %v1159_v19  ;;  %977 = vmatprep.subr.bf16.mxu1 %v1160_v20  ;;  %v1177_v19 = vld [vmem:[#allocation5 + $0xf8] sm:$0xff]  }
  0x43   :  { %1041 = vmatprep.subr.bf16.mxu0 %v1161_v21 }
  0x45   :  { %978 = vmatpush3.bf16.msra.mxu1 %v1160_v20  ;;  %v57_v20 = vpack.c.bf16 %v1301_v13, %v41_v15  ;;  %v59_v13 = vpack.c.bf16 %v1322_v31, %v1314_v26  ;;  %v635_v26 = vpack.c.bf16 %v1350_v54, %v1340_v46  ;;  %v63_v31 = vpack.c.bf16 %v1366_v0, %v1356_v58 }
  0x46   :  { %1042 = vmatpush3.bf16.msra.mxu0 %v1161_v21  ;;  %995 = vmatprep.subr.bf16.mxu1 %v1162_v24  ;;  %v631_v21 = vpack.c.bf16 %v1308_v22, %v1299_v12  ;;  %v633_v12 = vpack.c.bf16 %v1332_v38, %v1320_v30  ;;  %v622_v22 = vld [vmem:[#allocation2 + $0x81] sm:$0xff]  ;;  %v636_v30 = vpack.c.bf16 %v1360_v61, %v1352_v55 }
  0x47   :  { %1059 = vmatprep.subr.bf16.mxu0 %v1163_v27 }
  0x48   :  { %980 = vmatmul.mubr.bf16.vlgmr.msra.gmra.mrb[0].mxu1 %v98_v28  ;;  %v49_v28 = vld [vmem:[#allocation2 + $0x90] sm:$0xff] }
  0x49   :  { %1044 = vmatmul.mubr.bf16.vlgmr.msra.gmra.mrb[0].mxu0 %v430_v32  ;;  %996 = vmatpush3.bf16.msra.mxu1 %v1162_v24  ;;  %v58_v24 = vpack.c.bf16 %v1312_v25, %v1304_v16  ;;  %v60_v16 = vpack.c.bf16 %v1336_v41, %v1326_v33  ;;  %v634_v25 = vpack.c.bf16 %v622_v22, %v1334_v39  ;;  %v630_v33 = vld [vmem:[#allocation2 + $0x111] sm:$0xff] }
  0x4a   :  { %1060 = vmatpush3.bf16.msra.mxu0 %v1163_v27  ;;  %997 = vmatprep.subr.bf16.mxu1 %v1164_v34  ;;  %v632_v27 = vpack.c.bf16 %v1318_v29, %v1310_v23  ;;  %v61_v23 = vpack.c.bf16 %v1343_v48, %v49_v28  ;;  %v62_v29 = vpack.c.bf16 %v1354_v57, %v1345_v49 }
  0x4b   :  { %1061 = vmatprep.subr.bf16.mxu0 %v1165_v35  ;;  %983 = vmatprep.mubr.bf16.mxu1 %v99_v36  ;;  %v637_v32 = vpack.c.bf16 %v95_v6, %v1362_v62 }
  0x4c   :  { %1047 = vmatprep.mubr.bf16.mxu0 %v431_v37 }
  0x4d   :  { %998 = vmatpush3.bf16.msra.mxu1 %v1164_v34  ;;  %v64_v34 = vpack.c.bf16 %v427_v9, %v1368_v1 }
  0x4e   :  { %1062 = vmatpush3.bf16.msra.mxu0 %v1165_v35  ;;  %999 = vmatprep.subr.bf16.mxu1 %v1166_v40  ;;  %v638_v35 = vpack.c.bf16 %v630_v33, %v96_v7 }
  0x4f   :  { %1063 = vmatprep.subr.bf16.mxu0 %v1167_v43 }
  0x50   :  { %984 = vmatmul.mubr.bf16.gmra.mrb[4].mxu1 %v100_v45 }
  0x51   :  { %1048 = vmatmul.mubr.bf16.gmra.mrb[4].mxu0 %v432_v47  ;;  %1000 = vmatpush3.bf16.msra.mxu1 %v1166_v40 }
  0x52   :  { %1064 = vmatpush3.bf16.msra.mxu0 %v1167_v43  ;;  %1001 = vmatprep.subr.bf16.mxu1 %v1168_v50 }
  0x53   :  { %1065 = vmatprep.subr.bf16.mxu0 %v1169_v51  ;;  %987 = vmatprep.mubr.bf16.mxu1 %v101_v52 }
  0x54   :  { %1051 = vmatprep.mubr.bf16.mxu0 %v433_v53 }
  0x55   :  { %1002 = vmatpush3.bf16.msra.mxu1 %v1168_v50 }
  0x56   :  { %1066 = vmatpush3.bf16.msra.mxu0 %v1169_v51  ;;  %1003 = vmatprep.subr.bf16.mxu1 %v1170_v56 }
  0x57   :  { %1067 = vmatprep.subr.bf16.mxu0 %v1171_v59 }
  0x58   :  { %988 = vmatmul.mubr.bf16.gmra.mrb[8].mxu1 %v102_v60 }
  0x59   :  { %1052 = vmatmul.mubr.bf16.gmra.mrb[8].mxu0 %v434_v63  ;;  %1004 = vmatpush3.bf16.msra.mxu1 %v1170_v56 }
  0x5a   :  { %1068 = vmatpush3.bf16.msra.mxu0 %v1171_v59  ;;  %1005 = vmatprep.subr.bf16.mxu1 %v1172_v2 }
  0x5b   :  { %1069 = vmatprep.subr.bf16.mxu0 %v1173_v3  ;;  %991 = vmatprep.mubr.bf16.mxu1 %v103_v4 }
  0x5c   :  { %1055 = vmatprep.mubr.bf16.mxu0 %v435_v5 }
  0x5d   :  { %1006 = vmatpush3.bf16.msra.mxu1 %v1172_v2 }
  0x5e   :  { %1070 = vmatpush3.bf16.msra.mxu0 %v1173_v3  ;;  %1007 = vmatprep.subr.bf16.mxu1 %v1174_v8 }
  0x5f   :  { %1071 = vmatprep.subr.bf16.mxu0 %v1175_v11 }
  0x60   :  { %992 = vmatmul.mubr.bf16.gmra.mrb[12].mxu1 %v104_v14 }
  0x61   :  { %1056 = vmatmul.mubr.bf16.gmra.mrb[12].mxu0 %v436_v17  ;;  %1008 = vmatpush3.bf16.msra.mxu1 %v1174_v8 }
  0x62   :  { %1072 = vmatpush3.bf16.msra.mxu0 %v1175_v11  ;;  %1009 = vmatprep.subr.bf16.mxu1 %v1176_v18 }
  0x63   :  { %1073 = vmatprep.subr.bf16.mxu0 %v1177_v19  ;;  %1011 = vmatprep.mubr.bf16.mxu1 %v57_v20 }
  0x64   :  { %1075 = vmatprep.mubr.bf16.mxu0 %v631_v21 }
  0x65   :  { %1010 = vmatpush3.bf16.msra.mxu1 %v1176_v18 }
  0x66   :  { %1074 = vmatpush3.bf16.msra.mxu0 %v1177_v19 }
  0x68   :  { %1012 = vmatmul.mubr.bf16.vlgmr.msra.gmra.mrb[0].mxu1 %v58_v24 }
  0x69   :  { %1076 = vmatmul.mubr.bf16.vlgmr.msra.gmra.mrb[0].mxu0 %v632_v27  ;;  %1015 = vmatprep.mubr.bf16.mxu1 %v59_v13 }
  0x6a   :  { %1079 = vmatprep.mubr.bf16.mxu0 %v633_v12 }
  0x70   :  { %1016 = vmatmul.mubr.bf16.gmra.mrb[4].mxu1 %v60_v16 }
  0x71   :  { %1080 = vmatmul.mubr.bf16.gmra.mrb[4].mxu0 %v634_v25  ;;  %1019 = vmatprep.mubr.bf16.mxu1 %v61_v23 }
  0x72   :  { %1083 = vmatprep.mubr.bf16.mxu0 %v635_v26 }
  0x78   :  { %1020 = vmatmul.mubr.bf16.gmra.mrb[8].mxu1 %v62_v29 }
  0x79   :  { %1084 = vmatmul.mubr.bf16.gmra.mrb[8].mxu0 %v636_v30  ;;  %1023 = vmatprep.mubr.bf16.mxu1 %v63_v31 }
  0x7a   :  { %1087 = vmatprep.mubr.bf16.mxu0 %v637_v32 }
  0x80   :  { %1024 = vmatmul.mubr.bf16.gmra.mrb[12].mxu1 %v64_v34 }
  0x81   :  { %1088 = vmatmul.mubr.bf16.gmra.mrb[12].mxu0 %v638_v35 }
 0x13b   :  { %v1013_v36 = vpop.f32.mrb[0].mxu1 }
 0x13c   :  { %v1077_v37 = vpop.f32.mrb[0].mxu0  ;;  %v349_v38 = vpop.f32.mrb[1].mxu1 }
 0x13d   :  { %v1091_v39 = vadd.f32 %v1077_v37, %v1013_v36  ;;  %v738_v40 = vpop.f32.mrb[1].mxu0  ;;  %v1014_v41 = vpop.f32.mrb[2].mxu1 }
 0x13e   :  { %v1092_v42 = vadd.f32 %v738_v40, %v349_v38  ;;  %v1078_v43 = vpop.f32.mrb[2].mxu0  ;;  %v352_v44 = vpop.f32.mrb[3].mxu1 }
 0x13f   :  { %v819_v45 = vmax.f32 %v1091_v39, 0.0  ;;  %v1093_v46 = vadd.f32 %v1078_v43, %v1014_v41  ;;  %v741_v47 = vpop.f32.mrb[3].mxu0 }
 0x140   :  { %v817_v48 = vmax.f32 %v1092_v42, 0.0  ;;  %v1094_v49 = vadd.f32 %v741_v47, %v352_v44 }
 0x141   :  { %835 = vst [vmem:[#allocation7 + $0x10] sm:$0xff] %v819_v45  ;;  %v820_v50 = vmax.f32 %v1093_v46, 0.0 }
 0x142   :  { %833 = vst [vmem:[#allocation7] sm:$0xff] %v817_v48  ;;  %v818_v51 = vmax.f32 %v1094_v49, 0.0 }
 0x143   :  { %836 = vst [vmem:[#allocation7 + $0x18] sm:$0xff] %v820_v50  ;;  %v1017_v52 = vpop.f32.mrb[4].mxu1 }
 0x144   :  { %834 = vst [vmem:[#allocation7 + $0x8] sm:$0xff] %v818_v51  ;;  %v1081_v53 = vpop.f32.mrb[4].mxu0  ;;  %v365_v54 = vpop.f32.mrb[5].mxu1 }
 0x145   :  { %v1095_v55 = vadd.f32 %v1081_v53, %v1017_v52  ;;  %v754_v56 = vpop.f32.mrb[5].mxu0  ;;  %v1018_v57 = vpop.f32.mrb[6].mxu1 }
 0x146   :  { %v1096_v58 = vadd.f32 %v754_v56, %v365_v54  ;;  %v1082_v59 = vpop.f32.mrb[6].mxu0  ;;  %v368_v60 = vpop.f32.mrb[7].mxu1 }
 0x147   :  { %v823_v61 = vmax.f32 %v1095_v55, 0.0  ;;  %v1097_v62 = vadd.f32 %v1082_v59, %v1018_v57  ;;  %v757_v63 = vpop.f32.mrb[7].mxu0 }
 0x148   :  { %v821_v0 = vmax.f32 %v1096_v58, 0.0  ;;  %v1098_v1 = vadd.f32 %v757_v63, %v368_v60 }
 0x149   :  { %839 = vst [vmem:[#allocation7 + $0x30] sm:$0xff] %v823_v61  ;;  %v824_v2 = vmax.f32 %v1097_v62, 0.0 }
 0x14a   :  { %837 = vst [vmem:[#allocation7 + $0x20] sm:$0xff] %v821_v0  ;;  %v822_v3 = vmax.f32 %v1098_v1, 0.0 }
 0x14b   :  { %840 = vst [vmem:[#allocation7 + $0x38] sm:$0xff] %v824_v2  ;;  %v1021_v4 = vpop.f32.mrb[8].mxu1 }
 0x14c   :  { %838 = vst [vmem:[#allocation7 + $0x28] sm:$0xff] %v822_v3  ;;  %v1085_v5 = vpop.f32.mrb[8].mxu0  ;;  %v381_v6 = vpop.f32.mrb[9].mxu1 }
 0x14d   :  { %v1099_v7 = vadd.f32 %v1085_v5, %v1021_v4  ;;  %v770_v8 = vpop.f32.mrb[9].mxu0  ;;  %v1022_v9 = vpop.f32.mrb[10].mxu1 }
 0x14e   :  { %v1100_v10 = vadd.f32 %v770_v8, %v381_v6  ;;  %v1086_v11 = vpop.f32.mrb[10].mxu0  ;;  %v384_v14 = vpop.f32.mrb[11].mxu1 }
 0x14f   :  { %v827_v15 = vmax.f32 %v1099_v7, 0.0  ;;  %v1101_v17 = vadd.f32 %v1086_v11, %v1022_v9  ;;  %v773_v18 = vpop.f32.mrb[11].mxu0 }
 0x150   :  { %v825_v19 = vmax.f32 %v1100_v10, 0.0  ;;  %v1102_v20 = vadd.f32 %v773_v18, %v384_v14 }
 0x151   :  { %843 = vst [vmem:[#allocation7 + $0x50] sm:$0xff] %v827_v15  ;;  %v828_v21 = vmax.f32 %v1101_v17, 0.0 }
 0x152   :  { %841 = vst [vmem:[#allocation7 + $0x40] sm:$0xff] %v825_v19  ;;  %v826_v24 = vmax.f32 %v1102_v20, 0.0 }
 0x153   :  { %844 = vst [vmem:[#allocation7 + $0x58] sm:$0xff] %v828_v21  ;;  %v1025_v27 = vpop.f32.mrb[12].mxu1 }
 0x154   :  { %842 = vst [vmem:[#allocation7 + $0x48] sm:$0xff] %v826_v24  ;;  %v1089_v13 = vpop.f32.mrb[12].mxu0  ;;  %v397_v12 = vpop.f32.mrb[13].mxu1 }
 0x155   :  { %v1103_v22 = vadd.f32 %v1089_v13, %v1025_v27  ;;  %v786_v28 = vpop.f32.mrb[13].mxu0  ;;  %v1026_v16 = vpop.f32.mrb[14].mxu1 }
 0x156   :  { %v1104_v25 = vadd.f32 %v786_v28, %v397_v12  ;;  %v1090_v23 = vpop.f32.mrb[14].mxu0  ;;  %v400_v26 = vpop.f32.mrb[15].mxu1 }
 0x157   :  { %v831_v29 = vmax.f32 %v1103_v22, 0.0  ;;  %v1105_v30 = vadd.f32 %v1090_v23, %v1026_v16  ;;  %v789_v31 = vpop.f32.mrb[15].mxu0 }
 0x158   :  { %v829_v32 = vmax.f32 %v1104_v25, 0.0  ;;  %v1106_v33 = vadd.f32 %v789_v31, %v400_v26 }
 0x159   :  { %847 = vst [vmem:[#allocation7 + $0x70] sm:$0xff] %v831_v29  ;;  %v832_v34 = vmax.f32 %v1105_v30, 0.0 }
 0x15a   :  { %845 = vst [vmem:[#allocation7 + $0x60] sm:$0xff] %v829_v32  ;;  %v830_v35 = vmax.f32 %v1106_v33, 0.0 }
 0x15b   :  { %848 = vst [vmem:[#allocation7 + $0x78] sm:$0xff] %v832_v34 }
 0x15c   :  { %846 = vst [vmem:[#allocation7 + $0x68] sm:$0xff] %v830_v35 }
 0x15d   :  { %1233 = shalt.err (!%p1230_p6)
}
 0x15e   :  { %s1234_s12 = scalar_lea.hbm %s1416_s2, 2048 }
 0x15f   :  { %p1235_p7 = scmp.ne.s32.totalorder %s1416_s2, %s1234_s12  ;;  %p1238_p8 = scmp.lt.u32.totalorder %s1234_s12, %s1416_s2 }
 0x161   :  { %p1240_p9 = pnand %p1238_p8, %p1235_p7 }
 0x163   :  { %1243 = shalt.err (!%p1240_p9)
}
 0x164   :  { %860 = dma.vmem_to_hbm [thread:$0]  %s855_s8, 2048, %s1416_s2, [#allocation4], %s1251_s19, %s1251_s19, %s1252_s20  }
 0x165   :  { %1248 = dma.done.wait [#allocation4], 2048  }
 0x166   :  { %1249 = vsyncadd [#allocation4], 4294965248 }
 0x167   :  { %864 = vsyncpa [#allocation3], 1 }
 0x168   :  { %865 = vsyncpa [#allocation6], 1 }
 0x169   :  { %866 = vsyncpa [#allocation4], 1 }

// kernel: unet_skip_innermost.3
= control target key start
LH: loop header
LB: loop body
LE: loop exit
PB: predicated region body
PF: predicated region fallthrough
CT: control target
= control target key end

     0   :  { %10 = vsyncpa [#allocation3], 0  ;;  %s6974_s0 = inlined_call_operand.hbm [shape: f32[2,10,10,128], index: 0, kind: input, shape index: {}]   ;;  %s6975_s1 = inlined_call_operand.hbm [shape: bf16[9,128,512], index: 1, kind: input, shape index: {}]   ;;  %s6976_s2 = inlined_call_operand.hbm [shape: bf16[2,8,8,512], index: 2, kind: output, shape index: {0}]   ;;  %s6977_s3 = inlined_call_operand.hbm [shape: f32[1,1,512], index: 3, kind: output, shape index: {1}]   ;;  %s6978_s4 = inlined_call_operand.hbm [shape: f32[1,1,512], index: 4, kind: output, shape index: {2}]  }
   0x1   :  { %11 = vsyncpa [#allocation6], 0 }
   0x2   :  { %12 = vsyncpa [#allocation4], 0 }
   0x3   :  { %13 = vsyncpa [#allocation9], 0  ;;  %s6535_s15 = smov [#allocation2]   ;;  %s6417_s19 = scalar_lea.hbm %s6974_s0, 5120 }
   0x4   :  { %s19_s16 = sshll.u32 %s6535_s15, 4  ;;  %p6418_p0 = scmp.ne.s32.totalorder %s6974_s0, %s6417_s19  ;;  %s20_s16 = int_to_ptr.vmem [resolvable:$true] %s19_s16 }
   0x5   :  { %p6421_p1 = scmp.lt.u32.totalorder %s6417_s19, %s6974_s0 }
   0x7   :  { %p6423_p2 = pnand %p6421_p1, %p6418_p0 }
   0x9   :  { %6426 = shalt.err (!%p6423_p2)
}
   0xa   :  { %s6427_s24 = scalar_lea.vmem %s20_s16, 5120  ;;  %p6432_p4 = scmp.lt.s32.totalorder %s20_s16, %s20_s16 }
   0xb   :  { %p6428_p3 = scmp.ne.s32.totalorder %s20_s16, %s6427_s24  ;;  %p6433_p5 = scmp.lt.s32.totalorder %s6427_s24, %s6427_s24 }
   0xd   :  { %p6434_p6 = por %p6433_p5, %p6432_p4 }
   0xf   :  { %p6435_p7 = pnand %p6434_p6, %p6428_p3 }
  0x11   :  { %6438 = shalt.err (!%p6435_p7)
}
  0x12   :  { %s6536_s25 = smov 128   ;;  %s6537_s26 = smov 8  }
  0x13   :  { %25 = dma.hbm_to_vmem [thread:$0]  %s6974_s0, 5120, %s20_s16, [#allocation3], %s6536_s25, %s6536_s25, %s6537_s26  }
  0x14   :  { %s6538_s29 = smov [#allocation5]   ;;  %s6439_s7 = scalar_lea.hbm %s6975_s1, 36864 }
  0x15   :  { %s31_s30 = sshll.u32 %s6538_s29, 4  ;;  %p6440_p8 = scmp.ne.s32.totalorder %s6975_s1, %s6439_s7  ;;  %s32_s30 = int_to_ptr.vmem [resolvable:$true] %s31_s30 }
  0x16   :  { %p6443_p9 = scmp.lt.u32.totalorder %s6439_s7, %s6975_s1 }
  0x18   :  { %p6445_p10 = pnand %p6443_p9, %p6440_p8 }
  0x1a   :  { %6448 = shalt.err (!%p6445_p10)
}
  0x1b   :  { %s6449_s12 = scalar_lea.vmem %s32_s30, 36864  ;;  %p6454_p12 = scmp.lt.s32.totalorder %s32_s30, %s32_s30 }
  0x1c   :  { %p6450_p11 = scmp.ne.s32.totalorder %s32_s30, %s6449_s12  ;;  %p6455_p13 = scmp.lt.s32.totalorder %s6449_s12, %s6449_s12 }
  0x1e   :  { %p6456_p0 = por %p6455_p13, %p6454_p12 }
  0x20   :  { %p6457_p1 = pnand %p6456_p0, %p6450_p11 }
  0x22   :  { %6460 = shalt.err (!%p6457_p1)
}
  0x23   :  { %s6539_s0 = smov 256   ;;  %s6540_s13 = smov 16  }
  0x24   :  { %37 = dma.hbm_to_vmem [thread:$0]  %s6975_s1, 36864, %s32_s30, [#allocation6], %s6539_s0, %s6539_s0, %s6540_s13  }
  0x25   :  { %6527 = dma.done.wait [#allocation3], 5120  }
  0x26   :  { %6528 = vsyncadd [#allocation3], 4294962176 }
  0x27   :  { %6529 = dma.done.wait [#allocation6], 36864  }
  0x28   :  { %6530 = vsyncadd [#allocation6], 4294930432  ;;  %v6541_v0 = vmov 0   ;;  %v5985_v1 = vld [vmem:[#allocation5 + $0x104] ss:$16 sps:$4 sm:$0xff]   ;;  %s6543_s1 = smov [#allocation7]  }
  0x29   :  { %350 = vmatprep.mubr.bf16.mxu0 %v6541_v0  ;;  %463 = vmatprep.mubr.bf16.mxu1 %v6541_v0  ;;  %v5987_v2 = vld [vmem:[#allocation5 + $0x10c] ss:$16 sps:$4 sm:$0xff]   ;;  %v5989_v3 = vld [vmem:[#allocation5 + $0x100] ss:$16 sps:$4 sm:$0xff]   ;;  %v5990_v4 = vld [vmem:[#allocation5 + $0x108] ss:$16 sps:$4 sm:$0xff]  }
  0x2a   :  { %318 = vmatprep.subr.bf16.mxu0 %v5985_v1  ;;  %431 = vmatprep.subr.bf16.mxu1 %v5987_v2  ;;  %v5991_v5 = vld [vmem:[#allocation5 + $0x124] ss:$16 sps:$4 sm:$0xff]   ;;  %v5993_v6 = vld [vmem:[#allocation5 + $0x12c] ss:$16 sps:$4 sm:$0xff]   ;;  %v5995_v7 = vld [vmem:[#allocation5 + $0x120] ss:$16 sps:$4 sm:$0xff]  }
  0x2b   :  { %319 = vmatpush1.bf16.msra.mxu0 %v5989_v3  ;;  %432 = vmatpush1.bf16.msra.mxu1 %v5990_v4  ;;  %v5996_v8 = vld [vmem:[#allocation5 + $0x128] ss:$16 sps:$4 sm:$0xff]   ;;  %v5997_v9 = vld [vmem:[#allocation5 + $0x144] ss:$16 sps:$4 sm:$0xff]   ;;  %v5999_v10 = vld [vmem:[#allocation5 + $0x14c] ss:$16 sps:$4 sm:$0xff]  }
  0x2c   :  { %320 = vmatprep.subr.bf16.mxu0 %v5991_v5  ;;  %433 = vmatprep.subr.bf16.mxu1 %v5993_v6  ;;  %v6001_v11 = vld [vmem:[#allocation5 + $0x140] ss:$16 sps:$4 sm:$0xff]   ;;  %v6002_v12 = vld [vmem:[#allocation5 + $0x148] ss:$16 sps:$4 sm:$0xff]   ;;  %v6003_v13 = vld [vmem:[#allocation5 + $0x164] ss:$16 sps:$4 sm:$0xff]  }
  0x2d   :  { %v6005_v14 = vld [vmem:[#allocation5 + $0x16c] ss:$16 sps:$4 sm:$0xff]   ;;  %v6007_v15 = vld [vmem:[#allocation5 + $0x160] ss:$16 sps:$4 sm:$0xff]   ;;  %v6008_v16 = vld [vmem:[#allocation5 + $0x168] ss:$16 sps:$4 sm:$0xff]  }
  0x2e   :  { %v6009_v17 = vld [vmem:[#allocation5 + $0x184] ss:$16 sps:$4 sm:$0xff]   ;;  %v6011_v18 = vld [vmem:[#allocation5 + $0x18c] ss:$16 sps:$4 sm:$0xff]   ;;  %v6013_v19 = vld [vmem:[#allocation5 + $0x180] ss:$16 sps:$4 sm:$0xff]  }
  0x2f   :  { %321 = vmatpush1.bf16.msra.mxu0 %v5995_v7  ;;  %434 = vmatpush1.bf16.msra.mxu1 %v5996_v8  ;;  %v6014_v20 = vld [vmem:[#allocation5 + $0x188] ss:$16 sps:$4 sm:$0xff]   ;;  %v6015_v21 = vld [vmem:[#allocation5 + $0x1a4] ss:$16 sps:$4 sm:$0xff]   ;;  %v6017_v22 = vld [vmem:[#allocation5 + $0x1ac] ss:$16 sps:$4 sm:$0xff]  }
  0x30   :  { %322 = vmatprep.subr.bf16.mxu0 %v5997_v9  ;;  %435 = vmatprep.subr.bf16.mxu1 %v5999_v10  ;;  %v6019_v23 = vld [vmem:[#allocation5 + $0x1a0] ss:$16 sps:$4 sm:$0xff]   ;;  %v6020_v24 = vld [vmem:[#allocation5 + $0x1a8] ss:$16 sps:$4 sm:$0xff]   ;;  %v6021_v25 = vld [vmem:[#allocation5 + $0x1c4] ss:$16 sps:$4 sm:$0xff]  }
  0x31   :  { %v6023_v26 = vld [vmem:[#allocation5 + $0x1cc] ss:$16 sps:$4 sm:$0xff]   ;;  %v6025_v27 = vld [vmem:[#allocation5 + $0x1c0] ss:$16 sps:$4 sm:$0xff]   ;;  %v6026_v28 = vld [vmem:[#allocation5 + $0x1c8] ss:$16 sps:$4 sm:$0xff]  }
  0x32   :  { %v6027_v29 = vld [vmem:[#allocation5 + $0x1e4] ss:$16 sps:$4 sm:$0xff]   ;;  %v6029_v30 = vld [vmem:[#allocation5 + $0x1ec] ss:$16 sps:$4 sm:$0xff]   ;;  %v6031_v31 = vld [vmem:[#allocation5 + $0x1e0] ss:$16 sps:$4 sm:$0xff]  }
  0x33   :  { %323 = vmatpush1.bf16.msra.mxu0 %v6001_v11  ;;  %436 = vmatpush1.bf16.msra.mxu1 %v6002_v12  ;;  %v6032_v32 = vld [vmem:[#allocation5 + $0x1e8] ss:$16 sps:$4 sm:$0xff]   ;;  %v6035_v35 = vld [vmem:[#allocation5 + $0x4] ss:$16 sps:$4 sm:$0xff]   ;;  %v6038_v36 = vld [vmem:[#allocation5 + $0xc] ss:$16 sps:$4 sm:$0xff]  }
  0x34   :  { %324 = vmatprep.subr.bf16.mxu0 %v6003_v13  ;;  %437 = vmatprep.subr.bf16.mxu1 %v6005_v14  ;;  %v101_v33 = vld [vmem:[#allocation2 + $0x1] sm:$0xff]  ;;  %v102_v34 = vld [vmem:[#allocation2 + $0x11] sm:$0xff]  ;;  %v6044_v42 = vld [vmem:[#allocation5 + $0x2c] ss:$16 sps:$4 sm:$0xff]   ;;  %s5070_s16 = sshll.u32 %s6543_s1, 4  ;;  %s6916_s16 = int_to_ptr.vmem [resolvable:$true] %s5070_s16 }
  0x35   :  { %v117_v37 = vpack.c.bf16 %v102_v34, %v101_v33  ;;  %v6033_v38 = vld [vmem:[#allocation5] ss:$16 sps:$4 sm:$0xff]   ;;  %v6036_v39 = vld [vmem:[#allocation5 + $0x8] ss:$16 sps:$4 sm:$0xff]   ;;  %v6041_v41 = vld [vmem:[#allocation5 + $0x24] ss:$16 sps:$4 sm:$0xff]   ;;  %p6466_p3 = scmp.lt.s32.totalorder %s6916_s16, %s6916_s16 }
  0x36   :  { %v103_v40 = vld [vmem:[#allocation2 + $0x21] sm:$0xff]  ;;  %v104_v43 = vld [vmem:[#allocation2 + $0x31] sm:$0xff]  ;;  %v6050_v47 = vld [vmem:[#allocation5 + $0x4c] ss:$16 sps:$4 sm:$0xff]   ;;  %s6461_s17 = scalar_lea.vmem %s6916_s16, 4096 }
  0x37   :  { %325 = vmatpush1.bf16.msra.mxu0 %v6007_v15  ;;  %438 = vmatpush1.bf16.msra.mxu1 %v6008_v16  ;;  %v6039_v44 = vld [vmem:[#allocation5 + $0x20] ss:$16 sps:$4 sm:$0xff]   ;;  %v6042_v45 = vld [vmem:[#allocation5 + $0x28] ss:$16 sps:$4 sm:$0xff]   ;;  %v6047_v46 = vld [vmem:[#allocation5 + $0x44] ss:$16 sps:$4 sm:$0xff]   ;;  %v118_v48 = vpack.c.bf16 %v104_v43, %v103_v40  ;;  %p6462_p2 = scmp.ne.s32.totalorder %s6916_s16, %s6461_s17  ;;  %p6467_p4 = scmp.lt.s32.totalorder %s6461_s17, %s6461_s17 }
  0x38   :  { %326 = vmatprep.subr.bf16.mxu0 %v6009_v17  ;;  %439 = vmatprep.subr.bf16.mxu1 %v6011_v18  ;;  %v6045_v49 = vld [vmem:[#allocation5 + $0x40] ss:$16 sps:$4 sm:$0xff]   ;;  %v6048_v50 = vld [vmem:[#allocation5 + $0x48] ss:$16 sps:$4 sm:$0xff]   ;;  %v6053_v51 = vld [vmem:[#allocation5 + $0x64] ss:$16 sps:$4 sm:$0xff]  }
  0x39   :  { %v6056_v52 = vld [vmem:[#allocation5 + $0x6c] ss:$16 sps:$4 sm:$0xff]   ;;  %v105_v53 = vld [vmem:[#allocation2 + $0x41] sm:$0xff]  ;;  %v106_v54 = vld [vmem:[#allocation2 + $0x51] sm:$0xff]  ;;  %p6468_p5 = por %p6467_p4, %p6466_p3 }
  0x3a   :  { %v6051_v55 = vld [vmem:[#allocation5 + $0x60] ss:$16 sps:$4 sm:$0xff]   ;;  %v6054_v56 = vld [vmem:[#allocation5 + $0x68] ss:$16 sps:$4 sm:$0xff]   ;;  %v6059_v57 = vld [vmem:[#allocation5 + $0x84] ss:$16 sps:$4 sm:$0xff]   ;;  %v119_v59 = vpack.c.bf16 %v106_v54, %v105_v53 }
  0x3b   :  { %327 = vmatpush1.bf16.msra.mxu0 %v6013_v19  ;;  %440 = vmatpush1.bf16.msra.mxu1 %v6014_v20  ;;  %v6062_v58 = vld [vmem:[#allocation5 + $0x8c] ss:$16 sps:$4 sm:$0xff]   ;;  %v6057_v60 = vld [vmem:[#allocation5 + $0x80] ss:$16 sps:$4 sm:$0xff]   ;;  %v6060_v61 = vld [vmem:[#allocation5 + $0x88] ss:$16 sps:$4 sm:$0xff]   ;;  %p6469_p6 = pnand %p6468_p5, %p6462_p2 }
  0x3c   :  { %328 = vmatprep.subr.bf16.mxu0 %v6015_v21  ;;  %441 = vmatprep.subr.bf16.mxu1 %v6017_v22  ;;  %v6065_v62 = vld [vmem:[#allocation5 + $0xa4] ss:$16 sps:$4 sm:$0xff]   ;;  %v6068_v63 = vld [vmem:[#allocation5 + $0xac] ss:$16 sps:$4 sm:$0xff]   ;;  %v6063_v3 = vld [vmem:[#allocation5 + $0xa0] ss:$16 sps:$4 sm:$0xff]  }
  0x3d   :  { %v107_v1 = vld [vmem:[#allocation2 + $0x61] sm:$0xff]  ;;  %v108_v2 = vld [vmem:[#allocation2 + $0x71] sm:$0xff]  ;;  %v6074_v6 = vld [vmem:[#allocation5 + $0xcc] ss:$16 sps:$4 sm:$0xff]  }
  0x3e   :  { %v6066_v4 = vld [vmem:[#allocation5 + $0xa8] ss:$16 sps:$4 sm:$0xff]   ;;  %v6071_v5 = vld [vmem:[#allocation5 + $0xc4] ss:$16 sps:$4 sm:$0xff]   ;;  %v120_v7 = vpack.c.bf16 %v108_v2, %v107_v1  ;;  %v6069_v8 = vld [vmem:[#allocation5 + $0xc0] ss:$16 sps:$4 sm:$0xff]  }
  0x3f   :  { %329 = vmatpush1.bf16.msra.mxu0 %v6019_v23  ;;  %442 = vmatpush1.bf16.msra.mxu1 %v6020_v24  ;;  %v6072_v9 = vld [vmem:[#allocation5 + $0xc8] ss:$16 sps:$4 sm:$0xff]   ;;  %v6077_v10 = vld [vmem:[#allocation5 + $0xe4] ss:$16 sps:$4 sm:$0xff]   ;;  %v6080_v11 = vld [vmem:[#allocation5 + $0xec] ss:$16 sps:$4 sm:$0xff]  }
  0x40   :  { %330 = vmatprep.subr.bf16.mxu0 %v6021_v25  ;;  %443 = vmatprep.subr.bf16.mxu1 %v6023_v26  ;;  %v109_v12 = vld [vmem:[#allocation2 + $0xa1] sm:$0xff]  ;;  %v110_v13 = vld [vmem:[#allocation2 + $0xb1] sm:$0xff]  ;;  %v6086_v17 = vld [vmem:[#allocation5 + $0x20c] ss:$16 sps:$4 sm:$0xff]  }
  0x41   :  { %v6075_v14 = vld [vmem:[#allocation5 + $0xe0] ss:$16 sps:$4 sm:$0xff]   ;;  %v6078_v15 = vld [vmem:[#allocation5 + $0xe8] ss:$16 sps:$4 sm:$0xff]   ;;  %v6083_v16 = vld [vmem:[#allocation5 + $0x204] ss:$16 sps:$4 sm:$0xff]   ;;  %v121_v18 = vpack.c.bf16 %v110_v13, %v109_v12 }
  0x42   :  { %v111_v19 = vld [vmem:[#allocation2 + $0xc1] sm:$0xff]  ;;  %v112_v20 = vld [vmem:[#allocation2 + $0xd1] sm:$0xff]  ;;  %v6110_v54 = vld [vmem:[#allocation5 + $0x28c] ss:$16 sps:$4 sm:$0xff]  }
  0x43   :  { %331 = vmatpush1.bf16.msra.mxu0 %v6025_v27  ;;  %444 = vmatpush1.bf16.msra.mxu1 %v6026_v28  ;;  %v122_v21 = vpack.c.bf16 %v112_v20, %v111_v19  ;;  %v113_v22 = vld [vmem:[#allocation2 + $0xe1] sm:$0xff]  ;;  %v114_v23 = vld [vmem:[#allocation2 + $0xf1] sm:$0xff]  ;;  %v6122_v2 = vld [vmem:[#allocation5 + $0x2cc] ss:$16 sps:$4 sm:$0xff]  }
  0x44   :  { %332 = vmatprep.subr.bf16.mxu0 %v6027_v29  ;;  %445 = vmatprep.subr.bf16.mxu1 %v6029_v30  ;;  %v123_v24 = vpack.c.bf16 %v114_v23, %v113_v22  ;;  %v115_v25 = vld [vmem:[#allocation2 + $0x101] sm:$0xff]  ;;  %v116_v26 = vld [vmem:[#allocation2 + $0x111] sm:$0xff] }
  0x45   :  { %v124_v27 = vpack.c.bf16 %v116_v26, %v115_v25  ;;  %v46_v28 = vld [vmem:[#allocation2 + $0x10] sm:$0xff]  ;;  %v47_v29 = vld [vmem:[#allocation2 + $0x20] sm:$0xff]  ;;  %v6084_v34 = vld [vmem:[#allocation5 + $0x208] ss:$16 sps:$4 sm:$0xff]  }
  0x46   :  { %v45_v30 = vld [vmem:[#allocation2] sm:$0xff]  ;;  %v6126_v12 = vld [vmem:[#allocation5 + $0x2e8] ss:$16 sps:$4 sm:$0xff]   ;;  %v6644_v20 = vld [vmem:[#allocation2 + $0xf0] sm:$0xff] }
  0x47   :  { %333 = vmatpush1.bf16.msra.mxu0 %v6031_v31  ;;  %446 = vmatpush1.bf16.msra.mxu1 %v6032_v32  ;;  %v6616_v31 = vpack.c.bf16 %v47_v29, %v46_v28  ;;  %v61_v32 = vpack.c.bf16 %v46_v28, %v45_v30  ;;  %v6081_v33 = vld [vmem:[#allocation5 + $0x200] ss:$16 sps:$4 sm:$0xff]   ;;  %v6107_v53 = vld [vmem:[#allocation5 + $0x284] ss:$16 sps:$4 sm:$0xff]   ;;  %v6132_v28 = vld [vmem:[#allocation5 + $0x308] ss:$16 sps:$4 sm:$0xff]  }
  0x48   :  { %704 = vmatprep.subr.bf16.mxu0 %v6035_v35  ;;  %817 = vmatprep.subr.bf16.mxu1 %v6038_v36  ;;  %v48_v35 = vld [vmem:[#allocation2 + $0x30] sm:$0xff]  ;;  %v49_v40 = vld [vmem:[#allocation2 + $0x40] sm:$0xff] }
  0x49   :  { %v6087_v36 = vld [vmem:[#allocation5 + $0x220] ss:$16 sps:$4 sm:$0xff]   ;;  %v6620_v43 = vpack.c.bf16 %v49_v40, %v48_v35  ;;  %v6119_v1 = vld [vmem:[#allocation5 + $0x2c4] ss:$16 sps:$4 sm:$0xff]  }
  0x4a   :  { %351 = vmatmul.mubr.bf16.vlgmr.msra.gmra.mrb[0].mxu0 %v117_v37  ;;  %464 = vmatmul.mubr.bf16.vlgmr.msra.gmra.mrb[0].mxu1 %v117_v37  ;;  %v6089_v37 = vld [vmem:[#allocation5 + $0x224] ss:$16 sps:$4 sm:$0xff]  }
  0x4b   :  { %705 = vmatpush1.bf16.msra.mxu0 %v6033_v38  ;;  %818 = vmatpush1.bf16.msra.mxu1 %v6036_v39  ;;  %v6092_v38 = vld [vmem:[#allocation5 + $0x22c] ss:$16 sps:$4 sm:$0xff]   ;;  %v6090_v39 = vld [vmem:[#allocation5 + $0x228] ss:$16 sps:$4 sm:$0xff]   ;;  %v6131_v13 = vld [vmem:[#allocation5 + $0x304] ss:$16 sps:$4 sm:$0xff]  }
  0x4c   :  { %360 = vmatprep.mubr.bf16.mxu0 %v6541_v0  ;;  %473 = vmatprep.mubr.bf16.mxu1 %v6541_v0  ;;  %v6640_v19 = vld [vmem:[#allocation2 + $0xe0] sm:$0xff]  ;;  %v6652_v23 = vld [vmem:[#allocation2 + $0x110] sm:$0xff] }
  0x4d   :  { %706 = vmatprep.subr.bf16.mxu0 %v6041_v41  ;;  %819 = vmatprep.subr.bf16.mxu1 %v6044_v42  ;;  %v6095_v41 = vld [vmem:[#allocation5 + $0x244] ss:$16 sps:$4 sm:$0xff]   ;;  %v6098_v42 = vld [vmem:[#allocation5 + $0x24c] ss:$16 sps:$4 sm:$0xff]  }
  0x4e   :  { %v6650_v22 = vld [vmem:[#allocation2 + $0x100] sm:$0xff]  ;;  %v6658_v26 = vld [vmem:[#allocation2 + $0x12] sm:$0xff] }
  0x4f   :  { %707 = vmatpush1.bf16.msra.mxu0 %v6039_v44  ;;  %820 = vmatpush1.bf16.msra.mxu1 %v6042_v45  ;;  %v62_v44 = vpack.c.bf16 %v48_v35, %v47_v29  ;;  %v6093_v45 = vld [vmem:[#allocation5 + $0x240] ss:$16 sps:$4 sm:$0xff]   ;;  %v6137_v30 = vld [vmem:[#allocation5 + $0x324] ss:$16 sps:$4 sm:$0xff]  }
  0x50   :  { %708 = vmatprep.subr.bf16.mxu0 %v6047_v46  ;;  %821 = vmatprep.subr.bf16.mxu1 %v6050_v47  ;;  %v6096_v46 = vld [vmem:[#allocation5 + $0x248] ss:$16 sps:$4 sm:$0xff]   ;;  %v6101_v47 = vld [vmem:[#allocation5 + $0x264] ss:$16 sps:$4 sm:$0xff]   ;;  %v6135_v35 = vld [vmem:[#allocation5 + $0x320] ss:$16 sps:$4 sm:$0xff]  }
  0x51   :  { %v930_v25 = vld [vmem:[#allocation2 + $0x2] sm:$0xff] }
  0x52   :  { %361 = vmatmul.mubr.bf16.gmra.mrb[4].mxu0 %v118_v48  ;;  %474 = vmatmul.mubr.bf16.gmra.mrb[4].mxu1 %v118_v48  ;;  %v6104_v48 = vld [vmem:[#allocation5 + $0x26c] ss:$16 sps:$4 sm:$0xff]   ;;  %v946_v29 = vpack.c.bf16 %v6658_v26, %v930_v25  ;;  %v6708_v25 = vld [vmem:[#allocation2 + $0x102] sm:$0xff] }
  0x53   :  { %370 = vmatprep.mubr.bf16.mxu0 %v6541_v0  ;;  %483 = vmatprep.mubr.bf16.mxu1 %v6541_v0 }
  0x54   :  { %709 = vmatpush1.bf16.msra.mxu0 %v6045_v49  ;;  %822 = vmatpush1.bf16.msra.mxu1 %v6048_v50  ;;  %v50_v49 = vld [vmem:[#allocation2 + $0x50] sm:$0xff]  ;;  %v51_v50 = vld [vmem:[#allocation2 + $0x60] sm:$0xff] }
  0x55   :  { %710 = vmatprep.subr.bf16.mxu0 %v6053_v51  ;;  %823 = vmatprep.subr.bf16.mxu1 %v6056_v52  ;;  %v6099_v51 = vld [vmem:[#allocation5 + $0x260] ss:$16 sps:$4 sm:$0xff]   ;;  %v6102_v52 = vld [vmem:[#allocation5 + $0x268] ss:$16 sps:$4 sm:$0xff]  }
  0x58   :  { %711 = vmatpush1.bf16.msra.mxu0 %v6051_v55  ;;  %824 = vmatpush1.bf16.msra.mxu1 %v6054_v56  ;;  %v6624_v55 = vpack.c.bf16 %v51_v50, %v50_v49  ;;  %v63_v56 = vpack.c.bf16 %v50_v49, %v49_v40  ;;  %v6141_v40 = vld [vmem:[#allocation5 + $0x340] ss:$16 sps:$4 sm:$0xff]   ;;  %v6155_v49 = vld [vmem:[#allocation5 + $0x384] ss:$16 sps:$4 sm:$0xff]  }
  0x59   :  { %712 = vmatprep.subr.bf16.mxu0 %v6059_v57  ;;  %825 = vmatprep.subr.bf16.mxu1 %v6062_v58  ;;  %v6105_v57 = vld [vmem:[#allocation5 + $0x280] ss:$16 sps:$4 sm:$0xff]   ;;  %v6108_v58 = vld [vmem:[#allocation5 + $0x288] ss:$16 sps:$4 sm:$0xff]  }
  0x5a   :  { %371 = vmatmul.mubr.bf16.gmra.mrb[8].mxu0 %v119_v59  ;;  %484 = vmatmul.mubr.bf16.gmra.mrb[8].mxu1 %v119_v59  ;;  %v6113_v59 = vld [vmem:[#allocation5 + $0x2a4] ss:$16 sps:$4 sm:$0xff]  }
  0x5b   :  { %380 = vmatprep.mubr.bf16.mxu0 %v6541_v0  ;;  %493 = vmatprep.mubr.bf16.mxu1 %v6541_v0 }
  0x5c   :  { %713 = vmatpush1.bf16.msra.mxu0 %v6057_v60  ;;  %826 = vmatpush1.bf16.msra.mxu1 %v6060_v61  ;;  %v6116_v60 = vld [vmem:[#allocation5 + $0x2ac] ss:$16 sps:$4 sm:$0xff]   ;;  %v6626_v61 = vld [vmem:[#allocation2 + $0x70] sm:$0xff] }
  0x5d   :  { %714 = vmatprep.subr.bf16.mxu0 %v6065_v62  ;;  %827 = vmatprep.subr.bf16.mxu1 %v6068_v63  ;;  %v6111_v62 = vld [vmem:[#allocation5 + $0x2a0] ss:$16 sps:$4 sm:$0xff]   ;;  %v6114_v63 = vld [vmem:[#allocation5 + $0x2a8] ss:$16 sps:$4 sm:$0xff]  }
  0x60   :  { %715 = vmatpush1.bf16.msra.mxu0 %v6063_v3  ;;  %828 = vmatpush1.bf16.msra.mxu1 %v6066_v4  ;;  %v64_v3 = vpack.c.bf16 %v6626_v61, %v51_v50  ;;  %v6117_v4 = vld [vmem:[#allocation5 + $0x2c0] ss:$16 sps:$4 sm:$0xff]   ;;  %v6158_v50 = vld [vmem:[#allocation5 + $0x38c] ss:$16 sps:$4 sm:$0xff]  }
  0x61   :  { %716 = vmatprep.subr.bf16.mxu0 %v6071_v5  ;;  %829 = vmatprep.subr.bf16.mxu1 %v6074_v6  ;;  %v6120_v5 = vld [vmem:[#allocation5 + $0x2c8] ss:$16 sps:$4 sm:$0xff]   ;;  %v6125_v6 = vld [vmem:[#allocation5 + $0x2e4] ss:$16 sps:$4 sm:$0xff]  }
  0x62   :  { %381 = vmatmul.mubr.bf16.gmra.mrb[12].mxu0 %v120_v7  ;;  %494 = vmatmul.mubr.bf16.gmra.mrb[12].mxu1 %v120_v7  ;;  %v6128_v7 = vld [vmem:[#allocation5 + $0x2ec] ss:$16 sps:$4 sm:$0xff]  }
  0x63   :  { %390 = vmatprep.mubr.bf16.mxu0 %v6541_v0  ;;  %503 = vmatprep.mubr.bf16.mxu1 %v6541_v0 }
  0x64   :  { %717 = vmatpush1.bf16.msra.mxu0 %v6069_v8  ;;  %830 = vmatpush1.bf16.msra.mxu1 %v6072_v9  ;;  %v54_v8 = vld [vmem:[#allocation2 + $0xb0] sm:$0xff]  ;;  %v53_v9 = vld [vmem:[#allocation2 + $0xa0] sm:$0xff] }
  0x65   :  { %718 = vmatprep.subr.bf16.mxu0 %v6077_v10  ;;  %831 = vmatprep.subr.bf16.mxu1 %v6080_v11  ;;  %v55_v10 = vld [vmem:[#allocation2 + $0xc0] sm:$0xff] }
  0x66   :  { %v6123_v11 = vld [vmem:[#allocation5 + $0x2e0] ss:$16 sps:$4 sm:$0xff]  }
  0x68   :  { %719 = vmatpush1.bf16.msra.mxu0 %v6075_v14  ;;  %832 = vmatpush1.bf16.msra.mxu1 %v6078_v15  ;;  %v6134_v14 = vld [vmem:[#allocation5 + $0x30c] ss:$16 sps:$4 sm:$0xff]   ;;  %v6633_v15 = vpack.c.bf16 %v55_v10, %v54_v8 }
  0x69   :  { %1147 = vmatprep.subr.bf16.mxu0 %v6083_v16  ;;  %1260 = vmatprep.subr.bf16.mxu1 %v6086_v17  ;;  %v65_v16 = vpack.c.bf16 %v54_v8, %v53_v9  ;;  %v6637_v17 = vld [vmem:[#allocation2 + $0xd0] sm:$0xff]  ;;  %v6174_v9 = vld [vmem:[#allocation5 + $0x3e8] ss:$16 sps:$4 sm:$0xff]  }
  0x6a   :  { %391 = vmatmul.mubr.bf16.gmra.mrb[16].mxu0 %v121_v18  ;;  %504 = vmatmul.mubr.bf16.gmra.mrb[16].mxu1 %v121_v18  ;;  %v66_v18 = vpack.c.bf16 %v6637_v17, %v55_v10  ;;  %v6171_v8 = vld [vmem:[#allocation5 + $0x3e0] ss:$16 sps:$4 sm:$0xff]   ;;  %v6179_v10 = vld [vmem:[#allocation5 + $0x404] ss:$16 sps:$4 sm:$0xff]  }
  0x6b   :  { %400 = vmatprep.mubr.bf16.mxu0 %v6541_v0  ;;  %513 = vmatprep.mubr.bf16.mxu1 %v6541_v0 }
  0x72   :  { %401 = vmatmul.mubr.bf16.gmra.mrb[20].mxu0 %v122_v21  ;;  %514 = vmatmul.mubr.bf16.gmra.mrb[20].mxu1 %v122_v21  ;;  %v67_v21 = vpack.c.bf16 %v6644_v20, %v6640_v19 }
  0x73   :  { %410 = vmatprep.mubr.bf16.mxu0 %v6541_v0  ;;  %523 = vmatprep.mubr.bf16.mxu1 %v6541_v0 }
  0x7a   :  { %411 = vmatmul.mubr.bf16.gmra.mrb[24].mxu0 %v123_v24  ;;  %524 = vmatmul.mubr.bf16.gmra.mrb[24].mxu1 %v123_v24  ;;  %v68_v24 = vpack.c.bf16 %v6652_v23, %v6650_v22 }
  0x7b   :  { %420 = vmatprep.mubr.bf16.mxu0 %v6541_v0  ;;  %533 = vmatprep.mubr.bf16.mxu1 %v6541_v0 }
  0x82   :  { %421 = vmatmul.mubr.bf16.gmra.mrb[28].mxu0 %v124_v27  ;;  %534 = vmatmul.mubr.bf16.gmra.mrb[28].mxu1 %v124_v27  ;;  %v6129_v27 = vld [vmem:[#allocation5 + $0x300] ss:$16 sps:$4 sm:$0xff]  }
  0x83   :  { %736 = vmatprep.mubr.bf16.mxu0 %v6541_v0  ;;  %849 = vmatprep.mubr.bf16.mxu1 %v6541_v0 }
  0x8a   :  { %737 = vmatmul.mubr.bf16.vlgmr.msra.gmra.mrb[0].mxu0 %v61_v32  ;;  %850 = vmatmul.mubr.bf16.vlgmr.msra.gmra.mrb[0].mxu1 %v61_v32  ;;  %v6140_v32 = vld [vmem:[#allocation5 + $0x32c] ss:$16 sps:$4 sm:$0xff]  }
  0x8b   :  { %1148 = vmatpush1.bf16.msra.mxu0 %v6081_v33  ;;  %1261 = vmatpush1.bf16.msra.mxu1 %v6084_v34  ;;  %v6661_v33 = vld [vmem:[#allocation2 + $0x22] sm:$0xff]  ;;  %v6663_v34 = vld [vmem:[#allocation2 + $0x32] sm:$0xff] }
  0x8c   :  { %746 = vmatprep.mubr.bf16.mxu0 %v6541_v0  ;;  %859 = vmatprep.mubr.bf16.mxu1 %v6541_v0 }
  0x8d   :  { %1149 = vmatprep.subr.bf16.mxu0 %v6089_v37  ;;  %1262 = vmatprep.subr.bf16.mxu1 %v6092_v38  ;;  %v6143_v37 = vld [vmem:[#allocation5 + $0x344] ss:$16 sps:$4 sm:$0xff]   ;;  %v6146_v38 = vld [vmem:[#allocation5 + $0x34c] ss:$16 sps:$4 sm:$0xff]  }
  0x8f   :  { %1150 = vmatpush1.bf16.msra.mxu0 %v6087_v36  ;;  %1263 = vmatpush1.bf16.msra.mxu1 %v6090_v39  ;;  %v6138_v36 = vld [vmem:[#allocation5 + $0x328] ss:$16 sps:$4 sm:$0xff]   ;;  %v947_v39 = vpack.c.bf16 %v6663_v34, %v6661_v33 }
  0x90   :  { %1151 = vmatprep.subr.bf16.mxu0 %v6095_v41  ;;  %1264 = vmatprep.subr.bf16.mxu1 %v6098_v42  ;;  %v6144_v41 = vld [vmem:[#allocation5 + $0x348] ss:$16 sps:$4 sm:$0xff]   ;;  %v6149_v42 = vld [vmem:[#allocation5 + $0x364] ss:$16 sps:$4 sm:$0xff]  }
  0x92   :  { %747 = vmatmul.mubr.bf16.gmra.mrb[4].mxu0 %v62_v44  ;;  %860 = vmatmul.mubr.bf16.gmra.mrb[4].mxu1 %v62_v44  ;;  %v6152_v44 = vld [vmem:[#allocation5 + $0x36c] ss:$16 sps:$4 sm:$0xff]  }
  0x93   :  { %756 = vmatprep.mubr.bf16.mxu0 %v6541_v0  ;;  %869 = vmatprep.mubr.bf16.mxu1 %v6541_v0 }
  0x94   :  { %1152 = vmatpush1.bf16.msra.mxu0 %v6093_v45  ;;  %1265 = vmatpush1.bf16.msra.mxu1 %v6096_v46  ;;  %v6671_v45 = vld [vmem:[#allocation2 + $0x42] sm:$0xff]  ;;  %v6673_v46 = vld [vmem:[#allocation2 + $0x52] sm:$0xff] }
  0x95   :  { %1153 = vmatprep.subr.bf16.mxu0 %v6101_v47  ;;  %1266 = vmatprep.subr.bf16.mxu1 %v6104_v48  ;;  %v6147_v47 = vld [vmem:[#allocation5 + $0x360] ss:$16 sps:$4 sm:$0xff]   ;;  %v6150_v48 = vld [vmem:[#allocation5 + $0x368] ss:$16 sps:$4 sm:$0xff]  }
  0x98   :  { %1154 = vmatpush1.bf16.msra.mxu0 %v6099_v51  ;;  %1267 = vmatpush1.bf16.msra.mxu1 %v6102_v52  ;;  %v948_v51 = vpack.c.bf16 %v6673_v46, %v6671_v45  ;;  %v6153_v52 = vld [vmem:[#allocation5 + $0x380] ss:$16 sps:$4 sm:$0xff]  }
  0x99   :  { %1155 = vmatprep.subr.bf16.mxu0 %v6107_v53  ;;  %1268 = vmatprep.subr.bf16.mxu1 %v6110_v54  ;;  %v6156_v53 = vld [vmem:[#allocation5 + $0x388] ss:$16 sps:$4 sm:$0xff]   ;;  %v6161_v54 = vld [vmem:[#allocation5 + $0x3a4] ss:$16 sps:$4 sm:$0xff]  }
  0x9a   :  { %757 = vmatmul.mubr.bf16.gmra.mrb[8].mxu0 %v63_v56  ;;  %870 = vmatmul.mubr.bf16.gmra.mrb[8].mxu1 %v63_v56  ;;  %v6164_v56 = vld [vmem:[#allocation5 + $0x3ac] ss:$16 sps:$4 sm:$0xff]  }
  0x9b   :  { %766 = vmatprep.mubr.bf16.mxu0 %v6541_v0  ;;  %879 = vmatprep.mubr.bf16.mxu1 %v6541_v0 }
  0x9c   :  { %1156 = vmatpush1.bf16.msra.mxu0 %v6105_v57  ;;  %1269 = vmatpush1.bf16.msra.mxu1 %v6108_v58  ;;  %v6679_v57 = vld [vmem:[#allocation2 + $0x62] sm:$0xff]  ;;  %v6681_v58 = vld [vmem:[#allocation2 + $0x72] sm:$0xff] }
  0x9d   :  { %1157 = vmatprep.subr.bf16.mxu0 %v6113_v59  ;;  %1270 = vmatprep.subr.bf16.mxu1 %v6116_v60  ;;  %v6159_v59 = vld [vmem:[#allocation5 + $0x3a0] ss:$16 sps:$4 sm:$0xff]   ;;  %v6162_v60 = vld [vmem:[#allocation5 + $0x3a8] ss:$16 sps:$4 sm:$0xff]  }
  0xa0   :  { %1158 = vmatpush1.bf16.msra.mxu0 %v6111_v62  ;;  %1271 = vmatpush1.bf16.msra.mxu1 %v6114_v63  ;;  %v6167_v62 = vld [vmem:[#allocation5 + $0x3c4] ss:$16 sps:$4 sm:$0xff]   ;;  %v6170_v63 = vld [vmem:[#allocation5 + $0x3cc] ss:$16 sps:$4 sm:$0xff]  }
  0xa1   :  { %1159 = vmatprep.subr.bf16.mxu0 %v6119_v1  ;;  %1272 = vmatprep.subr.bf16.mxu1 %v6122_v2  ;;  %v949_v1 = vpack.c.bf16 %v6681_v58, %v6679_v57  ;;  %v6165_v2 = vld [vmem:[#allocation5 + $0x3c0] ss:$16 sps:$4 sm:$0xff]  }
  0xa2   :  { %767 = vmatmul.mubr.bf16.gmra.mrb[12].mxu0 %v64_v3  ;;  %880 = vmatmul.mubr.bf16.gmra.mrb[12].mxu1 %v64_v3  ;;  %v6168_v3 = vld [vmem:[#allocation5 + $0x3c8] ss:$16 sps:$4 sm:$0xff]  }
  0xa3   :  { %776 = vmatprep.mubr.bf16.mxu0 %v6541_v0  ;;  %889 = vmatprep.mubr.bf16.mxu1 %v6541_v0 }
  0xa4   :  { %1160 = vmatpush1.bf16.msra.mxu0 %v6117_v4  ;;  %1273 = vmatpush1.bf16.msra.mxu1 %v6120_v5  ;;  %v6173_v4 = vld [vmem:[#allocation5 + $0x3e4] ss:$16 sps:$4 sm:$0xff]   ;;  %v6176_v5 = vld [vmem:[#allocation5 + $0x3ec] ss:$16 sps:$4 sm:$0xff]  }
  0xa5   :  { %1161 = vmatprep.subr.bf16.mxu0 %v6125_v6  ;;  %1274 = vmatprep.subr.bf16.mxu1 %v6128_v7  ;;  %v938_v6 = vld [vmem:[#allocation2 + $0xa2] sm:$0xff]  ;;  %v6687_v7 = vld [vmem:[#allocation2 + $0xb2] sm:$0xff] }
  0xa8   :  { %1162 = vmatpush1.bf16.msra.mxu0 %v6123_v11  ;;  %1275 = vmatpush1.bf16.msra.mxu1 %v6126_v12  ;;  %v6182_v11 = vld [vmem:[#allocation5 + $0x40c] ss:$16 sps:$4 sm:$0xff]   ;;  %v950_v12 = vpack.c.bf16 %v6687_v7, %v938_v6  ;;  %v1459_v6 = vpack.c.bf16 %v6640_v19, %v6637_v17  ;;  %v1945_v19 = vld [vmem:[#allocation2 + $0x11] sm:$0xff] }
  0xa9   :  { %1655 = vmatprep.subr.bf16.mxu0 %v6131_v13  ;;  %1768 = vmatprep.subr.bf16.mxu1 %v6134_v14  ;;  %v6692_v13 = vld [vmem:[#allocation2 + $0xc2] sm:$0xff]  ;;  %v6694_v14 = vld [vmem:[#allocation2 + $0xd2] sm:$0xff] }
  0xaa   :  { %777 = vmatmul.mubr.bf16.gmra.mrb[16].mxu0 %v65_v16  ;;  %890 = vmatmul.mubr.bf16.gmra.mrb[16].mxu1 %v65_v16  ;;  %v951_v16 = vpack.c.bf16 %v6694_v14, %v6692_v13 }
  0xab   :  { %786 = vmatprep.mubr.bf16.mxu0 %v6541_v0  ;;  %899 = vmatprep.mubr.bf16.mxu1 %v6541_v0 }
  0xb2   :  { %787 = vmatmul.mubr.bf16.gmra.mrb[20].mxu0 %v66_v18  ;;  %900 = vmatmul.mubr.bf16.gmra.mrb[20].mxu1 %v66_v18  ;;  %v6700_v18 = vld [vmem:[#allocation2 + $0xe2] sm:$0xff] }
  0xb3   :  { %796 = vmatprep.mubr.bf16.mxu0 %v6541_v0  ;;  %909 = vmatprep.mubr.bf16.mxu1 %v6541_v0 }
  0xba   :  { %797 = vmatmul.mubr.bf16.gmra.mrb[24].mxu0 %v67_v21  ;;  %910 = vmatmul.mubr.bf16.gmra.mrb[24].mxu1 %v67_v21  ;;  %v6702_v21 = vld [vmem:[#allocation2 + $0xf2] sm:$0xff] }
  0xbb   :  { %806 = vmatprep.mubr.bf16.mxu0 %v6541_v0  ;;  %919 = vmatprep.mubr.bf16.mxu1 %v6541_v0 }
  0xc2   :  { %807 = vmatmul.mubr.bf16.gmra.mrb[28].mxu0 %v68_v24  ;;  %920 = vmatmul.mubr.bf16.gmra.mrb[28].mxu1 %v68_v24  ;;  %v952_v24 = vpack.c.bf16 %v6702_v21, %v6700_v18 }
  0xc3   :  { %1179 = vmatprep.mubr.bf16.mxu0 %v6541_v0  ;;  %1292 = vmatprep.mubr.bf16.mxu1 %v6541_v0 }
  0xca   :  { %1180 = vmatmul.mubr.bf16.vlgmr.msra.gmra.mrb[0].mxu0 %v946_v29  ;;  %1293 = vmatmul.mubr.bf16.vlgmr.msra.gmra.mrb[0].mxu1 %v946_v29  ;;  %v6177_v29 = vld [vmem:[#allocation5 + $0x400] ss:$16 sps:$4 sm:$0xff]  }
  0xcb   :  { %1656 = vmatpush1.bf16.msra.mxu0 %v6129_v27  ;;  %1769 = vmatpush1.bf16.msra.mxu1 %v6132_v28  ;;  %v6710_v27 = vld [vmem:[#allocation2 + $0x112] sm:$0xff] }
  0xcc   :  { %1189 = vmatprep.mubr.bf16.mxu0 %v6541_v0  ;;  %1302 = vmatprep.mubr.bf16.mxu1 %v6541_v0  ;;  %v953_v28 = vpack.c.bf16 %v6710_v27, %v6708_v25 }
  0xcd   :  { %1657 = vmatprep.subr.bf16.mxu0 %v6137_v30  ;;  %1770 = vmatprep.subr.bf16.mxu1 %v6140_v32  ;;  %v6180_v30 = vld [vmem:[#allocation5 + $0x408] ss:$16 sps:$4 sm:$0xff]   ;;  %v6185_v32 = vld [vmem:[#allocation5 + $0x424] ss:$16 sps:$4 sm:$0xff]  }
  0xcf   :  { %1658 = vmatpush1.bf16.msra.mxu0 %v6135_v35  ;;  %1771 = vmatpush1.bf16.msra.mxu1 %v6138_v36  ;;  %v6188_v35 = vld [vmem:[#allocation5 + $0x42c] ss:$16 sps:$4 sm:$0xff]   ;;  %v6183_v36 = vld [vmem:[#allocation5 + $0x420] ss:$16 sps:$4 sm:$0xff]  }
  0xd0   :  { %1659 = vmatprep.subr.bf16.mxu0 %v6143_v37  ;;  %1772 = vmatprep.subr.bf16.mxu1 %v6146_v38  ;;  %v6186_v37 = vld [vmem:[#allocation5 + $0x428] ss:$16 sps:$4 sm:$0xff]   ;;  %v6191_v38 = vld [vmem:[#allocation5 + $0x444] ss:$16 sps:$4 sm:$0xff]  }
  0xd2   :  { %1190 = vmatmul.mubr.bf16.gmra.mrb[4].mxu0 %v947_v39  ;;  %1303 = vmatmul.mubr.bf16.gmra.mrb[4].mxu1 %v947_v39  ;;  %v6194_v39 = vld [vmem:[#allocation5 + $0x44c] ss:$16 sps:$4 sm:$0xff]  }
  0xd3   :  { %1199 = vmatprep.mubr.bf16.mxu0 %v6541_v0  ;;  %1312 = vmatprep.mubr.bf16.mxu1 %v6541_v0 }
  0xd4   :  { %1660 = vmatpush1.bf16.msra.mxu0 %v6141_v40  ;;  %1773 = vmatpush1.bf16.msra.mxu1 %v6144_v41  ;;  %v6189_v40 = vld [vmem:[#allocation5 + $0x440] ss:$16 sps:$4 sm:$0xff]   ;;  %v6192_v41 = vld [vmem:[#allocation5 + $0x448] ss:$16 sps:$4 sm:$0xff]  }
  0xd5   :  { %1661 = vmatprep.subr.bf16.mxu0 %v6149_v42  ;;  %1774 = vmatprep.subr.bf16.mxu1 %v6152_v44  ;;  %v6197_v42 = vld [vmem:[#allocation5 + $0x464] ss:$16 sps:$4 sm:$0xff]   ;;  %v6195_v44 = vld [vmem:[#allocation5 + $0x460] ss:$16 sps:$4 sm:$0xff]  }
  0xd8   :  { %1662 = vmatpush1.bf16.msra.mxu0 %v6147_v47  ;;  %1775 = vmatpush1.bf16.msra.mxu1 %v6150_v48  ;;  %v6198_v47 = vld [vmem:[#allocation5 + $0x468] ss:$16 sps:$4 sm:$0xff]   ;;  %v6203_v48 = vld [vmem:[#allocation5 + $0x484] ss:$16 sps:$4 sm:$0xff]  }
  0xd9   :  { %1663 = vmatprep.subr.bf16.mxu0 %v6155_v49  ;;  %1776 = vmatprep.subr.bf16.mxu1 %v6158_v50  ;;  %v6206_v49 = vld [vmem:[#allocation5 + $0x48c] ss:$16 sps:$4 sm:$0xff]   ;;  %v6201_v50 = vld [vmem:[#allocation5 + $0x480] ss:$16 sps:$4 sm:$0xff]  }
  0xda   :  { %1200 = vmatmul.mubr.bf16.gmra.mrb[8].mxu0 %v948_v51  ;;  %1313 = vmatmul.mubr.bf16.gmra.mrb[8].mxu1 %v948_v51  ;;  %v6204_v51 = vld [vmem:[#allocation5 + $0x488] ss:$16 sps:$4 sm:$0xff]  }
  0xdb   :  { %1209 = vmatprep.mubr.bf16.mxu0 %v6541_v0  ;;  %1322 = vmatprep.mubr.bf16.mxu1 %v6541_v0 }
  0xdc   :  { %1664 = vmatpush1.bf16.msra.mxu0 %v6153_v52  ;;  %1777 = vmatpush1.bf16.msra.mxu1 %v6156_v53  ;;  %v6209_v52 = vld [vmem:[#allocation5 + $0x4a4] ss:$16 sps:$4 sm:$0xff]  }
  0xdd   :  { %1665 = vmatprep.subr.bf16.mxu0 %v6161_v54  ;;  %1778 = vmatprep.subr.bf16.mxu1 %v6164_v56  ;;  %v6728_v53 = vld [vmem:[#allocation2 + $0x80] sm:$0xff]  ;;  %v6210_v56 = vld [vmem:[#allocation5 + $0x4a8] ss:$16 sps:$4 sm:$0xff]  }
  0xde   :  { %v6207_v54 = vld [vmem:[#allocation5 + $0x4a0] ss:$16 sps:$4 sm:$0xff]  }
  0xe0   :  { %1666 = vmatpush1.bf16.msra.mxu0 %v6159_v59  ;;  %1779 = vmatpush1.bf16.msra.mxu1 %v6162_v60  ;;  %v6215_v59 = vld [vmem:[#allocation5 + $0x4c4] ss:$16 sps:$4 sm:$0xff]   ;;  %v6218_v60 = vld [vmem:[#allocation5 + $0x4cc] ss:$16 sps:$4 sm:$0xff]  }
  0xe1   :  { %1667 = vmatprep.subr.bf16.mxu0 %v6167_v62  ;;  %1780 = vmatprep.subr.bf16.mxu1 %v6170_v63  ;;  %v1457_v62 = vpack.c.bf16 %v6728_v53, %v6626_v61  ;;  %v6216_v63 = vld [vmem:[#allocation5 + $0x4c8] ss:$16 sps:$4 sm:$0xff]   ;;  %v6227_v61 = vld [vmem:[#allocation5 + $0x504] ss:$16 sps:$4 sm:$0xff]  }
  0xe2   :  { %1210 = vmatmul.mubr.bf16.gmra.mrb[12].mxu0 %v949_v1  ;;  %1323 = vmatmul.mubr.bf16.gmra.mrb[12].mxu1 %v949_v1  ;;  %v6221_v1 = vld [vmem:[#allocation5 + $0x4e4] ss:$16 sps:$4 sm:$0xff]  }
  0xe3   :  { %1219 = vmatprep.mubr.bf16.mxu0 %v6541_v0  ;;  %1332 = vmatprep.mubr.bf16.mxu1 %v6541_v0 }
  0xe4   :  { %1668 = vmatpush1.bf16.msra.mxu0 %v6165_v2  ;;  %1781 = vmatpush1.bf16.msra.mxu1 %v6168_v3  ;;  %v6224_v2 = vld [vmem:[#allocation5 + $0x4ec] ss:$16 sps:$4 sm:$0xff]   ;;  %v6219_v3 = vld [vmem:[#allocation5 + $0x4e0] ss:$16 sps:$4 sm:$0xff]  }
  0xe5   :  { %1669 = vmatprep.subr.bf16.mxu0 %v6173_v4  ;;  %1782 = vmatprep.subr.bf16.mxu1 %v6176_v5  ;;  %v6222_v4 = vld [vmem:[#allocation5 + $0x4e8] ss:$16 sps:$4 sm:$0xff]   ;;  %v6230_v5 = vld [vmem:[#allocation5 + $0x50c] ss:$16 sps:$4 sm:$0xff]  }
  0xe8   :  { %1670 = vmatpush1.bf16.msra.mxu0 %v6171_v8  ;;  %1783 = vmatpush1.bf16.msra.mxu1 %v6174_v9  ;;  %v1460_v8 = vpack.c.bf16 %v6650_v22, %v6644_v20  ;;  %v6752_v9 = vld [vmem:[#allocation2 + $0x21] sm:$0xff] }
  0xe9   :  { %2162 = vmatprep.subr.bf16.mxu0 %v6179_v10  ;;  %2275 = vmatprep.subr.bf16.mxu1 %v6182_v11  ;;  %v1961_v20 = vpack.c.bf16 %v6752_v9, %v1945_v19  ;;  %v6225_v22 = vld [vmem:[#allocation5 + $0x500] ss:$16 sps:$4 sm:$0xff]   ;;  %v6228_v10 = vld [vmem:[#allocation5 + $0x508] ss:$16 sps:$4 sm:$0xff]   ;;  %v6233_v11 = vld [vmem:[#allocation5 + $0x524] ss:$16 sps:$4 sm:$0xff]  }
  0xea   :  { %1220 = vmatmul.mubr.bf16.gmra.mrb[16].mxu0 %v950_v12  ;;  %1333 = vmatmul.mubr.bf16.gmra.mrb[16].mxu1 %v950_v12  ;;  %v6236_v12 = vld [vmem:[#allocation5 + $0x52c] ss:$16 sps:$4 sm:$0xff]   ;;  %v6786_v19 = vld [vmem:[#allocation2 + $0xd1] sm:$0xff] }
  0xeb   :  { %1229 = vmatprep.mubr.bf16.mxu0 %v6541_v0  ;;  %1342 = vmatprep.mubr.bf16.mxu1 %v6541_v0 }
  0xf2   :  { %1230 = vmatmul.mubr.bf16.gmra.mrb[20].mxu0 %v951_v16  ;;  %1343 = vmatmul.mubr.bf16.gmra.mrb[20].mxu1 %v951_v16  ;;  %v6755_v16 = vld [vmem:[#allocation2 + $0x31] sm:$0xff] }
  0xf3   :  { %1239 = vmatprep.mubr.bf16.mxu0 %v6541_v0  ;;  %1352 = vmatprep.mubr.bf16.mxu1 %v6541_v0 }
  0xfa   :  { %1240 = vmatmul.mubr.bf16.gmra.mrb[24].mxu0 %v952_v24  ;;  %1353 = vmatmul.mubr.bf16.gmra.mrb[24].mxu1 %v952_v24  ;;  %v6231_v24 = vld [vmem:[#allocation5 + $0x520] ss:$16 sps:$4 sm:$0xff]  }
  0xfb   :  { %1249 = vmatprep.mubr.bf16.mxu0 %v6541_v0  ;;  %1362 = vmatprep.mubr.bf16.mxu1 %v6541_v0 }
 0x102   :  { %1250 = vmatmul.mubr.bf16.gmra.mrb[28].mxu0 %v953_v28  ;;  %1363 = vmatmul.mubr.bf16.gmra.mrb[28].mxu1 %v953_v28  ;;  %v6234_v28 = vld [vmem:[#allocation5 + $0x528] ss:$16 sps:$4 sm:$0xff]  }
 0x103   :  { %1687 = vmatprep.mubr.bf16.mxu0 %v6541_v0  ;;  %1800 = vmatprep.mubr.bf16.mxu1 %v6541_v0 }
 0x10a   :  { %1688 = vmatmul.mubr.bf16.vlgmr.msra.gmra.mrb[0].mxu0 %v6616_v31  ;;  %1801 = vmatmul.mubr.bf16.vlgmr.msra.gmra.mrb[0].mxu1 %v6616_v31  ;;  %v6200_v31 = vld [vmem:[#allocation5 + $0x46c] ss:$16 sps:$4 sm:$0xff]  }
 0x10b   :  { %2163 = vmatpush1.bf16.msra.mxu0 %v6177_v29  ;;  %2276 = vmatpush1.bf16.msra.mxu1 %v6180_v30  ;;  %v6239_v29 = vld [vmem:[#allocation5 + $0x544] ss:$16 sps:$4 sm:$0xff]   ;;  %v6242_v30 = vld [vmem:[#allocation5 + $0x54c] ss:$16 sps:$4 sm:$0xff]  }
 0x10c   :  { %1697 = vmatprep.mubr.bf16.mxu0 %v6541_v0  ;;  %1810 = vmatprep.mubr.bf16.mxu1 %v6541_v0 }
 0x10d   :  { %2164 = vmatprep.subr.bf16.mxu0 %v6185_v32  ;;  %2277 = vmatprep.subr.bf16.mxu1 %v6188_v35  ;;  %v6237_v35 = vld [vmem:[#allocation5 + $0x540] ss:$16 sps:$4 sm:$0xff]  }
 0x10f   :  { %2165 = vmatpush1.bf16.msra.mxu0 %v6183_v36  ;;  %2278 = vmatpush1.bf16.msra.mxu1 %v6186_v37  ;;  %v6240_v36 = vld [vmem:[#allocation5 + $0x548] ss:$16 sps:$4 sm:$0xff]   ;;  %v6245_v37 = vld [vmem:[#allocation5 + $0x564] ss:$16 sps:$4 sm:$0xff]  }
 0x110   :  { %2166 = vmatprep.subr.bf16.mxu0 %v6191_v38  ;;  %2279 = vmatprep.subr.bf16.mxu1 %v6194_v39  ;;  %v6248_v38 = vld [vmem:[#allocation5 + $0x56c] ss:$16 sps:$4 sm:$0xff]   ;;  %v6765_v39 = vld [vmem:[#allocation2 + $0x51] sm:$0xff] }
 0x112   :  { %1698 = vmatmul.mubr.bf16.gmra.mrb[4].mxu0 %v6620_v43  ;;  %1811 = vmatmul.mubr.bf16.gmra.mrb[4].mxu1 %v6620_v43  ;;  %v6212_v43 = vld [vmem:[#allocation5 + $0x4ac] ss:$16 sps:$4 sm:$0xff]  }
 0x113   :  { %1707 = vmatprep.mubr.bf16.mxu0 %v6541_v0  ;;  %1820 = vmatprep.mubr.bf16.mxu1 %v6541_v0 }
 0x114   :  { %2167 = vmatpush1.bf16.msra.mxu0 %v6189_v40  ;;  %2280 = vmatpush1.bf16.msra.mxu1 %v6192_v41  ;;  %v6767_v40 = vld [vmem:[#allocation2 + $0x61] sm:$0xff] }
 0x115   :  { %2168 = vmatprep.subr.bf16.mxu0 %v6197_v42  ;;  %2281 = vmatprep.subr.bf16.mxu1 %v6200_v31  ;;  %v6243_v41 = vld [vmem:[#allocation5 + $0x560] ss:$16 sps:$4 sm:$0xff]   ;;  %v6246_v42 = vld [vmem:[#allocation5 + $0x568] ss:$16 sps:$4 sm:$0xff]   ;;  %v6251_v31 = vld [vmem:[#allocation5 + $0x584] ss:$16 sps:$4 sm:$0xff]  }
 0x118   :  { %2169 = vmatpush1.bf16.msra.mxu0 %v6195_v44  ;;  %2282 = vmatpush1.bf16.msra.mxu1 %v6198_v47  ;;  %v6254_v44 = vld [vmem:[#allocation5 + $0x58c] ss:$16 sps:$4 sm:$0xff]   ;;  %v1963_v47 = vpack.c.bf16 %v6767_v40, %v6765_v39 }
 0x119   :  { %2170 = vmatprep.subr.bf16.mxu0 %v6203_v48  ;;  %2283 = vmatprep.subr.bf16.mxu1 %v6206_v49  ;;  %v6249_v48 = vld [vmem:[#allocation5 + $0x580] ss:$16 sps:$4 sm:$0xff]   ;;  %v6252_v49 = vld [vmem:[#allocation5 + $0x588] ss:$16 sps:$4 sm:$0xff]  }
 0x11a   :  { %1708 = vmatmul.mubr.bf16.gmra.mrb[8].mxu0 %v6624_v55  ;;  %1821 = vmatmul.mubr.bf16.gmra.mrb[8].mxu1 %v6624_v55  ;;  %v6213_v55 = vld [vmem:[#allocation5 + $0x4c0] ss:$16 sps:$4 sm:$0xff]  }
 0x11b   :  { %1717 = vmatprep.mubr.bf16.mxu0 %v6541_v0  ;;  %1830 = vmatprep.mubr.bf16.mxu1 %v6541_v0 }
 0x11c   :  { %2171 = vmatpush1.bf16.msra.mxu0 %v6201_v50  ;;  %2284 = vmatpush1.bf16.msra.mxu1 %v6204_v51  ;;  %v6257_v50 = vld [vmem:[#allocation5 + $0x5a4] ss:$16 sps:$4 sm:$0xff]   ;;  %v6260_v51 = vld [vmem:[#allocation5 + $0x5ac] ss:$16 sps:$4 sm:$0xff]  }
 0x11d   :  { %2172 = vmatprep.subr.bf16.mxu0 %v6209_v52  ;;  %2285 = vmatprep.subr.bf16.mxu1 %v6212_v43  ;;  %v6773_v52 = vld [vmem:[#allocation2 + $0x71] sm:$0xff]  ;;  %v6775_v43 = vld [vmem:[#allocation2 + $0x81] sm:$0xff] }
 0x120   :  { %2173 = vmatpush1.bf16.msra.mxu0 %v6207_v54  ;;  %2286 = vmatpush1.bf16.msra.mxu1 %v6210_v56  ;;  %v6255_v54 = vld [vmem:[#allocation5 + $0x5a0] ss:$16 sps:$4 sm:$0xff]   ;;  %v6258_v56 = vld [vmem:[#allocation5 + $0x5a8] ss:$16 sps:$4 sm:$0xff]  }
 0x121   :  { %2174 = vmatprep.subr.bf16.mxu0 %v6215_v59  ;;  %2287 = vmatprep.subr.bf16.mxu1 %v6218_v60  ;;  %v6263_v59 = vld [vmem:[#allocation5 + $0x5c4] ss:$16 sps:$4 sm:$0xff]   ;;  %v6266_v60 = vld [vmem:[#allocation5 + $0x5cc] ss:$16 sps:$4 sm:$0xff]  }
 0x122   :  { %1718 = vmatmul.mubr.bf16.gmra.mrb[12].mxu0 %v1457_v62  ;;  %1831 = vmatmul.mubr.bf16.gmra.mrb[12].mxu1 %v1457_v62  ;;  %v1964_v62 = vpack.c.bf16 %v6775_v43, %v6773_v52 }
 0x123   :  { %1727 = vmatprep.mubr.bf16.mxu0 %v6541_v0  ;;  %1840 = vmatprep.mubr.bf16.mxu1 %v6541_v0 }
 0x124   :  { %2175 = vmatpush1.bf16.msra.mxu0 %v6213_v55  ;;  %2288 = vmatpush1.bf16.msra.mxu1 %v6216_v63  ;;  %v6261_v55 = vld [vmem:[#allocation5 + $0x5c0] ss:$16 sps:$4 sm:$0xff]   ;;  %v6264_v63 = vld [vmem:[#allocation5 + $0x5c8] ss:$16 sps:$4 sm:$0xff]  }
 0x125   :  { %2176 = vmatprep.subr.bf16.mxu0 %v6221_v1  ;;  %2289 = vmatprep.subr.bf16.mxu1 %v6224_v2  ;;  %v6269_v1 = vld [vmem:[#allocation5 + $0x5e4] ss:$16 sps:$4 sm:$0xff]   ;;  %v6272_v2 = vld [vmem:[#allocation5 + $0x5ec] ss:$16 sps:$4 sm:$0xff]  }
 0x128   :  { %2177 = vmatpush1.bf16.msra.mxu0 %v6219_v3  ;;  %2290 = vmatpush1.bf16.msra.mxu1 %v6222_v4  ;;  %v1953_v3 = vld [vmem:[#allocation2 + $0xb1] sm:$0xff]  ;;  %v6781_v4 = vld [vmem:[#allocation2 + $0xc1] sm:$0xff] }
 0x129   :  { %2669 = vmatprep.subr.bf16.mxu0 %v6227_v61  ;;  %2782 = vmatprep.subr.bf16.mxu1 %v6230_v5  ;;  %v6267_v61 = vld [vmem:[#allocation5 + $0x5e0] ss:$16 sps:$4 sm:$0xff]   ;;  %v6270_v5 = vld [vmem:[#allocation5 + $0x5e8] ss:$16 sps:$4 sm:$0xff]  }
 0x12a   :  { %1728 = vmatmul.mubr.bf16.gmra.mrb[16].mxu0 %v6633_v15  ;;  %1841 = vmatmul.mubr.bf16.gmra.mrb[16].mxu1 %v6633_v15  ;;  %v6746_v15 = vld [vmem:[#allocation2 + $0x120] sm:$0xff] }
 0x12b   :  { %1737 = vmatprep.mubr.bf16.mxu0 %v6541_v0  ;;  %1850 = vmatprep.mubr.bf16.mxu1 %v6541_v0  ;;  %v1461_v17 = vpack.c.bf16 %v6746_v15, %v6652_v23  ;;  %v6757_v23 = vld [vmem:[#allocation2 + $0x41] sm:$0xff] }
 0x12c   :  { %v1962_v32 = vpack.c.bf16 %v6757_v23, %v6755_v16 }
 0x132   :  { %1738 = vmatmul.mubr.bf16.gmra.mrb[20].mxu0 %v1459_v6  ;;  %1851 = vmatmul.mubr.bf16.gmra.mrb[20].mxu1 %v1459_v6  ;;  %v6275_v6 = vld [vmem:[#allocation5 + $0x604] ss:$16 sps:$4 sm:$0xff]  }
 0x133   :  { %1747 = vmatprep.mubr.bf16.mxu0 %v6541_v0  ;;  %1860 = vmatprep.mubr.bf16.mxu1 %v6541_v0 }
 0x13a   :  { %1748 = vmatmul.mubr.bf16.gmra.mrb[24].mxu0 %v1460_v8  ;;  %1861 = vmatmul.mubr.bf16.gmra.mrb[24].mxu1 %v1460_v8  ;;  %v6278_v8 = vld [vmem:[#allocation5 + $0x60c] ss:$16 sps:$4 sm:$0xff]  }
 0x13b   :  { %1757 = vmatprep.mubr.bf16.mxu0 %v6541_v0  ;;  %1870 = vmatprep.mubr.bf16.mxu1 %v6541_v0 }
 0x142   :  { %1758 = vmatmul.mubr.bf16.gmra.mrb[28].mxu0 %v1461_v17  ;;  %1871 = vmatmul.mubr.bf16.gmra.mrb[28].mxu1 %v1461_v17  ;;  %v1965_v17 = vpack.c.bf16 %v6781_v4, %v1953_v3  ;;  %v6312_v3 = vld [vmem:[#allocation5 + $0x6c8] ss:$16 sps:$4 sm:$0xff]  }
 0x143   :  { %2194 = vmatprep.mubr.bf16.mxu0 %v6541_v0  ;;  %2307 = vmatprep.mubr.bf16.mxu1 %v6541_v0 }
 0x14a   :  { %2195 = vmatmul.mubr.bf16.vlgmr.msra.gmra.mrb[0].mxu0 %v1961_v20  ;;  %2308 = vmatmul.mubr.bf16.vlgmr.msra.gmra.mrb[0].mxu1 %v1961_v20  ;;  %v6788_v20 = vld [vmem:[#allocation2 + $0xe1] sm:$0xff] }
 0x14b   :  { %2670 = vmatpush1.bf16.msra.mxu0 %v6225_v22  ;;  %2783 = vmatpush1.bf16.msra.mxu1 %v6228_v10  ;;  %v1966_v22 = vpack.c.bf16 %v6788_v20, %v6786_v19  ;;  %v6794_v10 = vld [vmem:[#allocation2 + $0xf1] sm:$0xff] }
 0x14c   :  { %2204 = vmatprep.mubr.bf16.mxu0 %v6541_v0  ;;  %2317 = vmatprep.mubr.bf16.mxu1 %v6541_v0 }
 0x14d   :  { %2671 = vmatprep.subr.bf16.mxu0 %v6233_v11  ;;  %2784 = vmatprep.subr.bf16.mxu1 %v6236_v12  ;;  %v6796_v11 = vld [vmem:[#allocation2 + $0x101] sm:$0xff] }
 0x14e   :  { %v1967_v12 = vpack.c.bf16 %v6796_v11, %v6794_v10 }
 0x14f   :  { %2672 = vmatpush1.bf16.msra.mxu0 %v6231_v24  ;;  %2785 = vmatpush1.bf16.msra.mxu1 %v6234_v28  ;;  %v6802_v24 = vld [vmem:[#allocation2 + $0x111] sm:$0xff]  ;;  %v6804_v28 = vld [vmem:[#allocation2 + $0x121] sm:$0xff] }
 0x150   :  { %2673 = vmatprep.subr.bf16.mxu0 %v6239_v29  ;;  %2786 = vmatprep.subr.bf16.mxu1 %v6242_v30  ;;  %v1968_v29 = vpack.c.bf16 %v6804_v28, %v6802_v24  ;;  %v2468_v30 = vpack.c.bf16 %v6661_v33, %v6658_v26  ;;  %v2469_v26 = vpack.c.bf16 %v6671_v45, %v6663_v34  ;;  %v6285_v33 = vld [vmem:[#allocation5 + $0x640] ss:$16 sps:$4 sm:$0xff]   ;;  %v6299_v34 = vld [vmem:[#allocation5 + $0x684] ss:$16 sps:$4 sm:$0xff]   ;;  %v6302_v45 = vld [vmem:[#allocation5 + $0x68c] ss:$16 sps:$4 sm:$0xff]  }
 0x152   :  { %2205 = vmatmul.mubr.bf16.gmra.mrb[4].mxu0 %v1962_v32  ;;  %2318 = vmatmul.mubr.bf16.gmra.mrb[4].mxu1 %v1962_v32  ;;  %v6273_v32 = vld [vmem:[#allocation5 + $0x600] ss:$16 sps:$4 sm:$0xff]  }
 0x153   :  { %2214 = vmatprep.mubr.bf16.mxu0 %v6541_v0  ;;  %2327 = vmatprep.mubr.bf16.mxu1 %v6541_v0 }
 0x154   :  { %2674 = vmatpush1.bf16.msra.mxu0 %v6237_v35  ;;  %2787 = vmatpush1.bf16.msra.mxu1 %v6240_v36  ;;  %v6276_v35 = vld [vmem:[#allocation5 + $0x608] ss:$16 sps:$4 sm:$0xff]   ;;  %v6281_v36 = vld [vmem:[#allocation5 + $0x624] ss:$16 sps:$4 sm:$0xff]  }
 0x155   :  { %2675 = vmatprep.subr.bf16.mxu0 %v6245_v37  ;;  %2788 = vmatprep.subr.bf16.mxu1 %v6248_v38  ;;  %v6284_v37 = vld [vmem:[#allocation5 + $0x62c] ss:$16 sps:$4 sm:$0xff]   ;;  %v6279_v38 = vld [vmem:[#allocation5 + $0x620] ss:$16 sps:$4 sm:$0xff]  }
 0x158   :  { %2676 = vmatpush1.bf16.msra.mxu0 %v6243_v41  ;;  %2789 = vmatpush1.bf16.msra.mxu1 %v6246_v42  ;;  %v6282_v41 = vld [vmem:[#allocation5 + $0x628] ss:$16 sps:$4 sm:$0xff]   ;;  %v6287_v42 = vld [vmem:[#allocation5 + $0x644] ss:$16 sps:$4 sm:$0xff]  }
 0x159   :  { %2677 = vmatprep.subr.bf16.mxu0 %v6251_v31  ;;  %2790 = vmatprep.subr.bf16.mxu1 %v6254_v44  ;;  %v6290_v31 = vld [vmem:[#allocation5 + $0x64c] ss:$16 sps:$4 sm:$0xff]   ;;  %v6288_v44 = vld [vmem:[#allocation5 + $0x648] ss:$16 sps:$4 sm:$0xff]  }
 0x15a   :  { %2215 = vmatmul.mubr.bf16.gmra.mrb[8].mxu0 %v1963_v47  ;;  %2328 = vmatmul.mubr.bf16.gmra.mrb[8].mxu1 %v1963_v47  ;;  %v6293_v47 = vld [vmem:[#allocation5 + $0x664] ss:$16 sps:$4 sm:$0xff]  }
 0x15b   :  { %2224 = vmatprep.mubr.bf16.mxu0 %v6541_v0  ;;  %2337 = vmatprep.mubr.bf16.mxu1 %v6541_v0 }
 0x15c   :  { %2678 = vmatpush1.bf16.msra.mxu0 %v6249_v48  ;;  %2791 = vmatpush1.bf16.msra.mxu1 %v6252_v49  ;;  %v6296_v48 = vld [vmem:[#allocation5 + $0x66c] ss:$16 sps:$4 sm:$0xff]   ;;  %v6291_v49 = vld [vmem:[#allocation5 + $0x660] ss:$16 sps:$4 sm:$0xff]  }
 0x15d   :  { %2679 = vmatprep.subr.bf16.mxu0 %v6257_v50  ;;  %2792 = vmatprep.subr.bf16.mxu1 %v6260_v51  ;;  %v6294_v50 = vld [vmem:[#allocation5 + $0x668] ss:$16 sps:$4 sm:$0xff]   ;;  %v2470_v51 = vpack.c.bf16 %v6679_v57, %v6673_v46  ;;  %v6311_v57 = vld [vmem:[#allocation5 + $0x6c4] ss:$16 sps:$4 sm:$0xff]  }
 0x15e   :  { %v6306_v46 = vld [vmem:[#allocation5 + $0x6a8] ss:$16 sps:$4 sm:$0xff]  }
 0x160   :  { %2680 = vmatpush1.bf16.msra.mxu0 %v6255_v54  ;;  %2793 = vmatpush1.bf16.msra.mxu1 %v6258_v56  ;;  %v6297_v54 = vld [vmem:[#allocation5 + $0x680] ss:$16 sps:$4 sm:$0xff]   ;;  %v6300_v56 = vld [vmem:[#allocation5 + $0x688] ss:$16 sps:$4 sm:$0xff]  }
 0x161   :  { %2681 = vmatprep.subr.bf16.mxu0 %v6263_v59  ;;  %2794 = vmatprep.subr.bf16.mxu1 %v6266_v60  ;;  %v6305_v59 = vld [vmem:[#allocation5 + $0x6a4] ss:$16 sps:$4 sm:$0xff]   ;;  %v6308_v60 = vld [vmem:[#allocation5 + $0x6ac] ss:$16 sps:$4 sm:$0xff]  }
 0x162   :  { %2225 = vmatmul.mubr.bf16.gmra.mrb[12].mxu0 %v1964_v62  ;;  %2338 = vmatmul.mubr.bf16.gmra.mrb[12].mxu1 %v1964_v62  ;;  %v6822_v62 = vld [vmem:[#allocation2 + $0x82] sm:$0xff] }
 0x163   :  { %2234 = vmatprep.mubr.bf16.mxu0 %v6541_v0  ;;  %2347 = vmatprep.mubr.bf16.mxu1 %v6541_v0 }
 0x164   :  { %2682 = vmatpush1.bf16.msra.mxu0 %v6261_v55  ;;  %2795 = vmatpush1.bf16.msra.mxu1 %v6264_v63  ;;  %v6303_v55 = vld [vmem:[#allocation5 + $0x6a0] ss:$16 sps:$4 sm:$0xff]   ;;  %v6314_v63 = vld [vmem:[#allocation5 + $0x6cc] ss:$16 sps:$4 sm:$0xff]  }
 0x165   :  { %2683 = vmatprep.subr.bf16.mxu0 %v6269_v1  ;;  %2796 = vmatprep.subr.bf16.mxu1 %v6272_v2  ;;  %v2471_v1 = vpack.c.bf16 %v6822_v62, %v6681_v58  ;;  %v6309_v2 = vld [vmem:[#allocation5 + $0x6c0] ss:$16 sps:$4 sm:$0xff]   ;;  %v6323_v58 = vld [vmem:[#allocation5 + $0x704] ss:$16 sps:$4 sm:$0xff]  }
 0x168   :  { %2684 = vmatpush1.bf16.msra.mxu0 %v6267_v61  ;;  %2797 = vmatpush1.bf16.msra.mxu1 %v6270_v5  ;;  %v6317_v61 = vld [vmem:[#allocation5 + $0x6e4] ss:$16 sps:$4 sm:$0xff]   ;;  %v6320_v5 = vld [vmem:[#allocation5 + $0x6ec] ss:$16 sps:$4 sm:$0xff]  }
 0x169   :  { %3177 = vmatprep.subr.bf16.mxu0 %v6275_v6  ;;  %3290 = vmatprep.subr.bf16.mxu1 %v6278_v8  ;;  %v6315_v6 = vld [vmem:[#allocation5 + $0x6e0] ss:$16 sps:$4 sm:$0xff]   ;;  %v6318_v8 = vld [vmem:[#allocation5 + $0x6e8] ss:$16 sps:$4 sm:$0xff]  }
 0x16a   :  { %2235 = vmatmul.mubr.bf16.gmra.mrb[16].mxu0 %v1965_v17  ;;  %2348 = vmatmul.mubr.bf16.gmra.mrb[16].mxu1 %v1965_v17  ;;  %v6326_v17 = vld [vmem:[#allocation5 + $0x70c] ss:$16 sps:$4 sm:$0xff]  }
 0x16b   :  { %2244 = vmatprep.mubr.bf16.mxu0 %v6541_v0  ;;  %2357 = vmatprep.mubr.bf16.mxu1 %v6541_v0 }
 0x172   :  { %2245 = vmatmul.mubr.bf16.gmra.mrb[20].mxu0 %v1966_v22  ;;  %2358 = vmatmul.mubr.bf16.gmra.mrb[20].mxu1 %v1966_v22  ;;  %v2472_v22 = vpack.c.bf16 %v6692_v13, %v6687_v7  ;;  %v2474_v7 = vpack.c.bf16 %v6708_v25, %v6702_v21  ;;  %v6840_v13 = vld [vmem:[#allocation2 + $0x122] sm:$0xff] }
 0x173   :  { %2254 = vmatprep.mubr.bf16.mxu0 %v6541_v0  ;;  %2367 = vmatprep.mubr.bf16.mxu1 %v6541_v0  ;;  %v6321_v25 = vld [vmem:[#allocation5 + $0x700] ss:$16 sps:$4 sm:$0xff]  }
 0x17a   :  { %2255 = vmatmul.mubr.bf16.gmra.mrb[24].mxu0 %v1967_v12  ;;  %2368 = vmatmul.mubr.bf16.gmra.mrb[24].mxu1 %v1967_v12  ;;  %v2473_v12 = vpack.c.bf16 %v6700_v18, %v6694_v14  ;;  %v2475_v14 = vpack.c.bf16 %v6840_v13, %v6710_v27  ;;  %v2960_v18 = vld [vmem:[#allocation2 + $0x20] sm:$0xff] }
 0x17b   :  { %2264 = vmatprep.mubr.bf16.mxu0 %v6541_v0  ;;  %2377 = vmatprep.mubr.bf16.mxu1 %v6541_v0  ;;  %v6327_v27 = vld [vmem:[#allocation5 + $0x720] ss:$16 sps:$4 sm:$0xff]  }
 0x182   :  { %2265 = vmatmul.mubr.bf16.gmra.mrb[28].mxu0 %v1968_v29  ;;  %2378 = vmatmul.mubr.bf16.gmra.mrb[28].mxu1 %v1968_v29  ;;  %v2961_v29 = vld [vmem:[#allocation2 + $0x30] sm:$0xff] }
 0x183   :  { %2701 = vmatprep.mubr.bf16.mxu0 %v6541_v0  ;;  %2814 = vmatprep.mubr.bf16.mxu1 %v6541_v0  ;;  %v2976_v21 = vpack.c.bf16 %v2961_v29, %v2960_v18  ;;  %v2970_v18 = vld [vmem:[#allocation2 + $0xe0] sm:$0xff]  ;;  %v2971_v29 = vld [vmem:[#allocation2 + $0xf0] sm:$0xff] }
 0x18a   :  { %2702 = vmatmul.mubr.bf16.vlgmr.msra.gmra.mrb[0].mxu0 %v2468_v30  ;;  %2815 = vmatmul.mubr.bf16.vlgmr.msra.gmra.mrb[0].mxu1 %v2468_v30  ;;  %v6324_v30 = vld [vmem:[#allocation5 + $0x708] ss:$16 sps:$4 sm:$0xff]  }
 0x18b   :  { %3178 = vmatpush1.bf16.msra.mxu0 %v6273_v32  ;;  %3291 = vmatpush1.bf16.msra.mxu1 %v6276_v35  ;;  %v6329_v32 = vld [vmem:[#allocation5 + $0x724] ss:$16 sps:$4 sm:$0xff]   ;;  %v6332_v35 = vld [vmem:[#allocation5 + $0x72c] ss:$16 sps:$4 sm:$0xff]  }
 0x18c   :  { %2711 = vmatprep.mubr.bf16.mxu0 %v6541_v0  ;;  %2824 = vmatprep.mubr.bf16.mxu1 %v6541_v0 }
 0x18d   :  { %3179 = vmatprep.subr.bf16.mxu0 %v6281_v36  ;;  %3292 = vmatprep.subr.bf16.mxu1 %v6284_v37  ;;  %v2962_v36 = vld [vmem:[#allocation2 + $0x40] sm:$0xff]  ;;  %v2963_v37 = vld [vmem:[#allocation2 + $0x50] sm:$0xff] }
 0x18f   :  { %3180 = vmatpush1.bf16.msra.mxu0 %v6279_v38  ;;  %3293 = vmatpush1.bf16.msra.mxu1 %v6282_v41  ;;  %v6330_v38 = vld [vmem:[#allocation5 + $0x728] ss:$16 sps:$4 sm:$0xff]   ;;  %v6335_v41 = vld [vmem:[#allocation5 + $0x744] ss:$16 sps:$4 sm:$0xff]  }
 0x190   :  { %3181 = vmatprep.subr.bf16.mxu0 %v6287_v42  ;;  %3294 = vmatprep.subr.bf16.mxu1 %v6290_v31  ;;  %v6338_v42 = vld [vmem:[#allocation5 + $0x74c] ss:$16 sps:$4 sm:$0xff]   ;;  %v2977_v31 = vpack.c.bf16 %v2963_v37, %v2962_v36  ;;  %v3483_v37 = vpack.c.bf16 %v6755_v16, %v6752_v9  ;;  %v3484_v9 = vpack.c.bf16 %v6765_v39, %v6757_v23  ;;  %v6381_v16 = vld [vmem:[#allocation5 + $0x840] ss:$16 sps:$4 sm:$0xff]   ;;  %v6395_v23 = vld [vmem:[#allocation5 + $0x884] ss:$16 sps:$4 sm:$0xff]  }
 0x191   :  { %v6398_v39 = vld [vmem:[#allocation5 + $0x88c] ss:$16 sps:$4 sm:$0xff]  }
 0x192   :  { %2712 = vmatmul.mubr.bf16.gmra.mrb[4].mxu0 %v2469_v26  ;;  %2825 = vmatmul.mubr.bf16.gmra.mrb[4].mxu1 %v2469_v26  ;;  %v6333_v26 = vld [vmem:[#allocation5 + $0x740] ss:$16 sps:$4 sm:$0xff]  }
 0x193   :  { %2721 = vmatprep.mubr.bf16.mxu0 %v6541_v0  ;;  %2834 = vmatprep.mubr.bf16.mxu1 %v6541_v0 }
 0x194   :  { %3182 = vmatpush1.bf16.msra.mxu0 %v6285_v33  ;;  %3295 = vmatpush1.bf16.msra.mxu1 %v6288_v44  ;;  %v6336_v33 = vld [vmem:[#allocation5 + $0x748] ss:$16 sps:$4 sm:$0xff]   ;;  %v6341_v44 = vld [vmem:[#allocation5 + $0x764] ss:$16 sps:$4 sm:$0xff]  }
 0x195   :  { %3183 = vmatprep.subr.bf16.mxu0 %v6293_v47  ;;  %3296 = vmatprep.subr.bf16.mxu1 %v6296_v48  ;;  %v6344_v47 = vld [vmem:[#allocation5 + $0x76c] ss:$16 sps:$4 sm:$0xff]   ;;  %v2964_v48 = vld [vmem:[#allocation2 + $0x60] sm:$0xff] }
 0x198   :  { %3184 = vmatpush1.bf16.msra.mxu0 %v6291_v49  ;;  %3297 = vmatpush1.bf16.msra.mxu1 %v6294_v50  ;;  %v2965_v49 = vld [vmem:[#allocation2 + $0x70] sm:$0xff] }
 0x199   :  { %3185 = vmatprep.subr.bf16.mxu0 %v6299_v34  ;;  %3298 = vmatprep.subr.bf16.mxu1 %v6302_v45  ;;  %v6339_v50 = vld [vmem:[#allocation5 + $0x760] ss:$16 sps:$4 sm:$0xff]   ;;  %v6342_v34 = vld [vmem:[#allocation5 + $0x768] ss:$16 sps:$4 sm:$0xff]   ;;  %v6347_v45 = vld [vmem:[#allocation5 + $0x784] ss:$16 sps:$4 sm:$0xff]  }
 0x19a   :  { %2722 = vmatmul.mubr.bf16.gmra.mrb[8].mxu0 %v2470_v51  ;;  %2835 = vmatmul.mubr.bf16.gmra.mrb[8].mxu1 %v2470_v51  ;;  %v6350_v51 = vld [vmem:[#allocation5 + $0x78c] ss:$16 sps:$4 sm:$0xff]  }
 0x19b   :  { %2731 = vmatprep.mubr.bf16.mxu0 %v6541_v0  ;;  %2844 = vmatprep.mubr.bf16.mxu1 %v6541_v0 }
 0x19c   :  { %3186 = vmatpush1.bf16.msra.mxu0 %v6297_v54  ;;  %3299 = vmatpush1.bf16.msra.mxu1 %v6300_v56  ;;  %v2978_v54 = vpack.c.bf16 %v2965_v49, %v2964_v48  ;;  %v6345_v56 = vld [vmem:[#allocation5 + $0x780] ss:$16 sps:$4 sm:$0xff]   ;;  %v6392_v48 = vld [vmem:[#allocation5 + $0x86c] ss:$16 sps:$4 sm:$0xff]  }
 0x19d   :  { %3187 = vmatprep.subr.bf16.mxu0 %v6305_v59  ;;  %3300 = vmatprep.subr.bf16.mxu1 %v6308_v60  ;;  %v6348_v59 = vld [vmem:[#allocation5 + $0x788] ss:$16 sps:$4 sm:$0xff]   ;;  %v6353_v60 = vld [vmem:[#allocation5 + $0x7a4] ss:$16 sps:$4 sm:$0xff]   ;;  %v6387_v49 = vld [vmem:[#allocation5 + $0x860] ss:$16 sps:$4 sm:$0xff]  }
 0x1a0   :  { %3188 = vmatpush1.bf16.msra.mxu0 %v6303_v55  ;;  %3301 = vmatpush1.bf16.msra.mxu1 %v6306_v46  ;;  %v6356_v55 = vld [vmem:[#allocation5 + $0x7ac] ss:$16 sps:$4 sm:$0xff]   ;;  %v2967_v46 = vld [vmem:[#allocation2 + $0x90] sm:$0xff] }
 0x1a1   :  { %3189 = vmatprep.subr.bf16.mxu0 %v6311_v57  ;;  %3302 = vmatprep.subr.bf16.mxu1 %v6314_v63  ;;  %v6351_v57 = vld [vmem:[#allocation5 + $0x7a0] ss:$16 sps:$4 sm:$0xff]   ;;  %v6354_v63 = vld [vmem:[#allocation5 + $0x7a8] ss:$16 sps:$4 sm:$0xff]  }
 0x1a2   :  { %2732 = vmatmul.mubr.bf16.gmra.mrb[12].mxu0 %v2471_v1  ;;  %2845 = vmatmul.mubr.bf16.gmra.mrb[12].mxu1 %v2471_v1  ;;  %v6359_v1 = vld [vmem:[#allocation5 + $0x7c4] ss:$16 sps:$4 sm:$0xff]  }
 0x1a3   :  { %2741 = vmatprep.mubr.bf16.mxu0 %v6541_v0  ;;  %2854 = vmatprep.mubr.bf16.mxu1 %v6541_v0 }
 0x1a4   :  { %3190 = vmatpush1.bf16.msra.mxu0 %v6309_v2  ;;  %3303 = vmatpush1.bf16.msra.mxu1 %v6312_v3  ;;  %v6362_v2 = vld [vmem:[#allocation5 + $0x7cc] ss:$16 sps:$4 sm:$0xff]   ;;  %v2979_v3 = vpack.c.bf16 %v2967_v46, %v6728_v53  ;;  %v6366_v53 = vld [vmem:[#allocation5 + $0x7e8] ss:$16 sps:$4 sm:$0xff]  }
 0x1a5   :  { %3191 = vmatprep.subr.bf16.mxu0 %v6317_v61  ;;  %3304 = vmatprep.subr.bf16.mxu1 %v6320_v5  ;;  %v6357_v61 = vld [vmem:[#allocation5 + $0x7c0] ss:$16 sps:$4 sm:$0xff]   ;;  %v6360_v5 = vld [vmem:[#allocation5 + $0x7c8] ss:$16 sps:$4 sm:$0xff]  }
 0x1a8   :  { %3192 = vmatpush1.bf16.msra.mxu0 %v6315_v6  ;;  %3305 = vmatpush1.bf16.msra.mxu1 %v6318_v8  ;;  %v6365_v6 = vld [vmem:[#allocation5 + $0x7e4] ss:$16 sps:$4 sm:$0xff]   ;;  %v6368_v8 = vld [vmem:[#allocation5 + $0x7ec] ss:$16 sps:$4 sm:$0xff]  }
 0x1a9   :  { %3684 = vmatprep.subr.bf16.mxu0 %v6323_v58  ;;  %3797 = vmatprep.subr.bf16.mxu1 %v6326_v17  ;;  %v2968_v58 = vld [vmem:[#allocation2 + $0xc0] sm:$0xff]  ;;  %v2969_v17 = vld [vmem:[#allocation2 + $0xd0] sm:$0xff] }
 0x1aa   :  { %2742 = vmatmul.mubr.bf16.gmra.mrb[16].mxu0 %v2472_v22  ;;  %2855 = vmatmul.mubr.bf16.gmra.mrb[16].mxu1 %v2472_v22  ;;  %v6363_v22 = vld [vmem:[#allocation5 + $0x7e0] ss:$16 sps:$4 sm:$0xff]  }
 0x1ab   :  { %2751 = vmatprep.mubr.bf16.mxu0 %v6541_v0  ;;  %2864 = vmatprep.mubr.bf16.mxu1 %v6541_v0 }
 0x1b2   :  { %2752 = vmatmul.mubr.bf16.gmra.mrb[20].mxu0 %v2473_v12  ;;  %2865 = vmatmul.mubr.bf16.gmra.mrb[20].mxu1 %v2473_v12  ;;  %v6371_v12 = vld [vmem:[#allocation5 + $0x804] ss:$16 sps:$4 sm:$0xff]  }
 0x1b3   :  { %2761 = vmatprep.mubr.bf16.mxu0 %v6541_v0  ;;  %2874 = vmatprep.mubr.bf16.mxu1 %v6541_v0 }
 0x1ba   :  { %2762 = vmatmul.mubr.bf16.gmra.mrb[24].mxu0 %v2474_v7  ;;  %2875 = vmatmul.mubr.bf16.gmra.mrb[24].mxu1 %v2474_v7  ;;  %v6374_v7 = vld [vmem:[#allocation5 + $0x80c] ss:$16 sps:$4 sm:$0xff]  }
 0x1bb   :  { %2771 = vmatprep.mubr.bf16.mxu0 %v6541_v0  ;;  %2884 = vmatprep.mubr.bf16.mxu1 %v6541_v0 }
 0x1c2   :  { %2772 = vmatmul.mubr.bf16.gmra.mrb[28].mxu0 %v2475_v14  ;;  %2885 = vmatmul.mubr.bf16.gmra.mrb[28].mxu1 %v2475_v14  ;;  %v2980_v14 = vpack.c.bf16 %v2969_v17, %v2968_v58  ;;  %v3979_v17 = vld [vmem:[#allocation2 + $0x72] sm:$0xff] }
 0x1c3   :  { %3209 = vmatprep.mubr.bf16.mxu0 %v6541_v0  ;;  %3322 = vmatprep.mubr.bf16.mxu1 %v6541_v0 }
 0x1ca   :  { %3210 = vmatmul.mubr.bf16.vlgmr.msra.gmra.mrb[0].mxu0 %v2976_v21  ;;  %3323 = vmatmul.mubr.bf16.vlgmr.msra.gmra.mrb[0].mxu1 %v2976_v21  ;;  %v2981_v21 = vpack.c.bf16 %v2971_v29, %v2970_v18  ;;  %v3984_v29 = vld [vmem:[#allocation2 + $0xe2] sm:$0xff] }
 0x1cb   :  { %3685 = vmatpush1.bf16.msra.mxu0 %v6321_v25  ;;  %3798 = vmatpush1.bf16.msra.mxu1 %v6324_v30  ;;  %v2972_v25 = vld [vmem:[#allocation2 + $0x100] sm:$0xff]  ;;  %v2973_v30 = vld [vmem:[#allocation2 + $0x110] sm:$0xff] }
 0x1cc   :  { %3219 = vmatprep.mubr.bf16.mxu0 %v6541_v0  ;;  %3332 = vmatprep.mubr.bf16.mxu1 %v6541_v0 }
 0x1cd   :  { %3686 = vmatprep.subr.bf16.mxu0 %v6329_v32  ;;  %3799 = vmatprep.subr.bf16.mxu1 %v6332_v35  ;;  %v2982_v32 = vpack.c.bf16 %v2973_v30, %v2972_v25  ;;  %v2975_v35 = vld [vmem:[#allocation2 + $0x130] sm:$0xff] }
 0x1ce   :  { %v2983_v36 = vpack.c.bf16 %v2975_v35, %v6746_v15  ;;  %v6383_v15 = vld [vmem:[#allocation5 + $0x844] ss:$16 sps:$4 sm:$0xff]  }
 0x1cf   :  { %3687 = vmatpush1.bf16.msra.mxu0 %v6327_v27  ;;  %3800 = vmatpush1.bf16.msra.mxu1 %v6330_v38  ;;  %v6369_v27 = vld [vmem:[#allocation5 + $0x800] ss:$16 sps:$4 sm:$0xff]   ;;  %v6372_v38 = vld [vmem:[#allocation5 + $0x808] ss:$16 sps:$4 sm:$0xff]  }
 0x1d0   :  { %3688 = vmatprep.subr.bf16.mxu0 %v6335_v41  ;;  %3801 = vmatprep.subr.bf16.mxu1 %v6338_v42  ;;  %v6377_v41 = vld [vmem:[#allocation5 + $0x824] ss:$16 sps:$4 sm:$0xff]   ;;  %v6380_v42 = vld [vmem:[#allocation5 + $0x82c] ss:$16 sps:$4 sm:$0xff]  }
 0x1d1   :  { %v3987_v30 = vld [vmem:[#allocation2 + $0x112] sm:$0xff] }
 0x1d2   :  { %3220 = vmatmul.mubr.bf16.gmra.mrb[4].mxu0 %v2977_v31  ;;  %3333 = vmatmul.mubr.bf16.gmra.mrb[4].mxu1 %v2977_v31  ;;  %v6375_v31 = vld [vmem:[#allocation5 + $0x820] ss:$16 sps:$4 sm:$0xff]  }
 0x1d3   :  { %3229 = vmatprep.mubr.bf16.mxu0 %v6541_v0  ;;  %3342 = vmatprep.mubr.bf16.mxu1 %v6541_v0  ;;  %v3989_v35 = vld [vmem:[#allocation2 + $0x132] sm:$0xff] }
 0x1d4   :  { %3689 = vmatpush1.bf16.msra.mxu0 %v6333_v26  ;;  %3802 = vmatpush1.bf16.msra.mxu1 %v6336_v33  ;;  %v6378_v26 = vld [vmem:[#allocation5 + $0x828] ss:$16 sps:$4 sm:$0xff]   ;;  %v6386_v33 = vld [vmem:[#allocation5 + $0x84c] ss:$16 sps:$4 sm:$0xff]  }
 0x1d5   :  { %3690 = vmatprep.subr.bf16.mxu0 %v6341_v44  ;;  %3803 = vmatprep.subr.bf16.mxu1 %v6344_v47  ;;  %v6384_v44 = vld [vmem:[#allocation5 + $0x848] ss:$16 sps:$4 sm:$0xff]   ;;  %v6389_v47 = vld [vmem:[#allocation5 + $0x864] ss:$16 sps:$4 sm:$0xff]  }
 0x1d8   :  { %3691 = vmatpush1.bf16.msra.mxu0 %v6339_v50  ;;  %3804 = vmatpush1.bf16.msra.mxu1 %v6342_v34  ;;  %v6390_v50 = vld [vmem:[#allocation5 + $0x868] ss:$16 sps:$4 sm:$0xff]   ;;  %v3485_v34 = vpack.c.bf16 %v6773_v52, %v6767_v40  ;;  %v6407_v40 = vld [vmem:[#allocation5 + $0x8c4] ss:$16 sps:$4 sm:$0xff]   ;;  %v6410_v52 = vld [vmem:[#allocation5 + $0x8cc] ss:$16 sps:$4 sm:$0xff]  }
 0x1d9   :  { %3692 = vmatprep.subr.bf16.mxu0 %v6347_v45  ;;  %3805 = vmatprep.subr.bf16.mxu1 %v6350_v51  ;;  %v6393_v45 = vld [vmem:[#allocation5 + $0x880] ss:$16 sps:$4 sm:$0xff]   ;;  %v6396_v51 = vld [vmem:[#allocation5 + $0x888] ss:$16 sps:$4 sm:$0xff]  }
 0x1da   :  { %3230 = vmatmul.mubr.bf16.gmra.mrb[8].mxu0 %v2978_v54  ;;  %3343 = vmatmul.mubr.bf16.gmra.mrb[8].mxu1 %v2978_v54  ;;  %v6401_v54 = vld [vmem:[#allocation5 + $0x8a4] ss:$16 sps:$4 sm:$0xff]  }
 0x1db   :  { %3239 = vmatprep.mubr.bf16.mxu0 %v6541_v0  ;;  %3352 = vmatprep.mubr.bf16.mxu1 %v6541_v0 }
 0x1dc   :  { %3693 = vmatpush1.bf16.msra.mxu0 %v6345_v56  ;;  %3806 = vmatpush1.bf16.msra.mxu1 %v6348_v59  ;;  %v6404_v56 = vld [vmem:[#allocation5 + $0x8ac] ss:$16 sps:$4 sm:$0xff]   ;;  %v3474_v59 = vld [vmem:[#allocation2 + $0x91] sm:$0xff] }
 0x1dd   :  { %3694 = vmatprep.subr.bf16.mxu0 %v6353_v60  ;;  %3807 = vmatprep.subr.bf16.mxu1 %v6356_v55  ;;  %v6399_v60 = vld [vmem:[#allocation5 + $0x8a0] ss:$16 sps:$4 sm:$0xff]   ;;  %v6402_v55 = vld [vmem:[#allocation5 + $0x8a8] ss:$16 sps:$4 sm:$0xff]   ;;  %v3486_v46 = vpack.c.bf16 %v3474_v59, %v6775_v43  ;;  %v3487_v43 = vpack.c.bf16 %v6786_v19, %v6781_v4  ;;  %v3489_v4 = vpack.c.bf16 %v6802_v24, %v6796_v11 }
 0x1de   :  { %v3482_v19 = vld [vmem:[#allocation2 + $0x131] sm:$0xff]  ;;  %v3976_v11 = vld [vmem:[#allocation2 + $0x42] sm:$0xff] }
 0x1df   :  { %v3977_v24 = vld [vmem:[#allocation2 + $0x52] sm:$0xff] }
 0x1e0   :  { %3695 = vmatpush1.bf16.msra.mxu0 %v6351_v57  ;;  %3808 = vmatpush1.bf16.msra.mxu1 %v6354_v63  ;;  %v6405_v57 = vld [vmem:[#allocation5 + $0x8c0] ss:$16 sps:$4 sm:$0xff]   ;;  %v6408_v63 = vld [vmem:[#allocation5 + $0x8c8] ss:$16 sps:$4 sm:$0xff]   ;;  %v3991_v58 = vpack.c.bf16 %v3977_v24, %v3976_v11 }
 0x1e1   :  { %3696 = vmatprep.subr.bf16.mxu0 %v6359_v1  ;;  %3809 = vmatprep.subr.bf16.mxu1 %v6362_v2  ;;  %v6413_v1 = vld [vmem:[#allocation5 + $0x8e4] ss:$16 sps:$4 sm:$0xff]   ;;  %v6416_v2 = vld [vmem:[#allocation5 + $0x8ec] ss:$16 sps:$4 sm:$0xff]  }
 0x1e2   :  { %3240 = vmatmul.mubr.bf16.gmra.mrb[12].mxu0 %v2979_v3  ;;  %3353 = vmatmul.mubr.bf16.gmra.mrb[12].mxu1 %v2979_v3  ;;  %v6411_v3 = vld [vmem:[#allocation5 + $0x8e0] ss:$16 sps:$4 sm:$0xff]  }
 0x1e3   :  { %3249 = vmatprep.mubr.bf16.mxu0 %v6541_v0  ;;  %3362 = vmatprep.mubr.bf16.mxu1 %v6541_v0 }
 0x1e4   :  { %3697 = vmatpush1.bf16.msra.mxu0 %v6357_v61  ;;  %3810 = vmatpush1.bf16.msra.mxu1 %v6360_v5  ;;  %v6414_v61 = vld [vmem:[#allocation5 + $0x8e8] ss:$16 sps:$4 sm:$0xff]   ;;  %v3488_v5 = vpack.c.bf16 %v6794_v10, %v6788_v20 }
 0x1e5   :  { %3698 = vmatprep.subr.bf16.mxu0 %v6365_v6  ;;  %3811 = vmatprep.subr.bf16.mxu1 %v6368_v8  ;;  %v3490_v6 = vpack.c.bf16 %v3482_v19, %v6804_v28  ;;  %v3974_v20 = vld [vmem:[#allocation2 + $0x22] sm:$0xff]  ;;  %v3975_v10 = vld [vmem:[#allocation2 + $0x32] sm:$0xff] }
 0x1e6   :  { %v3990_v8 = vpack.c.bf16 %v3975_v10, %v3974_v20  ;;  %v3978_v28 = vld [vmem:[#allocation2 + $0x62] sm:$0xff] }
 0x1e8   :  { %3699 = vmatpush1.bf16.msra.mxu0 %v6363_v22  ;;  %3812 = vmatpush1.bf16.msra.mxu1 %v6366_v53  ;;  %v3992_v22 = vpack.c.bf16 %v3979_v17, %v3978_v28  ;;  %v3981_v53 = vld [vmem:[#allocation2 + $0x92] sm:$0xff] }
 0x1e9   :  { %4191 = vmatprep.subr.bf16.mxu0 %v6371_v12  ;;  %4304 = vmatprep.subr.bf16.mxu1 %v6374_v7  ;;  %v3993_v12 = vpack.c.bf16 %v3981_v53, %v6822_v62  ;;  %v3982_v7 = vld [vmem:[#allocation2 + $0xc2] sm:$0xff] }
 0x1ea   :  { %3250 = vmatmul.mubr.bf16.gmra.mrb[16].mxu0 %v2980_v14  ;;  %3363 = vmatmul.mubr.bf16.gmra.mrb[16].mxu1 %v2980_v14  ;;  %v3983_v14 = vld [vmem:[#allocation2 + $0xd2] sm:$0xff]  ;;  %v3986_v62 = vld [vmem:[#allocation2 + $0x102] sm:$0xff] }
 0x1eb   :  { %3259 = vmatprep.mubr.bf16.mxu0 %v6541_v0  ;;  %3372 = vmatprep.mubr.bf16.mxu1 %v6541_v0  ;;  %v3994_v18 = vpack.c.bf16 %v3983_v14, %v3982_v7 }
 0x1f2   :  { %3260 = vmatmul.mubr.bf16.gmra.mrb[20].mxu0 %v2981_v21  ;;  %3373 = vmatmul.mubr.bf16.gmra.mrb[20].mxu1 %v2981_v21  ;;  %v3985_v21 = vld [vmem:[#allocation2 + $0xf2] sm:$0xff] }
 0x1f3   :  { %3269 = vmatprep.mubr.bf16.mxu0 %v6541_v0  ;;  %3382 = vmatprep.mubr.bf16.mxu1 %v6541_v0  ;;  %v3995_v25 = vpack.c.bf16 %v3985_v21, %v3984_v29 }
 0x1fa   :  { %3270 = vmatmul.mubr.bf16.gmra.mrb[24].mxu0 %v2982_v32  ;;  %3383 = vmatmul.mubr.bf16.gmra.mrb[24].mxu1 %v2982_v32  ;;  %v3996_v32 = vpack.c.bf16 %v3987_v30, %v3986_v62 }
 0x1fb   :  { %3279 = vmatprep.mubr.bf16.mxu0 %v6541_v0  ;;  %3392 = vmatprep.mubr.bf16.mxu1 %v6541_v0 }
 0x202   :  { %3280 = vmatmul.mubr.bf16.gmra.mrb[28].mxu0 %v2983_v36  ;;  %3393 = vmatmul.mubr.bf16.gmra.mrb[28].mxu1 %v2983_v36  ;;  %v3997_v36 = vpack.c.bf16 %v3989_v35, %v6840_v13 }
 0x203   :  { %3716 = vmatprep.mubr.bf16.mxu0 %v6541_v0  ;;  %3829 = vmatprep.mubr.bf16.mxu1 %v6541_v0 }
 0x20a   :  { %3717 = vmatmul.mubr.bf16.vlgmr.msra.gmra.mrb[0].mxu0 %v3483_v37  ;;  %3830 = vmatmul.mubr.bf16.vlgmr.msra.gmra.mrb[0].mxu1 %v3483_v37 }
 0x20b   :  { %4192 = vmatpush1.bf16.msra.mxu0 %v6369_v27  ;;  %4305 = vmatpush1.bf16.msra.mxu1 %v6372_v38 }
 0x20c   :  { %3726 = vmatprep.mubr.bf16.mxu0 %v6541_v0  ;;  %3839 = vmatprep.mubr.bf16.mxu1 %v6541_v0 }
 0x20d   :  { %4193 = vmatprep.subr.bf16.mxu0 %v6377_v41  ;;  %4306 = vmatprep.subr.bf16.mxu1 %v6380_v42 }
 0x20f   :  { %4194 = vmatpush1.bf16.msra.mxu0 %v6375_v31  ;;  %4307 = vmatpush1.bf16.msra.mxu1 %v6378_v26 }
 0x210   :  { %4195 = vmatprep.subr.bf16.mxu0 %v6383_v15  ;;  %4308 = vmatprep.subr.bf16.mxu1 %v6386_v33 }
 0x212   :  { %3727 = vmatmul.mubr.bf16.gmra.mrb[4].mxu0 %v3484_v9  ;;  %3840 = vmatmul.mubr.bf16.gmra.mrb[4].mxu1 %v3484_v9 }
 0x213   :  { %3736 = vmatprep.mubr.bf16.mxu0 %v6541_v0  ;;  %3849 = vmatprep.mubr.bf16.mxu1 %v6541_v0 }
 0x214   :  { %4196 = vmatpush1.bf16.msra.mxu0 %v6381_v16  ;;  %4309 = vmatpush1.bf16.msra.mxu1 %v6384_v44 }
 0x215   :  { %4197 = vmatprep.subr.bf16.mxu0 %v6389_v47  ;;  %4310 = vmatprep.subr.bf16.mxu1 %v6392_v48 }
 0x218   :  { %4198 = vmatpush1.bf16.msra.mxu0 %v6387_v49  ;;  %4311 = vmatpush1.bf16.msra.mxu1 %v6390_v50 }
 0x219   :  { %4199 = vmatprep.subr.bf16.mxu0 %v6395_v23  ;;  %4312 = vmatprep.subr.bf16.mxu1 %v6398_v39 }
 0x21a   :  { %3737 = vmatmul.mubr.bf16.gmra.mrb[8].mxu0 %v3485_v34  ;;  %3850 = vmatmul.mubr.bf16.gmra.mrb[8].mxu1 %v3485_v34 }
 0x21b   :  { %3746 = vmatprep.mubr.bf16.mxu0 %v6541_v0  ;;  %3859 = vmatprep.mubr.bf16.mxu1 %v6541_v0 }
 0x21c   :  { %4200 = vmatpush1.bf16.msra.mxu0 %v6393_v45  ;;  %4313 = vmatpush1.bf16.msra.mxu1 %v6396_v51 }
 0x21d   :  { %4201 = vmatprep.subr.bf16.mxu0 %v6401_v54  ;;  %4314 = vmatprep.subr.bf16.mxu1 %v6404_v56 }
 0x220   :  { %4202 = vmatpush1.bf16.msra.mxu0 %v6399_v60  ;;  %4315 = vmatpush1.bf16.msra.mxu1 %v6402_v55 }
 0x221   :  { %4203 = vmatprep.subr.bf16.mxu0 %v6407_v40  ;;  %4316 = vmatprep.subr.bf16.mxu1 %v6410_v52 }
 0x222   :  { %3747 = vmatmul.mubr.bf16.gmra.mrb[12].mxu0 %v3486_v46  ;;  %3860 = vmatmul.mubr.bf16.gmra.mrb[12].mxu1 %v3486_v46 }
 0x223   :  { %3756 = vmatprep.mubr.bf16.mxu0 %v6541_v0  ;;  %3869 = vmatprep.mubr.bf16.mxu1 %v6541_v0 }
 0x224   :  { %4204 = vmatpush1.bf16.msra.mxu0 %v6405_v57  ;;  %4317 = vmatpush1.bf16.msra.mxu1 %v6408_v63 }
 0x225   :  { %4205 = vmatprep.subr.bf16.mxu0 %v6413_v1  ;;  %4318 = vmatprep.subr.bf16.mxu1 %v6416_v2 }
 0x228   :  { %4206 = vmatpush1.bf16.msra.mxu0 %v6411_v3  ;;  %4319 = vmatpush1.bf16.msra.mxu1 %v6414_v61 }
 0x22a   :  { %3757 = vmatmul.mubr.bf16.gmra.mrb[16].mxu0 %v3487_v43  ;;  %3870 = vmatmul.mubr.bf16.gmra.mrb[16].mxu1 %v3487_v43 }
 0x22b   :  { %3766 = vmatprep.mubr.bf16.mxu0 %v6541_v0  ;;  %3879 = vmatprep.mubr.bf16.mxu1 %v6541_v0 }
 0x232   :  { %3767 = vmatmul.mubr.bf16.gmra.mrb[20].mxu0 %v3488_v5  ;;  %3880 = vmatmul.mubr.bf16.gmra.mrb[20].mxu1 %v3488_v5 }
 0x233   :  { %3776 = vmatprep.mubr.bf16.mxu0 %v6541_v0  ;;  %3889 = vmatprep.mubr.bf16.mxu1 %v6541_v0 }
 0x23a   :  { %3777 = vmatmul.mubr.bf16.gmra.mrb[24].mxu0 %v3489_v4  ;;  %3890 = vmatmul.mubr.bf16.gmra.mrb[24].mxu1 %v3489_v4 }
 0x23b   :  { %3786 = vmatprep.mubr.bf16.mxu0 %v6541_v0  ;;  %3899 = vmatprep.mubr.bf16.mxu1 %v6541_v0 }
 0x242   :  { %3787 = vmatmul.mubr.bf16.gmra.mrb[28].mxu0 %v3490_v6  ;;  %3900 = vmatmul.mubr.bf16.gmra.mrb[28].mxu1 %v3490_v6 }
 0x243   :  { %4223 = vmatprep.mubr.bf16.mxu0 %v6541_v0  ;;  %4336 = vmatprep.mubr.bf16.mxu1 %v6541_v0 }
 0x24a   :  { %4224 = vmatmul.mubr.bf16.vlgmr.msra.gmra.mrb[0].mxu0 %v3990_v8  ;;  %4337 = vmatmul.mubr.bf16.vlgmr.msra.gmra.mrb[0].mxu1 %v3990_v8 }
 0x24b   :  { %4233 = vmatprep.mubr.bf16.mxu0 %v6541_v0  ;;  %4346 = vmatprep.mubr.bf16.mxu1 %v6541_v0 }
 0x252   :  { %4234 = vmatmul.mubr.bf16.gmra.mrb[4].mxu0 %v3991_v58  ;;  %4347 = vmatmul.mubr.bf16.gmra.mrb[4].mxu1 %v3991_v58 }
 0x253   :  { %4243 = vmatprep.mubr.bf16.mxu0 %v6541_v0  ;;  %4356 = vmatprep.mubr.bf16.mxu1 %v6541_v0 }
 0x25a   :  { %4244 = vmatmul.mubr.bf16.gmra.mrb[8].mxu0 %v3992_v22  ;;  %4357 = vmatmul.mubr.bf16.gmra.mrb[8].mxu1 %v3992_v22 }
 0x25b   :  { %4253 = vmatprep.mubr.bf16.mxu0 %v6541_v0  ;;  %4366 = vmatprep.mubr.bf16.mxu1 %v6541_v0 }
 0x262   :  { %4254 = vmatmul.mubr.bf16.gmra.mrb[12].mxu0 %v3993_v12  ;;  %4367 = vmatmul.mubr.bf16.gmra.mrb[12].mxu1 %v3993_v12 }
 0x263   :  { %4263 = vmatprep.mubr.bf16.mxu0 %v6541_v0  ;;  %4376 = vmatprep.mubr.bf16.mxu1 %v6541_v0 }
 0x26a   :  { %4264 = vmatmul.mubr.bf16.gmra.mrb[16].mxu0 %v3994_v18  ;;  %4377 = vmatmul.mubr.bf16.gmra.mrb[16].mxu1 %v3994_v18 }
 0x26b   :  { %4273 = vmatprep.mubr.bf16.mxu0 %v6541_v0  ;;  %4386 = vmatprep.mubr.bf16.mxu1 %v6541_v0 }
 0x272   :  { %4274 = vmatmul.mubr.bf16.gmra.mrb[20].mxu0 %v3995_v25  ;;  %4387 = vmatmul.mubr.bf16.gmra.mrb[20].mxu1 %v3995_v25 }
 0x273   :  { %4283 = vmatprep.mubr.bf16.mxu0 %v6541_v0  ;;  %4396 = vmatprep.mubr.bf16.mxu1 %v6541_v0 }
 0x27a   :  { %4284 = vmatmul.mubr.bf16.gmra.mrb[24].mxu0 %v3996_v32  ;;  %4397 = vmatmul.mubr.bf16.gmra.mrb[24].mxu1 %v3996_v32 }
 0x27b   :  { %4293 = vmatprep.mubr.bf16.mxu0 %v6541_v0  ;;  %4406 = vmatprep.mubr.bf16.mxu1 %v6541_v0 }
 0x282   :  { %4294 = vmatmul.mubr.bf16.gmra.mrb[28].mxu0 %v3997_v36  ;;  %4407 = vmatmul.mubr.bf16.gmra.mrb[28].mxu1 %v3997_v36 }
 0x31d   :  { %v4225_v37 = vpop.f32.mrb[0].mxu0  ;;  %v4338_v27 = vpop.f32.mrb[0].mxu1 }
 0x31e   :  { %v4887_v38 = vmul.f32 %v4225_v37, %v4225_v37  ;;  %v4889_v41 = vmul.f32 %v4338_v27, %v4338_v27  ;;  %v4227_v42 = vpop.f32.mrb[1].mxu0  ;;  %v4340_v31 = vpop.f32.mrb[1].mxu1 }
 0x31f   :  { %v5430_v26 = vpack.c.bf16 %v4227_v42, %v4225_v37  ;;  %v4888_v15 = vmul.f32 %v4227_v42, %v4227_v42  ;;  %v5431_v33 = vpack.c.bf16 %v4340_v31, %v4338_v27  ;;  %v4890_v9 = vmul.f32 %v4340_v31, %v4340_v31  ;;  %v4229_v16 = vpop.f32.mrb[2].mxu0  ;;  %v4342_v44 = vpop.f32.mrb[2].mxu1 }
 0x320   :  { %v4769_v47 = vadd.f32 %v4229_v16, %v4225_v37  ;;  %v4891_v48 = vmul.f32 %v4229_v16, %v4229_v16  ;;  %v4811_v0 = vadd.f32 %v4342_v44, %v4338_v27  ;;  %v4893_v49 = vmul.f32 %v4342_v44, %v4342_v44  ;;  %v4231_v50 = vpop.f32.mrb[3].mxu0  ;;  %v4344_v13 = vpop.f32.mrb[3].mxu1 }
 0x321   :  { %4737 = vst [vmem:[#allocation7] sm:$0xff] %v5430_v26  ;;  %4738 = vst [vmem:[#allocation7 + $0x8] sm:$0xff] %v5431_v33  ;;  %v5432_v23 = vpack.c.bf16 %v4231_v50, %v4229_v16  ;;  %v4790_v39 = vadd.f32 %v4231_v50, %v4227_v42  ;;  %v4892_v34 = vmul.f32 %v4231_v50, %v4231_v50 }
 0x322   :  { %v5433_v45 = vpack.c.bf16 %v4344_v13, %v4342_v44  ;;  %v4951_v51 = vadd.f32 %v4891_v48, %v4887_v38  ;;  %v4993_v54 = vadd.f32 %v4893_v49, %v4889_v41  ;;  %v4832_v56 = vadd.f32 %v4344_v13, %v4340_v31 }
 0x323   :  { %v4894_v59 = vmul.f32 %v4344_v13, %v4344_v13  ;;  %4739 = vst [vmem:[#allocation7 + $0x10] sm:$0xff] %v5432_v23  ;;  %v4972_v60 = vadd.f32 %v4892_v34, %v4888_v15 }
 0x324   :  { %4740 = vst [vmem:[#allocation7 + $0x18] sm:$0xff] %v5433_v45 }
 0x325   :  { %v5014_v55 = vadd.f32 %v4894_v59, %v4890_v9  ;;  %v4235_v40 = vpop.f32.mrb[4].mxu0  ;;  %v4348_v52 = vpop.f32.mrb[4].mxu1 }
 0x326   :  { %v4770_v46 = vadd.f32 %v4769_v47, %v4235_v40  ;;  %v4895_v57 = vmul.f32 %v4235_v40, %v4235_v40  ;;  %v4812_v63 = vadd.f32 %v4811_v0, %v4348_v52  ;;  %v4897_v1 = vmul.f32 %v4348_v52, %v4348_v52  ;;  %v4237_v2 = vpop.f32.mrb[5].mxu0  ;;  %v4350_v3 = vpop.f32.mrb[5].mxu1 }
 0x327   :  { %v5434_v61 = vpack.c.bf16 %v4237_v2, %v4235_v40  ;;  %v4791_v43 = vadd.f32 %v4790_v39, %v4237_v2  ;;  %v4896_v5 = vmul.f32 %v4237_v2, %v4237_v2  ;;  %v5435_v4 = vpack.c.bf16 %v4350_v3, %v4348_v52  ;;  %v4239_v19 = vpop.f32.mrb[6].mxu0  ;;  %v4352_v6 = vpop.f32.mrb[6].mxu1 }
 0x328   :  { %v4952_v20 = vadd.f32 %v4951_v51, %v4895_v57  ;;  %v4994_v10 = vadd.f32 %v4993_v54, %v4897_v1  ;;  %v4833_v8 = vadd.f32 %v4832_v56, %v4350_v3  ;;  %v4898_v11 = vmul.f32 %v4350_v3, %v4350_v3  ;;  %v4241_v24 = vpop.f32.mrb[7].mxu0  ;;  %v4354_v58 = vpop.f32.mrb[7].mxu1 }
 0x329   :  { %4741 = vst [vmem:[#allocation7 + $0x20] sm:$0xff] %v5434_v61  ;;  %v4973_v28 = vadd.f32 %v4972_v60, %v4896_v5  ;;  %4742 = vst [vmem:[#allocation7 + $0x28] sm:$0xff] %v5435_v4  ;;  %v4771_v17 = vadd.f32 %v4770_v46, %v4239_v19  ;;  %v4899_v22 = vmul.f32 %v4239_v19, %v4239_v19 }
 0x32a   :  { %v4813_v53 = vadd.f32 %v4812_v63, %v4352_v6  ;;  %v5015_v12 = vadd.f32 %v5014_v55, %v4898_v11  ;;  %v4901_v7 = vmul.f32 %v4352_v6, %v4352_v6  ;;  %v5436_v14 = vpack.c.bf16 %v4241_v24, %v4239_v19 }
 0x32b   :  { %v4792_v18 = vadd.f32 %v4791_v43, %v4241_v24  ;;  %v4953_v29 = vadd.f32 %v4952_v20, %v4899_v22  ;;  %v4900_v21 = vmul.f32 %v4241_v24, %v4241_v24  ;;  %v5437_v25 = vpack.c.bf16 %v4354_v58, %v4352_v6 }
 0x32c   :  { %v4834_v62 = vadd.f32 %v4833_v8, %v4354_v58  ;;  %v4995_v30 = vadd.f32 %v4994_v10, %v4901_v7  ;;  %4743 = vst [vmem:[#allocation7 + $0x30] sm:$0xff] %v5436_v14  ;;  %v4902_v32 = vmul.f32 %v4354_v58, %v4354_v58 }
 0x32d   :  { %v4974_v35 = vadd.f32 %v4973_v28, %v4900_v21  ;;  %4744 = vst [vmem:[#allocation7 + $0x38] sm:$0xff] %v5437_v25  ;;  %v4245_v36 = vpop.f32.mrb[8].mxu0  ;;  %v4358_v37 = vpop.f32.mrb[8].mxu1 }
 0x32e   :  { %v5016_v27 = vadd.f32 %v5015_v12, %v4902_v32  ;;  %v4772_v38 = vadd.f32 %v4771_v17, %v4245_v36  ;;  %v4903_v41 = vmul.f32 %v4245_v36, %v4245_v36  ;;  %v4814_v42 = vadd.f32 %v4813_v53, %v4358_v37  ;;  %v4247_v31 = vpop.f32.mrb[9].mxu0  ;;  %v4360_v26 = vpop.f32.mrb[9].mxu1 }
 0x32f   :  { %v4905_v15 = vmul.f32 %v4358_v37, %v4358_v37  ;;  %v5438_v33 = vpack.c.bf16 %v4247_v31, %v4245_v36  ;;  %v4793_v9 = vadd.f32 %v4792_v18, %v4247_v31  ;;  %v4904_v16 = vmul.f32 %v4247_v31, %v4247_v31  ;;  %v4249_v44 = vpop.f32.mrb[10].mxu0  ;;  %v4362_v47 = vpop.f32.mrb[10].mxu1 }
 0x330   :  { %v4954_v48 = vadd.f32 %v4953_v29, %v4903_v41  ;;  %v5439_v0 = vpack.c.bf16 %v4360_v26, %v4358_v37  ;;  %v4835_v49 = vadd.f32 %v4834_v62, %v4360_v26  ;;  %v4906_v50 = vmul.f32 %v4360_v26, %v4360_v26  ;;  %v4251_v13 = vpop.f32.mrb[11].mxu0  ;;  %v4364_v23 = vpop.f32.mrb[11].mxu1 }
 0x331   :  { %v4996_v39 = vadd.f32 %v4995_v30, %v4905_v15  ;;  %4745 = vst [vmem:[#allocation7 + $0x40] sm:$0xff] %v5438_v33  ;;  %v4975_v34 = vadd.f32 %v4974_v35, %v4904_v16  ;;  %v4773_v45 = vadd.f32 %v4772_v38, %v4249_v44  ;;  %v4907_v51 = vmul.f32 %v4249_v44, %v4249_v44 }
 0x332   :  { %4746 = vst [vmem:[#allocation7 + $0x48] sm:$0xff] %v5439_v0  ;;  %v5017_v54 = vadd.f32 %v5016_v27, %v4906_v50  ;;  %v4815_v56 = vadd.f32 %v4814_v42, %v4362_v47  ;;  %v4909_v59 = vmul.f32 %v4362_v47, %v4362_v47  ;;  %v5440_v60 = vpack.c.bf16 %v4251_v13, %v4249_v44 }
 0x333   :  { %v4955_v55 = vadd.f32 %v4954_v48, %v4907_v51  ;;  %v4794_v40 = vadd.f32 %v4793_v9, %v4251_v13  ;;  %v4908_v52 = vmul.f32 %v4251_v13, %v4251_v13  ;;  %v5441_v46 = vpack.c.bf16 %v4364_v23, %v4362_v47 }
 0x334   :  { %v4997_v57 = vadd.f32 %v4996_v39, %v4909_v59  ;;  %4747 = vst [vmem:[#allocation7 + $0x50] sm:$0xff] %v5440_v60  ;;  %v4836_v63 = vadd.f32 %v4835_v49, %v4364_v23  ;;  %v4910_v1 = vmul.f32 %v4364_v23, %v4364_v23 }
 0x335   :  { %v4976_v2 = vadd.f32 %v4975_v34, %v4908_v52  ;;  %4748 = vst [vmem:[#allocation7 + $0x58] sm:$0xff] %v5441_v46  ;;  %v4255_v3 = vpop.f32.mrb[12].mxu0  ;;  %v4368_v61 = vpop.f32.mrb[12].mxu1 }
 0x336   :  { %v5018_v43 = vadd.f32 %v5017_v54, %v4910_v1  ;;  %v4774_v5 = vadd.f32 %v4773_v45, %v4255_v3  ;;  %v4911_v4 = vmul.f32 %v4255_v3, %v4255_v3  ;;  %v4816_v19 = vadd.f32 %v4815_v56, %v4368_v61  ;;  %v4257_v6 = vpop.f32.mrb[13].mxu0  ;;  %v4370_v20 = vpop.f32.mrb[13].mxu1 }
 0x337   :  { %v4913_v10 = vmul.f32 %v4368_v61, %v4368_v61  ;;  %v5442_v8 = vpack.c.bf16 %v4257_v6, %v4255_v3  ;;  %v4795_v11 = vadd.f32 %v4794_v40, %v4257_v6  ;;  %v4912_v24 = vmul.f32 %v4257_v6, %v4257_v6  ;;  %v4259_v58 = vpop.f32.mrb[14].mxu0  ;;  %v4372_v28 = vpop.f32.mrb[14].mxu1 }
 0x338   :  { %v4956_v17 = vadd.f32 %v4955_v55, %v4911_v4  ;;  %v5443_v22 = vpack.c.bf16 %v4370_v20, %v4368_v61  ;;  %v4837_v53 = vadd.f32 %v4836_v63, %v4370_v20  ;;  %v4914_v12 = vmul.f32 %v4370_v20, %v4370_v20  ;;  %v4261_v7 = vpop.f32.mrb[15].mxu0  ;;  %v4374_v14 = vpop.f32.mrb[15].mxu1 }
 0x339   :  { %v4998_v18 = vadd.f32 %v4997_v57, %v4913_v10  ;;  %4749 = vst [vmem:[#allocation7 + $0x60] sm:$0xff] %v5442_v8  ;;  %v4977_v29 = vadd.f32 %v4976_v2, %v4912_v24  ;;  %v4775_v21 = vadd.f32 %v4774_v5, %v4259_v58  ;;  %v4915_v25 = vmul.f32 %v4259_v58, %v4259_v58 }
 0x33a   :  { %4750 = vst [vmem:[#allocation7 + $0x68] sm:$0xff] %v5443_v22  ;;  %v5019_v62 = vadd.f32 %v5018_v43, %v4914_v12  ;;  %v4817_v30 = vadd.f32 %v4816_v19, %v4372_v28  ;;  %v4917_v32 = vmul.f32 %v4372_v28, %v4372_v28  ;;  %v5444_v35 = vpack.c.bf16 %v4261_v7, %v4259_v58 }
 0x33b   :  { %v4957_v36 = vadd.f32 %v4956_v17, %v4915_v25  ;;  %v4796_v37 = vadd.f32 %v4795_v11, %v4261_v7  ;;  %v4916_v27 = vmul.f32 %v4261_v7, %v4261_v7  ;;  %v5445_v38 = vpack.c.bf16 %v4374_v14, %v4372_v28 }
 0x33c   :  { %v4999_v41 = vadd.f32 %v4998_v18, %v4917_v32  ;;  %4751 = vst [vmem:[#allocation7 + $0x70] sm:$0xff] %v5444_v35  ;;  %v4838_v42 = vadd.f32 %v4837_v53, %v4374_v14  ;;  %v4918_v31 = vmul.f32 %v4374_v14, %v4374_v14 }
 0x33d   :  { %v4978_v26 = vadd.f32 %v4977_v29, %v4916_v27  ;;  %4752 = vst [vmem:[#allocation7 + $0x78] sm:$0xff] %v5445_v38  ;;  %v4265_v15 = vpop.f32.mrb[16].mxu0  ;;  %v4378_v33 = vpop.f32.mrb[16].mxu1 }
 0x33e   :  { %v5020_v9 = vadd.f32 %v5019_v62, %v4918_v31  ;;  %v4776_v16 = vadd.f32 %v4775_v21, %v4265_v15  ;;  %v4919_v44 = vmul.f32 %v4265_v15, %v4265_v15  ;;  %v4818_v47 = vadd.f32 %v4817_v30, %v4378_v33  ;;  %v4267_v48 = vpop.f32.mrb[17].mxu0  ;;  %v4380_v0 = vpop.f32.mrb[17].mxu1 }
 0x33f   :  { %v4921_v49 = vmul.f32 %v4378_v33, %v4378_v33  ;;  %v5446_v50 = vpack.c.bf16 %v4267_v48, %v4265_v15  ;;  %v4797_v13 = vadd.f32 %v4796_v37, %v4267_v48  ;;  %v4920_v23 = vmul.f32 %v4267_v48, %v4267_v48  ;;  %v4269_v39 = vpop.f32.mrb[18].mxu0  ;;  %v4382_v34 = vpop.f32.mrb[18].mxu1 }
 0x340   :  { %v4958_v45 = vadd.f32 %v4957_v36, %v4919_v44  ;;  %v5447_v51 = vpack.c.bf16 %v4380_v0, %v4378_v33  ;;  %v4839_v54 = vadd.f32 %v4838_v42, %v4380_v0  ;;  %v4922_v56 = vmul.f32 %v4380_v0, %v4380_v0  ;;  %v4271_v59 = vpop.f32.mrb[19].mxu0  ;;  %v4384_v60 = vpop.f32.mrb[19].mxu1 }
 0x341   :  { %v5000_v55 = vadd.f32 %v4999_v41, %v4921_v49  ;;  %4753 = vst [vmem:[#allocation7 + $0x80] sm:$0xff] %v5446_v50  ;;  %v4979_v40 = vadd.f32 %v4978_v26, %v4920_v23  ;;  %v4777_v52 = vadd.f32 %v4776_v16, %v4269_v39  ;;  %v4923_v46 = vmul.f32 %v4269_v39, %v4269_v39 }
 0x342   :  { %4754 = vst [vmem:[#allocation7 + $0x88] sm:$0xff] %v5447_v51  ;;  %v5021_v57 = vadd.f32 %v5020_v9, %v4922_v56  ;;  %v4819_v63 = vadd.f32 %v4818_v47, %v4382_v34  ;;  %v4925_v1 = vmul.f32 %v4382_v34, %v4382_v34  ;;  %v5448_v2 = vpack.c.bf16 %v4271_v59, %v4269_v39 }
 0x343   :  { %v4959_v3 = vadd.f32 %v4958_v45, %v4923_v46  ;;  %v4798_v61 = vadd.f32 %v4797_v13, %v4271_v59  ;;  %v4924_v43 = vmul.f32 %v4271_v59, %v4271_v59  ;;  %v5449_v5 = vpack.c.bf16 %v4384_v60, %v4382_v34 }
 0x344   :  { %v5001_v4 = vadd.f32 %v5000_v55, %v4925_v1  ;;  %4755 = vst [vmem:[#allocation7 + $0x90] sm:$0xff] %v5448_v2  ;;  %v4840_v19 = vadd.f32 %v4839_v54, %v4384_v60  ;;  %v4926_v6 = vmul.f32 %v4384_v60, %v4384_v60  ;;  %v6542_v13 = vmov 1966171168  }
 0x345   :  { %v4980_v20 = vadd.f32 %v4979_v40, %v4924_v43  ;;  %4756 = vst [vmem:[#allocation7 + $0x98] sm:$0xff] %v5449_v5  ;;  %v4275_v10 = vpop.f32.mrb[20].mxu0  ;;  %v4388_v8 = vpop.f32.mrb[20].mxu1  ;;  %v6910_v23 = vunpack.c.l.s4 %v6542_v13  ;;  %v4862_v39 = vlaneseq }
 0x346   :  { %v5022_v11 = vadd.f32 %v5021_v57, %v4926_v6  ;;  %v4778_v24 = vadd.f32 %v4777_v52, %v4275_v10  ;;  %v4927_v58 = vmul.f32 %v4275_v10, %v4275_v10  ;;  %v4820_v28 = vadd.f32 %v4819_v63, %v4388_v8  ;;  %v4277_v17 = vpop.f32.mrb[21].mxu0  ;;  %v4390_v22 = vpop.f32.mrb[21].mxu1 }
 0x347   :  { %v4929_v53 = vmul.f32 %v4388_v8, %v4388_v8  ;;  %v5450_v12 = vpack.c.bf16 %v4277_v17, %v4275_v10  ;;  %v4799_v7 = vadd.f32 %v4798_v61, %v4277_v17  ;;  %v4928_v14 = vmul.f32 %v4277_v17, %v4277_v17  ;;  %v4279_v18 = vpop.f32.mrb[22].mxu0  ;;  %v4392_v29 = vpop.f32.mrb[22].mxu1 }
 0x348   :  { %v4960_v21 = vadd.f32 %v4959_v3, %v4927_v58  ;;  %v5451_v25 = vpack.c.bf16 %v4390_v22, %v4388_v8  ;;  %v4841_v62 = vadd.f32 %v4840_v19, %v4390_v22  ;;  %v4930_v30 = vmul.f32 %v4390_v22, %v4390_v22  ;;  %v4281_v32 = vpop.f32.mrb[23].mxu0  ;;  %v4394_v35 = vpop.f32.mrb[23].mxu1 }
 0x349   :  { %v5002_v36 = vadd.f32 %v5001_v4, %v4929_v53  ;;  %4757 = vst [vmem:[#allocation7 + $0xa0] sm:$0xff] %v5450_v12  ;;  %v4981_v37 = vadd.f32 %v4980_v20, %v4928_v14  ;;  %v4779_v27 = vadd.f32 %v4778_v24, %v4279_v18  ;;  %v4931_v38 = vmul.f32 %v4279_v18, %v4279_v18 }
 0x34a   :  { %4758 = vst [vmem:[#allocation7 + $0xa8] sm:$0xff] %v5451_v25  ;;  %v5023_v41 = vadd.f32 %v5022_v11, %v4930_v30  ;;  %v4821_v42 = vadd.f32 %v4820_v28, %v4392_v29  ;;  %v4933_v31 = vmul.f32 %v4392_v29, %v4392_v29  ;;  %v5452_v26 = vpack.c.bf16 %v4281_v32, %v4279_v18 }
 0x34b   :  { %v4961_v15 = vadd.f32 %v4960_v21, %v4931_v38  ;;  %v4800_v33 = vadd.f32 %v4799_v7, %v4281_v32  ;;  %v4932_v9 = vmul.f32 %v4281_v32, %v4281_v32  ;;  %v5453_v16 = vpack.c.bf16 %v4394_v35, %v4392_v29 }
 0x34c   :  { %v5003_v44 = vadd.f32 %v5002_v36, %v4933_v31  ;;  %4759 = vst [vmem:[#allocation7 + $0xb0] sm:$0xff] %v5452_v26  ;;  %v4842_v47 = vadd.f32 %v4841_v62, %v4394_v35  ;;  %v4934_v48 = vmul.f32 %v4394_v35, %v4394_v35  ;;  %v4861_v29 = vunpack.c.0.s8 %v6910_v23 }
 0x34d   :  { %v4982_v0 = vadd.f32 %v4981_v37, %v4932_v9  ;;  %4760 = vst [vmem:[#allocation7 + $0xb8] sm:$0xff] %v5453_v16  ;;  %v4285_v49 = vpop.f32.mrb[24].mxu0  ;;  %v4398_v50 = vpop.f32.mrb[24].mxu1  ;;  %v6914_v21 = vshrl.u32 %v4862_v39, 7 }
 0x34e   :  { %v5024_v34 = vadd.f32 %v5023_v41, %v4934_v48  ;;  %v4780_v45 = vadd.f32 %v4779_v27, %v4285_v49  ;;  %v4935_v51 = vmul.f32 %v4285_v49, %v4285_v49  ;;  %v4822_v54 = vadd.f32 %v4821_v42, %v4398_v50  ;;  %v4287_v56 = vpop.f32.mrb[25].mxu0  ;;  %v4400_v59 = vpop.f32.mrb[25].mxu1 }
 0x34f   :  { %v4937_v60 = vmul.f32 %v4398_v50, %v4398_v50  ;;  %v5454_v55 = vpack.c.bf16 %v4287_v56, %v4285_v49  ;;  %v4801_v40 = vadd.f32 %v4800_v33, %v4287_v56  ;;  %v4936_v52 = vmul.f32 %v4287_v56, %v4287_v56  ;;  %v4289_v46 = vpop.f32.mrb[26].mxu0  ;;  %v4402_v57 = vpop.f32.mrb[26].mxu1 }
 0x350   :  { %v4962_v63 = vadd.f32 %v4961_v15, %v4935_v51  ;;  %v5455_v1 = vpack.c.bf16 %v4400_v59, %v4398_v50  ;;  %v4843_v2 = vadd.f32 %v4842_v47, %v4400_v59  ;;  %v4938_v3 = vmul.f32 %v4400_v59, %v4400_v59  ;;  %v4291_v61 = vpop.f32.mrb[27].mxu0  ;;  %v4404_v43 = vpop.f32.mrb[27].mxu1 }
 0x351   :  { %v5004_v5 = vadd.f32 %v5003_v44, %v4937_v60  ;;  %4761 = vst [vmem:[#allocation7 + $0xc0] sm:$0xff] %v5454_v55  ;;  %v4983_v4 = vadd.f32 %v4982_v0, %v4936_v52  ;;  %v4781_v19 = vadd.f32 %v4780_v45, %v4289_v46  ;;  %v4939_v6 = vmul.f32 %v4289_v46, %v4289_v46 }
 0x352   :  { %4762 = vst [vmem:[#allocation7 + $0xc8] sm:$0xff] %v5455_v1  ;;  %v5025_v20 = vadd.f32 %v5024_v34, %v4938_v3  ;;  %v4823_v10 = vadd.f32 %v4822_v54, %v4402_v57  ;;  %v4941_v8 = vmul.f32 %v4402_v57, %v4402_v57  ;;  %v5456_v11 = vpack.c.bf16 %v4291_v61, %v4289_v46 }
 0x353   :  { %v4963_v24 = vadd.f32 %v4962_v63, %v4939_v6  ;;  %v4802_v58 = vadd.f32 %v4801_v40, %v4291_v61  ;;  %v4940_v28 = vmul.f32 %v4291_v61, %v4291_v61  ;;  %v5457_v17 = vpack.c.bf16 %v4404_v43, %v4402_v57 }
 0x354   :  { %v5005_v22 = vadd.f32 %v5004_v5, %v4941_v8  ;;  %4763 = vst [vmem:[#allocation7 + $0xd0] sm:$0xff] %v5456_v11  ;;  %v4844_v53 = vadd.f32 %v4843_v2, %v4404_v43  ;;  %v4942_v12 = vmul.f32 %v4404_v43, %v4404_v43 }
 0x355   :  { %v4984_v7 = vadd.f32 %v4983_v4, %v4940_v28  ;;  %4764 = vst [vmem:[#allocation7 + $0xd8] sm:$0xff] %v5457_v17  ;;  %v4295_v14 = vpop.f32.mrb[28].mxu0  ;;  %v4408_v18 = vpop.f32.mrb[28].mxu1 }
 0x356   :  { %v5026_v25 = vadd.f32 %v5025_v20, %v4942_v12  ;;  %v4782_v62 = vadd.f32 %v4781_v19, %v4295_v14  ;;  %v4943_v30 = vmul.f32 %v4295_v14, %v4295_v14  ;;  %v4824_v32 = vadd.f32 %v4823_v10, %v4408_v18  ;;  %v4297_v35 = vpop.f32.mrb[29].mxu0  ;;  %v4410_v36 = vpop.f32.mrb[29].mxu1 }
 0x357   :  { %v4945_v37 = vmul.f32 %v4408_v18, %v4408_v18  ;;  %v5458_v27 = vpack.c.bf16 %v4297_v35, %v4295_v14  ;;  %v4803_v38 = vadd.f32 %v4802_v58, %v4297_v35  ;;  %v4944_v41 = vmul.f32 %v4297_v35, %v4297_v35  ;;  %v4299_v42 = vpop.f32.mrb[30].mxu0  ;;  %v4412_v31 = vpop.f32.mrb[30].mxu1 }
 0x358   :  { %v4964_v26 = vadd.f32 %v4963_v24, %v4943_v30  ;;  %v5459_v15 = vpack.c.bf16 %v4410_v36, %v4408_v18  ;;  %v4845_v33 = vadd.f32 %v4844_v53, %v4410_v36  ;;  %v4946_v9 = vmul.f32 %v4410_v36, %v4410_v36  ;;  %v4301_v16 = vpop.f32.mrb[31].mxu0  ;;  %v4414_v44 = vpop.f32.mrb[31].mxu1 }
 0x359   :  { %v5006_v47 = vadd.f32 %v5005_v22, %v4945_v37  ;;  %4765 = vst [vmem:[#allocation7 + $0xe0] sm:$0xff] %v5458_v27  ;;  %v4985_v48 = vadd.f32 %v4984_v7, %v4944_v41  ;;  %v4783_v0 = vadd.f32 %v4782_v62, %v4299_v42  ;;  %v4947_v49 = vmul.f32 %v4299_v42, %v4299_v42 }
 0x35a   :  { %4766 = vst [vmem:[#allocation7 + $0xe8] sm:$0xff] %v5459_v15  ;;  %v5027_v50 = vadd.f32 %v5026_v25, %v4946_v9  ;;  %v4825_v13 = vadd.f32 %v4824_v32, %v4412_v31  ;;  %v4949_v34 = vmul.f32 %v4412_v31, %v4412_v31  ;;  %v5460_v45 = vpack.c.bf16 %v4301_v16, %v4299_v42 }
 0x35b   :  { %v4784_v51 = vrot.slane %v4783_v0, 4  ;;  %v4965_v54 = vadd.f32 %v4964_v26, %v4947_v49  ;;  %v4804_v56 = vadd.f32 %v4803_v38, %v4301_v16  ;;  %v4948_v59 = vmul.f32 %v4301_v16, %v4301_v16 }
 0x35c   :  { %v4826_v60 = vrot.slane %v4825_v13, 4  ;;  %v5007_v55 = vadd.f32 %v5006_v47, %v4949_v34  ;;  %4767 = vst [vmem:[#allocation7 + $0xf0] sm:$0xff] %v5460_v45  ;;  %v5461_v40 = vpack.c.bf16 %v4414_v44, %v4412_v31  ;;  %v4846_v52 = vadd.f32 %v4845_v33, %v4414_v44 }
 0x35d   :  { %v4785_v46 = vadd.f32 %v4784_v51, %v4783_v0  ;;  %v4966_v57 = vrot.slane %v4965_v54, 4  ;;  %v4805_v63 = vrot.slane %v4804_v56, 4  ;;  %v4986_v1 = vadd.f32 %v4985_v48, %v4948_v59 }
 0x35e   :  { %v4827_v2 = vadd.f32 %v4826_v60, %v4825_v13  ;;  %v5008_v3 = vrot.slane %v5007_v55, 4  ;;  %4768 = vst [vmem:[#allocation7 + $0xf8] sm:$0xff] %v5461_v40  ;;  %v4847_v61 = vrot.slane %v4846_v52, 4  ;;  %v4950_v43 = vmul.f32 %v4414_v44, %v4414_v44 }
 0x35f   :  { %v4786_v5 = vrot.slane %v4785_v46, 2  ;;  %v4967_v4 = vadd.f32 %v4966_v57, %v4965_v54  ;;  %v4806_v19 = vadd.f32 %v4805_v63, %v4804_v56  ;;  %v4987_v6 = vrot.slane %v4986_v1, 4 }
 0x360   :  { %6472 = shalt.err (!%p6469_p6)
}
 0x361   :  { %s6473_s20 = scalar_lea.hbm %s6976_s2, 4096 }
 0x362   :  { %p6474_p7 = scmp.ne.s32.totalorder %s6976_s2, %s6473_s20  ;;  %p6477_p8 = scmp.lt.u32.totalorder %s6473_s20, %s6976_s2 }
 0x364   :  { %p6479_p9 = pnand %p6477_p8, %p6474_p7 }
 0x366   :  { %6482 = shalt.err (!%p6479_p9)
}
 0x367   :  { %5076 = dma.vmem_to_hbm [thread:$0]  %s6916_s16, 4096, %s6976_s2, [#allocation4], %s6539_s0, %s6539_s0, %s6540_s13   ;;  %v4828_v20 = vrot.slane %v4827_v2, 2  ;;  %v5009_v10 = vadd.f32 %v5008_v3, %v5007_v55  ;;  %v4848_v8 = vadd.f32 %v4847_v61, %v4846_v52  ;;  %v5028_v11 = vadd.f32 %v5027_v50, %v4950_v43 }
 0x368   :  { %v4787_v24 = vadd.f32 %v4786_v5, %v4785_v46  ;;  %v4968_v58 = vrot.slane %v4967_v4, 2  ;;  %v4807_v28 = vrot.slane %v4806_v19, 2  ;;  %v4988_v17 = vadd.f32 %v4987_v6, %v4986_v1  ;;  %s6544_s2 = smov [#allocation8]   ;;  %s6545_s28 = smov [#allocation10]  }
 0x369   :  { %v4829_v22 = vadd.f32 %v4828_v20, %v4827_v2  ;;  %v5010_v53 = vrot.slane %v5009_v10, 2  ;;  %v4849_v12 = vrot.slane %v4848_v8, 2  ;;  %v5029_v7 = vrot.slane %v5028_v11, 4  ;;  %s5083_s27 = sshll.u32 %s6544_s2, 4  ;;  %s5093_s29 = sshll.u32 %s6545_s28, 4  ;;  %s5084_s27 = int_to_ptr.vmem [resolvable:$true] %s5083_s27  ;;  %s5094_s29 = int_to_ptr.vmem [resolvable:$true] %s5093_s29 }
 0x36a   :  { %v4788_v14 = vrot.slane %v4787_v24, 1  ;;  %v4969_v18 = vadd.f32 %v4968_v58, %v4967_v4  ;;  %v4808_v25 = vadd.f32 %v4807_v28, %v4806_v19  ;;  %v4989_v62 = vrot.slane %v4988_v17, 2  ;;  %s6483_s30 = scalar_lea.vmem %s5084_s27, 64  ;;  %p6488_p11 = scmp.lt.s32.totalorder %s5084_s27, %s5084_s27 }
 0x36b   :  { %v4830_v30 = vrot.slane %v4829_v22, 1  ;;  %v5011_v32 = vadd.f32 %v5010_v53, %v5009_v10  ;;  %v4850_v35 = vadd.f32 %v4849_v12, %v4848_v8  ;;  %v5030_v36 = vadd.f32 %v5029_v7, %v5028_v11  ;;  %p6484_p10 = scmp.ne.s32.totalorder %s5084_s27, %s6483_s30  ;;  %p6489_p12 = scmp.lt.s32.totalorder %s6483_s30, %s6483_s30 }
 0x36c   :  { %v4789_v37 = vadd.f32 %v4788_v14, %v4787_v24  ;;  %v4970_v27 = vrot.slane %v4969_v18, 1  ;;  %v4809_v38 = vrot.slane %v4808_v25, 1  ;;  %v4990_v41 = vadd.f32 %v4989_v62, %v4988_v17 }
 0x36d   :  { %v4831_v42 = vadd.f32 %v4830_v30, %v4829_v22  ;;  %v5012_v31 = vrot.slane %v5011_v32, 1  ;;  %v4851_v26 = vrot.slane %v4850_v35, 1  ;;  %v5031_v15 = vrot.slane %v5030_v36, 2  ;;  %p6490_p13 = por %p6489_p12, %p6488_p11 }
 0x36e   :  { %v4971_v33 = vadd.f32 %v4970_v27, %v4969_v18  ;;  %v4810_v9 = vadd.f32 %v4809_v38, %v4808_v25  ;;  %v4991_v16 = vrot.slane %v4990_v41, 1  ;;  %v4864_v44 = vsub.s32 %v4861_v29, %v6914_v21 }
 0x36f   :  { %v4852_v47 = vadd.f32 %v4851_v26, %v4850_v35  ;;  %v5032_v48 = vadd.f32 %v5031_v15, %v5030_v36  ;;  %v5013_v50 = vadd.f32 %v5012_v31, %v5011_v32  ;;  %vm6942_vm0 = vcmp.lt.s32.totalorder %v4862_v39, 512  ;;  %p6491_p0 = pnand %p6490_p13, %p6484_p10 }
 0x370   :  { %v4857_v0 = vcombine.low %v4789_v37, %v4810_v9  ;;  %v4992_v49 = vadd.f32 %v4991_v16, %v4990_v41 }
 0x371   :  { %v4858_v13 = vcombine.low %v4831_v42, %v4852_v47  ;;  %v5033_v34 = vrot.slane %v5032_v48, 1 }
 0x372   :  { %v5039_v45 = vcombine.low %v4971_v33, %v4992_v49  ;;  %v4865_v51 = vrot.slane %v4857_v0, %v4864_v44 }
 0x373   :  { %v5034_v54 = vadd.f32 %v5033_v34, %v5032_v48  ;;  %v4872_v56 = vrot.slane %v4858_v13, %v4864_v44 }
 0x374   :  { %v5047_v55 = vrot.slane %v5039_v45, %v4864_v44 }
 0x375   :  { %v5040_v59 = vcombine.low %v5013_v50, %v5034_v54  ;;  %v4873_v60 = vcombine.low %v4865_v51, %v4872_v56 }
 0x377   :  { %v4880_v29 = vrot.slane %v4873_v60, %v4864_v44  ;;  %v5054_v21 = vrot.slane %v5040_v59, %v4864_v44 }
 0x379   :  { %4886 = vst.msk [vmem:[#allocation8] sm:$0xf] %vm6942_vm0, %v4880_v29  ;;  %v5055_v40 = vcombine.low %v5047_v55, %v5054_v21 }
 0x37a   :  { %6494 = shalt.err (!%p6491_p0)
}
 0x37b   :  { %s6495_s7 = scalar_lea.hbm %s6977_s3, 64 }
 0x37c   :  { %p6496_p1 = scmp.ne.s32.totalorder %s6977_s3, %s6495_s7  ;;  %p6499_p2 = scmp.lt.u32.totalorder %s6495_s7, %s6977_s3 }
 0x37e   :  { %p6501_p3 = pnand %p6499_p2, %p6496_p1 }
 0x380   :  { %6504 = shalt.err (!%p6501_p3)
}
 0x381   :  { %5086 = dma.vmem_to_hbm [thread:$0]  %s5084_s27, 64, %s6977_s3, [#allocation9]   ;;  %v5062_v39 = vrot.slane %v5055_v40, %v4864_v44 }
 0x382   :  { %s6505_s13 = scalar_lea.vmem %s5094_s29, 64  ;;  %p6510_p5 = scmp.lt.s32.totalorder %s5094_s29, %s5094_s29 }
 0x383   :  { %5064 = vst.msk [vmem:[#allocation10] sm:$0xf] %vm6942_vm0, %v5062_v39  ;;  %p6506_p4 = scmp.ne.s32.totalorder %s5094_s29, %s6505_s13  ;;  %p6511_p6 = scmp.lt.s32.totalorder %s6505_s13, %s6505_s13 }
 0x385   :  { %p6512_p7 = por %p6511_p6, %p6510_p5 }
 0x387   :  { %p6513_p8 = pnand %p6512_p7, %p6506_p4 }
 0x389   :  { %6516 = shalt.err (!%p6513_p8)
}
 0x38a   :  { %s6517_s1 = scalar_lea.hbm %s6978_s4, 64 }
 0x38b   :  { %p6518_p9 = scmp.ne.s32.totalorder %s6978_s4, %s6517_s1  ;;  %p6521_p10 = scmp.lt.u32.totalorder %s6517_s1, %s6978_s4 }
 0x38d   :  { %p6523_p11 = pnand %p6521_p10, %p6518_p9 }
 0x38f   :  { %6526 = shalt.err (!%p6523_p11)
}
 0x390   :  { %5096 = dma.vmem_to_hbm [thread:$0]  %s5094_s29, 64, %s6978_s4, [#allocation9]  }
 0x391   :  { %6531 = dma.done.wait [#allocation4], 4096  }
 0x392   :  { %6532 = vsyncadd [#allocation4], 4294963200 }
 0x393   :  { %6533 = dma.done.wait [#allocation9], 128  }
 0x394   :  { %6534 = vsyncadd [#allocation9], 4294967168 }
 0x395   :  { %5106 = vsyncpa [#allocation3], 1 }
 0x396   :  { %5107 = vsyncpa [#allocation6], 1 }
 0x397   :  { %5108 = vsyncpa [#allocation4], 1 }
 0x398   :  { %5109 = vsyncpa [#allocation9], 1 }

</bundles_post_ra>
